<compile_context>
chip_gen: v7x
topology: tpu7x:2x2x1
jax: 0.10.0
libtpu: 0.0.40
codegen_flags: <defaults>
</compile_context>

<pallas_src>
import functools

import jax
import jax.numpy as jnp
from jax.experimental import pallas as pl
from jax.experimental.pallas import tpu as pltpu

LEAKY_SLOPE = 0.01
HIDDEN = 128          # self.hidden in the PyTorch module
ZP = 8                # per-side zero-pad rows in the padded VMEM activation buffer
MAX_K = 5             # largest conv kernel size (noise_to_latent conv #2)


def _lrelu(v):
    return jnp.where(v >= 0, v, LEAKY_SLOPE * v)


# --------------------------------------------------------------------------
# The fused kernel
# --------------------------------------------------------------------------
def _generator_kernel(
    x_ref,                       # (B*L, 1)       input noise, row = b*L + l
    w1_ref, b1_ref,              # (1, 128)       Conv1d(1,128,k=1)
    w2_ref, b2_ref,              # (640, 128)     Conv1d(128,128,k=5,d=2,p=4) im2col
    w3_ref, b3_ref,              # (384, 128)     block_cnn Conv1d(128,128,k=3,d=2,p=2)
    w4_ref, b4_ref,              # (384, 128)     shift conv, Cout padded 10 -> 128
    w5_ref, b5_ref,              # (L*128, 256)   shift fc, flatten-permuted + padded
    w6_ref, b6_ref,              # (256, 256)     residual dense block (shared)
    w7_ref, b7_ref,              # (256, 128)     latent_to_output, dout padded -> 128
    out_ref,                     # (B, 128)
    xpad_ref,                    # (B*(L+2*ZP), 128)  padded conv activations
    patch_ref,                   # (B*L, MAX_K*128)   im2col scratch
    xs_ref,                      # (B*L, 128)         shift-conv activation
    xsf_ref,                     # (B, L*128)         position-major flattened shift act
    *, B, L,
):
    C = HIDDEN
    LP = L + 2 * ZP              # rows per batch element in xpad_ref

    # Zero the padded buffer once; borders are never written again.
    xpad_ref[...] = jnp.zeros_like(xpad_ref)

    def writeback(z):            # z: (B*L, C) -> centre rows of xpad
        for b in range(B):
            xpad_ref[b * LP + ZP:b * LP + ZP + L, :] = z[b * L:(b + 1) * L, :]

    def build_patches(K, pad):   # im2col: patch[b*L+l, k*C+c] = x[b, l + 2k - pad, c]
        for b in range(B):
            base = b * LP + ZP - pad
            for k in range(K):
                patch_ref[b * L:(b + 1) * L, k * C:(k + 1) * C] = \
                    xpad_ref[base + 2 * k:base + 2 * k + L, :]

    def conv(w_ref, b_ref, K, pad, residual):
        build_patches(K, pad)
        z = jnp.dot(patch_ref[:, :K * C], w_ref[...],
                    preferred_element_type=jnp.float32) + b_ref[...]
        z = _lrelu(z)
        if residual:
            # for K=3 / pad=2 the centre tap (k=1) is the unshifted input
            z = z + patch_ref[:, C:2 * C]
        return z

    # --- noise_to_latent conv #1: Conv1d(1,128,k=1) + LeakyReLU --------------
    h = _lrelu(x_ref[...] * w1_ref[...] + b1_ref[...])          # (B*L, 128)
    writeback(h)

    # --- noise_to_latent conv #2: Conv1d(128,128,k=5,d=2,p=4) + LeakyReLU ----
    writeback(conv(w2_ref, b2_ref, K=5, pad=4, residual=False))

    # --- 3 x residual block_cnn (shared weights) -----------------------------
    for _ in range(3):
        writeback(conv(w3_ref, b3_ref, K=3, pad=2, residual=True))

    # --- block_shift conv: Conv1d(128,10,k=3,d=2,p=2)+LReLU (Cout padded) ----
    xs_ref[...] = conv(w4_ref, b4_ref, K=3, pad=2, residual=False)

    # Channel-major Flatten is absorbed into w5 (rows permuted to l*128 + c),
    # so here we only lay xs out position-major along lanes: (B, L*128).
    for b in range(B):
        for l in range(L):
            r = b * L + l
            xsf_ref[b:b + 1, l * C:(l + 1) * C] = xs_ref[r:r + 1, :]

    # --- block_shift fc: Linear(10*L, 256) + LeakyReLU -----------------------
    y = _lrelu(jnp.dot(xsf_ref[...], w5_ref[...],
                       preferred_element_type=jnp.float32) + b5_ref[...])

    # --- 3 x residual dense block (shared weights, kept resident) ------------
    w6 = w6_ref[...]
    b6 = b6_ref[...]
    for _ in range(3):
        y = _lrelu(jnp.dot(y, w6, preferred_element_type=jnp.float32) + b6) + y

    # --- latent_to_output: Linear(256, dout) (padded to 128 lanes) -----------
    out = jnp.dot(y, w7_ref[...], preferred_element_type=jnp.float32) + b7_ref[...]
    out_ref[...] = out.astype(out_ref.dtype)


# --------------------------------------------------------------------------
# Parameter init (deterministic, PyTorch-default-style uniform fan-in bounds)
# --------------------------------------------------------------------------
def _init_linear(key, din, dout):
    k1, k2 = jax.random.split(key)
    bound = 1.0 / (din ** 0.5)
    w = jax.random.uniform(k1, (din, dout), jnp.float32, -bound, bound)
    b = jax.random.uniform(k2, (dout,), jnp.float32, -bound, bound)
    return w, b


def _init_conv(key, cin, cout, K):
    k1, k2 = jax.random.split(key)
    bound = 1.0 / ((cin * K) ** 0.5)
    # stored as (K, Cin, Cout) == torch weight (Cout, Cin, K) transposed
    w = jax.random.uniform(k1, (K, cin, cout), jnp.float32, -bound, bound)
    b = jax.random.uniform(k2, (cout,), jnp.float32, -bound, bound)
    return w, b


def init_generator_params(key, latent_dim, ts_dim, condition, hidden=HIDDEN):
    keys = jax.random.split(key, 7)
    return {
        "n2l_conv1": _init_conv(keys[0], 1, hidden, 1),          # Conv1d(1,128,k=1)
        "n2l_conv2": _init_conv(keys[1], hidden, hidden, 5),     # Conv1d(128,128,k=5,d=2,p=4)
        "block_cnn": _init_conv(keys[2], hidden, hidden, 3),     # Conv1d(128,128,k=3,d=2,p=2)
        "shift_conv": _init_conv(keys[3], hidden, 10, 3),        # Conv1d(128,10,k=3,d=2,p=2)
        "shift_fc": _init_linear(keys[4], 10 * latent_dim, 256),
        "block_fc": _init_linear(keys[5], 256, 256),
        "out_fc": _init_linear(keys[6], 256, ts_dim - condition),
    }


# --------------------------------------------------------------------------
# One-time conversion of raw params into kernel-ready (lane-dense) layout
# --------------------------------------------------------------------------
def prepare_kernel_params(params, latent_dim, ts_dim, condition, hidden=HIDDEN):
    L = latent_dim
    dout = ts_dim - condition
    out_pad = max(128, -(-dout // 128) * 128)

    def conv_w(wb):                       # (K, Cin, Cout) -> (K*Cin, Cout), bias -> (1, Cout)
        w, b = wb
        K, cin, cout = w.shape
        return w.reshape(K * cin, cout), b.reshape(1, cout)

    w1, b1 = conv_w(params["n2l_conv1"])                  # (1,128)
    w2, b2 = conv_w(params["n2l_conv2"])                  # (640,128)
    w3, b3 = conv_w(params["block_cnn"])                  # (384,128)
    w4s, b4s = conv_w(params["shift_conv"])               # (384,10)
    w4 = jnp.pad(w4s, ((0, 0), (0, hidden - 10)))         # pad Cout 10 -> 128
    b4 = jnp.pad(b4s, ((0, 0), (0, hidden - 10)))

    # shift_fc: fold channel-major flatten (index c*L + l) into a position-major
    # (index l*128 + c) weight with zero rows for the padded channels.
    wfc, bfc = params["shift_fc"]                         # (10*L, 256)
    wfc = wfc.reshape(10, L, 256).transpose(1, 0, 2)      # (L, 10, 256)
    wfc = jnp.pad(wfc, ((0, 0), (0, hidden - 10), (0, 0)))
    w5 = wfc.reshape(L * hidden, 256)                     # (L*128, 256)
    b5 = bfc.reshape(1, 256)

    w6, b6 = params["block_fc"]
    b6 = b6.reshape(1, 256)

    w7s, b7s = params["out_fc"]                           # (256, dout)
    w7 = jnp.pad(w7s, ((0, 0), (0, out_pad - dout)))      # lane-dense output
    b7 = jnp.pad(b7s.reshape(1, dout), ((0, 0), (0, out_pad - dout)))

    return {"w1": w1, "b1": b1, "w2": w2, "b2": b2, "w3": w3, "b3": b3,
            "w4": w4, "b4": b4, "w5": w5, "b5": b5, "w6": w6, "b6": b6,
            "w7": w7, "b7": b7}


# --------------------------------------------------------------------------
# Forward pass (single fused pallas_call)
# --------------------------------------------------------------------------
def generator_forward(kparams, input_data, *, latent_dim, ts_dim, condition):
    B = input_data.shape[0]
    L = latent_dim
    dout = ts_dim - condition
    out_pad = kparams["w7"].shape[1]

    x2d = input_data.astype(jnp.float32).reshape(B * L, 1)   # row = b*L + l

    args = [x2d,
            kparams["w1"], kparams["b1"], kparams["w2"], kparams["b2"],
            kparams["w3"], kparams["b3"], kparams["w4"], kparams["b4"],
            kparams["w5"], kparams["b5"], kparams["w6"], kparams["b6"],
            kparams["w7"], kparams["b7"]]
    in_specs = [pl.BlockSpec(a.shape, lambda i: (0, 0)) for a in args]

    out = pl.pallas_call(
        functools.partial(_generator_kernel, B=B, L=L),
        out_shape=jax.ShapeDtypeStruct((B, out_pad), jnp.float32),
        grid=(1,),
        in_specs=in_specs,
        out_specs=pl.BlockSpec((B, out_pad), lambda i: (0, 0)),
        scratch_shapes=[
            pltpu.VMEM((B * (L + 2 * ZP), HIDDEN), jnp.float32),   # padded activations
            pltpu.VMEM((B * L, MAX_K * HIDDEN), jnp.float32),      # im2col patches
            pltpu.VMEM((B * L, HIDDEN), jnp.float32),              # shift-conv activation
            pltpu.VMEM((B, L * HIDDEN), jnp.float32),              # flattened shift act
        ],
        compiler_params=pltpu.CompilerParams(
            dimension_semantics=("arbitrary",)),
    )(*args)

    return out[:, :dout][:, None, :]                              # (B, 1, ts_dim-cond)


# --------------------------------------------------------------------------
# Pure-JAX reference (mirrors PyTorch semantics) for a correctness check
# --------------------------------------------------------------------------
def generator_forward_ref(params, input_data, *, latent_dim):
    slope = LEAKY_SLOPE

    def lrelu(v):
        return jnp.where(v >= 0, v, slope * v)

    def conv_ref(x, w, b, pad, dil):
        Bn, Ln, _ = x.shape
        K = w.shape[0]
        xp = jnp.pad(x, ((0, 0), (pad, pad), (0, 0)))
        acc = sum(jnp.einsum("blc,cd->bld", xp[:, k * dil:k * dil + Ln, :], w[k])
                  for k in range(K))
        return lrelu(acc + b)

    B = input_data.shape[0]
    L = latent_dim
    x = jnp.transpose(input_data, (0, 2, 1)).astype(jnp.float32)
    w, b = params["n2l_conv1"]; x = conv_ref(x, w, b, 0, 1)
    w, b = params["n2l_conv2"]; x = conv_ref(x, w, b, 4, 2)
    w, b = params["block_cnn"]
    for _ in range(3):
        x = conv_ref(x, w, b, 2, 2) + x
    w, b = params["shift_conv"]; xs = conv_ref(x, w, b, 2, 2)
    xs = jnp.transpose(xs, (0, 2, 1)).reshape(B, 10 * L)          # channel-major flatten
    w, b = params["shift_fc"]; x = lrelu(xs @ w + b)
    w, b = params["block_fc"]
    for _ in range(3):
        x = lrelu(x @ w + b) + x
    w, b = params["out_fc"]; out = x @ w + b
    return out[:, None, :]


# --------------------------------------------------------------------------
if __name__ == "__main__":
    latent_dim, ts_dim, condition = 16, 24, 8
    batch = 2

    key = jax.random.PRNGKey(0)
    k_params, k_input = jax.random.split(key)
    params = init_generator_params(k_params, latent_dim, ts_dim, condition)
    kparams = prepare_kernel_params(params, latent_dim, ts_dim, condition)

    input_data = jax.random.normal(k_input, (batch, 1, latent_dim), jnp.float32)

    fwd = jax.jit(functools.partial(generator_forward, latent_dim=latent_dim,
                                    ts_dim=ts_dim, condition=condition))
    out = jax.block_until_ready(fwd(kparams, input_data))

    ref = jax.block_until_ready(
        generator_forward_ref(params, input_data, latent_dim=latent_dim))

    assert out.shape == (batch, 1, ts_dim - condition), out.shape
    assert jnp.allclose(out, ref, atol=2e-3, rtol=1e-3), float(jnp.abs(out - ref).max())

    print("KERNEL_OK")
</pallas_src>

<mosaic_0001>
module attributes {stable_mosaic.version = 11 : i64} {
  func.func @_generator_kernel(%arg0: i32, %arg1: memref<32x1xf32, #tpu.memory_space<vmem>>, %arg2: memref<1x128xf32, #tpu.memory_space<vmem>>, %arg3: memref<1x128xf32, #tpu.memory_space<vmem>>, %arg4: memref<640x128xf32, #tpu.memory_space<vmem>>, %arg5: memref<1x128xf32, #tpu.memory_space<vmem>>, %arg6: memref<384x128xf32, #tpu.memory_space<vmem>>, %arg7: memref<1x128xf32, #tpu.memory_space<vmem>>, %arg8: memref<384x128xf32, #tpu.memory_space<vmem>>, %arg9: memref<1x128xf32, #tpu.memory_space<vmem>>, %arg10: memref<2048x256xf32, #tpu.memory_space<vmem>>, %arg11: memref<1x256xf32, #tpu.memory_space<vmem>>, %arg12: memref<256x256xf32, #tpu.memory_space<vmem>>, %arg13: memref<1x256xf32, #tpu.memory_space<vmem>>, %arg14: memref<256x128xf32, #tpu.memory_space<vmem>>, %arg15: memref<1x128xf32, #tpu.memory_space<vmem>>, %arg16: memref<2x128xf32, #tpu.memory_space<vmem>>, %arg17: memref<64x128xf32, #tpu.memory_space<vmem>>, %arg18: memref<32x640xf32, #tpu.memory_space<vmem>>, %arg19: memref<32x128xf32, #tpu.memory_space<vmem>>, %arg20: memref<2x2048xf32, #tpu.memory_space<vmem>>) attributes {dimension_semantics = [#tpu.dimension_semantics<arbitrary>], iteration_bounds = array<i64: 1>, scalar_prefetch = 0 : i64, scratch_operands = 4 : i64, tpu.core_type = #tpu.core_type<tc>, window_params = [{pipeline_mode = #tpu.pipeline_mode<synchronous>, transform_indices = @transform_0, window_bounds = array<i64: 32, 1>}, {pipeline_mode = #tpu.pipeline_mode<synchronous>, transform_indices = @transform_1, window_bounds = array<i64: 1, 128>}, {pipeline_mode = #tpu.pipeline_mode<synchronous>, transform_indices = @transform_2, window_bounds = array<i64: 1, 128>}, {pipeline_mode = #tpu.pipeline_mode<synchronous>, transform_indices = @transform_3, window_bounds = array<i64: 640, 128>}, {pipeline_mode = #tpu.pipeline_mode<synchronous>, transform_indices = @transform_4, window_bounds = array<i64: 1, 128>}, {pipeline_mode = #tpu.pipeline_mode<synchronous>, transform_indices = @transform_5, window_bounds = array<i64: 384, 128>}, {pipeline_mode = #tpu.pipeline_mode<synchronous>, transform_indices = @transform_6, window_bounds = array<i64: 1, 128>}, {pipeline_mode = #tpu.pipeline_mode<synchronous>, transform_indices = @transform_7, window_bounds = array<i64: 384, 128>}, {pipeline_mode = #tpu.pipeline_mode<synchronous>, transform_indices = @transform_8, window_bounds = array<i64: 1, 128>}, {pipeline_mode = #tpu.pipeline_mode<synchronous>, transform_indices = @transform_9, window_bounds = array<i64: 2048, 256>}, {pipeline_mode = #tpu.pipeline_mode<synchronous>, transform_indices = @transform_10, window_bounds = array<i64: 1, 256>}, {pipeline_mode = #tpu.pipeline_mode<synchronous>, transform_indices = @transform_11, window_bounds = array<i64: 256, 256>}, {pipeline_mode = #tpu.pipeline_mode<synchronous>, transform_indices = @transform_12, window_bounds = array<i64: 1, 256>}, {pipeline_mode = #tpu.pipeline_mode<synchronous>, transform_indices = @transform_13, window_bounds = array<i64: 256, 128>}, {pipeline_mode = #tpu.pipeline_mode<synchronous>, transform_indices = @transform_14, window_bounds = array<i64: 1, 128>}, {pipeline_mode = #tpu.pipeline_mode<synchronous>, transform_indices = @transform_15, window_bounds = array<i64: 2, 128>}]} {
    %cst = arith.constant 0.000000e+00 : f32
    %0 = vector.broadcast %cst : f32 to vector<64x128xf32>
    %c0 = arith.constant 0 : index
    %c0_0 = arith.constant 0 : index
    %1 = vector.load %arg17[%c0, %c0_0] : memref<64x128xf32, #tpu.memory_space<vmem>>, vector<64x128xf32>
    tpu.vector_store %arg17[%c0, %c0_0], %0 {strides = array<i32>} : memref<64x128xf32, #tpu.memory_space<vmem>>, vector<64x128xf32>,
    %c0_1 = arith.constant 0 : index
    %c0_2 = arith.constant 0 : index
    %2 = vector.load %arg1[%c0_1, %c0_2] : memref<32x1xf32, #tpu.memory_space<vmem>>, vector<32x1xf32>
    %c0_3 = arith.constant 0 : index
    %c0_4 = arith.constant 0 : index
    %3 = vector.load %arg2[%c0_3, %c0_4] : memref<1x128xf32, #tpu.memory_space<vmem>>, vector<1x128xf32>
    %4 = vector.broadcast %2 : vector<32x1xf32> to vector<32x128xf32>
    %5 = vector.broadcast %3 : vector<1x128xf32> to vector<32x128xf32>
    %6 = arith.mulf %4, %5 : vector<32x128xf32>
    %c0_5 = arith.constant 0 : index
    %c0_6 = arith.constant 0 : index
    %7 = vector.load %arg3[%c0_5, %c0_6] : memref<1x128xf32, #tpu.memory_space<vmem>>, vector<1x128xf32>
    %8 = vector.broadcast %7 : vector<1x128xf32> to vector<32x128xf32>
    %9 = arith.addf %6, %8 : vector<32x128xf32>
    %cst_7 = arith.constant 0.000000e+00 : f32
    %10 = vector.broadcast %cst_7 : f32 to vector<32x128xf32>
    %11 = arith.cmpf oge, %9, %10 : vector<32x128xf32>
    %cst_8 = arith.constant 0.00999999977 : f32
    %12 = vector.broadcast %cst_8 : f32 to vector<32x128xf32>
    %13 = arith.mulf %12, %9 : vector<32x128xf32>
    %14 = arith.select %11, %9, %13 : vector<32x128xi1>, vector<32x128xf32>
    %15 = vector.extract_strided_slice %14 {offsets = [0, 0], sizes = [16, 128], strides = [1, 1]} : vector<32x128xf32> to vector<16x128xf32>
    %c8 = arith.constant 8 : index
    %c0_9 = arith.constant 0 : index
    %16 = vector.load %arg17[%c8, %c0_9] : memref<64x128xf32, #tpu.memory_space<vmem>>, vector<16x128xf32>
    tpu.vector_store %arg17[%c8, %c0_9], %15 {strides = array<i32>} : memref<64x128xf32, #tpu.memory_space<vmem>>, vector<16x128xf32>,
    %17 = vector.extract_strided_slice %14 {offsets = [16, 0], sizes = [16, 128], strides = [1, 1]} : vector<32x128xf32> to vector<16x128xf32>
    %c40 = arith.constant 40 : index
    %c0_10 = arith.constant 0 : index
    %18 = vector.load %arg17[%c40, %c0_10] : memref<64x128xf32, #tpu.memory_space<vmem>>, vector<16x128xf32>
    tpu.vector_store %arg17[%c40, %c0_10], %17 {strides = array<i32>} : memref<64x128xf32, #tpu.memory_space<vmem>>, vector<16x128xf32>,
    %c4 = arith.constant 4 : index
    %c0_11 = arith.constant 0 : index
    %19 = vector.load %arg17[%c4, %c0_11] : memref<64x128xf32, #tpu.memory_space<vmem>>, vector<16x128xf32>
    %c0_12 = arith.constant 0 : index
    %c0_13 = arith.constant 0 : index
    %20 = vector.load %arg18[%c0_12, %c0_13] : memref<32x640xf32, #tpu.memory_space<vmem>>, vector<16x128xf32>
    tpu.vector_store %arg18[%c0_12, %c0_13], %19 {strides = array<i32>} : memref<32x640xf32, #tpu.memory_space<vmem>>, vector<16x128xf32>,
    %c6 = arith.constant 6 : index
    %c0_14 = arith.constant 0 : index
    %21 = vector.load %arg17[%c6, %c0_14] : memref<64x128xf32, #tpu.memory_space<vmem>>, vector<16x128xf32>
    %c0_15 = arith.constant 0 : index
    %c128 = arith.constant 128 : index
    %22 = vector.load %arg18[%c0_15, %c128] : memref<32x640xf32, #tpu.memory_space<vmem>>, vector<16x128xf32>
    tpu.vector_store %arg18[%c0_15, %c128], %21 {strides = array<i32>} : memref<32x640xf32, #tpu.memory_space<vmem>>, vector<16x128xf32>,
    %c8_16 = arith.constant 8 : index
    %c0_17 = arith.constant 0 : index
    %23 = vector.load %arg17[%c8_16, %c0_17] : memref<64x128xf32, #tpu.memory_space<vmem>>, vector<16x128xf32>
    %c0_18 = arith.constant 0 : index
    %c256 = arith.constant 256 : index
    %24 = vector.load %arg18[%c0_18, %c256] : memref<32x640xf32, #tpu.memory_space<vmem>>, vector<16x128xf32>
    tpu.vector_store %arg18[%c0_18, %c256], %23 {strides = array<i32>} : memref<32x640xf32, #tpu.memory_space<vmem>>, vector<16x128xf32>,
    %c10 = arith.constant 10 : index
    %c0_19 = arith.constant 0 : index
    %25 = vector.load %arg17[%c10, %c0_19] : memref<64x128xf32, #tpu.memory_space<vmem>>, vector<16x128xf32>
    %c0_20 = arith.constant 0 : index
    %c384 = arith.constant 384 : index
    %26 = vector.load %arg18[%c0_20, %c384] : memref<32x640xf32, #tpu.memory_space<vmem>>, vector<16x128xf32>
    tpu.vector_store %arg18[%c0_20, %c384], %25 {strides = array<i32>} : memref<32x640xf32, #tpu.memory_space<vmem>>, vector<16x128xf32>,
    %c12 = arith.constant 12 : index
    %c0_21 = arith.constant 0 : index
    %27 = vector.load %arg17[%c12, %c0_21] : memref<64x128xf32, #tpu.memory_space<vmem>>, vector<16x128xf32>
    %c0_22 = arith.constant 0 : index
    %c512 = arith.constant 512 : index
    %28 = vector.load %arg18[%c0_22, %c512] : memref<32x640xf32, #tpu.memory_space<vmem>>, vector<16x128xf32>
    tpu.vector_store %arg18[%c0_22, %c512], %27 {strides = array<i32>} : memref<32x640xf32, #tpu.memory_space<vmem>>, vector<16x128xf32>,
    %c36 = arith.constant 36 : index
    %c0_23 = arith.constant 0 : index
    %29 = vector.load %arg17[%c36, %c0_23] : memref<64x128xf32, #tpu.memory_space<vmem>>, vector<16x128xf32>
    %c16 = arith.constant 16 : index
    %c0_24 = arith.constant 0 : index
    %30 = vector.load %arg18[%c16, %c0_24] : memref<32x640xf32, #tpu.memory_space<vmem>>, vector<16x128xf32>
    tpu.vector_store %arg18[%c16, %c0_24], %29 {strides = array<i32>} : memref<32x640xf32, #tpu.memory_space<vmem>>, vector<16x128xf32>,
    %c38 = arith.constant 38 : index
    %c0_25 = arith.constant 0 : index
    %31 = vector.load %arg17[%c38, %c0_25] : memref<64x128xf32, #tpu.memory_space<vmem>>, vector<16x128xf32>
    %c16_26 = arith.constant 16 : index
    %c128_27 = arith.constant 128 : index
    %32 = vector.load %arg18[%c16_26, %c128_27] : memref<32x640xf32, #tpu.memory_space<vmem>>, vector<16x128xf32>
    tpu.vector_store %arg18[%c16_26, %c128_27], %31 {strides = array<i32>} : memref<32x640xf32, #tpu.memory_space<vmem>>, vector<16x128xf32>,
    %c40_28 = arith.constant 40 : index
    %c0_29 = arith.constant 0 : index
    %33 = vector.load %arg17[%c40_28, %c0_29] : memref<64x128xf32, #tpu.memory_space<vmem>>, vector<16x128xf32>
    %c16_30 = arith.constant 16 : index
    %c256_31 = arith.constant 256 : index
    %34 = vector.load %arg18[%c16_30, %c256_31] : memref<32x640xf32, #tpu.memory_space<vmem>>, vector<16x128xf32>
    tpu.vector_store %arg18[%c16_30, %c256_31], %33 {strides = array<i32>} : memref<32x640xf32, #tpu.memory_space<vmem>>, vector<16x128xf32>,
    %c42 = arith.constant 42 : index
    %c0_32 = arith.constant 0 : index
    %35 = vector.load %arg17[%c42, %c0_32] : memref<64x128xf32, #tpu.memory_space<vmem>>, vector<16x128xf32>
    %c16_33 = arith.constant 16 : index
    %c384_34 = arith.constant 384 : index
    %36 = vector.load %arg18[%c16_33, %c384_34] : memref<32x640xf32, #tpu.memory_space<vmem>>, vector<16x128xf32>
    tpu.vector_store %arg18[%c16_33, %c384_34], %35 {strides = array<i32>} : memref<32x640xf32, #tpu.memory_space<vmem>>, vector<16x128xf32>,
    %c44 = arith.constant 44 : index
    %c0_35 = arith.constant 0 : index
    %37 = vector.load %arg17[%c44, %c0_35] : memref<64x128xf32, #tpu.memory_space<vmem>>, vector<16x128xf32>
    %c16_36 = arith.constant 16 : index
    %c512_37 = arith.constant 512 : index
    %38 = vector.load %arg18[%c16_36, %c512_37] : memref<32x640xf32, #tpu.memory_space<vmem>>, vector<16x128xf32>
    tpu.vector_store %arg18[%c16_36, %c512_37], %37 {strides = array<i32>} : memref<32x640xf32, #tpu.memory_space<vmem>>, vector<16x128xf32>,
    %c0_38 = arith.constant 0 : index
    %c0_39 = arith.constant 0 : index
    %39 = vector.load %arg18[%c0_38, %c0_39] : memref<32x640xf32, #tpu.memory_space<vmem>>, vector<32x640xf32>
    %c0_40 = arith.constant 0 : index
    %c0_41 = arith.constant 0 : index
    %40 = vector.load %arg4[%c0_40, %c0_41] : memref<640x128xf32, #tpu.memory_space<vmem>>, vector<640x128xf32>
    %cst_42 = arith.constant dense<0.000000e+00> : vector<32x128xf32>
    %41 = tpu.matmul %39, %40, %cst_42 {dimension_numbers = #tpu.dot_dimension_numbers<[1], [0], [0], [1], [0, 0, 1, 1], [], []>} : vector<32x640xf32>, vector<640x128xf32>, vector<32x128xf32> -> vector<32x128xf32>
    %c0_43 = arith.constant 0 : index
    %c0_44 = arith.constant 0 : index
    %42 = vector.load %arg5[%c0_43, %c0_44] : memref<1x128xf32, #tpu.memory_space<vmem>>, vector<1x128xf32>
    %43 = vector.broadcast %42 : vector<1x128xf32> to vector<32x128xf32>
    %44 = arith.addf %41, %43 : vector<32x128xf32>
    %cst_45 = arith.constant 0.000000e+00 : f32
    %45 = vector.broadcast %cst_45 : f32 to vector<32x128xf32>
    %46 = arith.cmpf oge, %44, %45 : vector<32x128xf32>
    %cst_46 = arith.constant 0.00999999977 : f32
    %47 = vector.broadcast %cst_46 : f32 to vector<32x128xf32>
    %48 = arith.mulf %47, %44 : vector<32x128xf32>
    %49 = arith.select %46, %44, %48 : vector<32x128xi1>, vector<32x128xf32>
    %50 = vector.extract_strided_slice %49 {offsets = [0, 0], sizes = [16, 128], strides = [1, 1]} : vector<32x128xf32> to vector<16x128xf32>
    %c8_47 = arith.constant 8 : index
    %c0_48 = arith.constant 0 : index
    %51 = vector.load %arg17[%c8_47, %c0_48] : memref<64x128xf32, #tpu.memory_space<vmem>>, vector<16x128xf32>
    tpu.vector_store %arg17[%c8_47, %c0_48], %50 {strides = array<i32>} : memref<64x128xf32, #tpu.memory_space<vmem>>, vector<16x128xf32>,
    %52 = vector.extract_strided_slice %49 {offsets = [16, 0], sizes = [16, 128], strides = [1, 1]} : vector<32x128xf32> to vector<16x128xf32>
    %c40_49 = arith.constant 40 : index
    %c0_50 = arith.constant 0 : index
    %53 = vector.load %arg17[%c40_49, %c0_50] : memref<64x128xf32, #tpu.memory_space<vmem>>, vector<16x128xf32>
    tpu.vector_store %arg17[%c40_49, %c0_50], %52 {strides = array<i32>} : memref<64x128xf32, #tpu.memory_space<vmem>>, vector<16x128xf32>,
    %c6_51 = arith.constant 6 : index
    %c0_52 = arith.constant 0 : index
    %54 = vector.load %arg17[%c6_51, %c0_52] : memref<64x128xf32, #tpu.memory_space<vmem>>, vector<16x128xf32>
    %c0_53 = arith.constant 0 : index
    %c0_54 = arith.constant 0 : index
    %55 = vector.load %arg18[%c0_53, %c0_54] : memref<32x640xf32, #tpu.memory_space<vmem>>, vector<16x128xf32>
    tpu.vector_store %arg18[%c0_53, %c0_54], %54 {strides = array<i32>} : memref<32x640xf32, #tpu.memory_space<vmem>>, vector<16x128xf32>,
    %c8_55 = arith.constant 8 : index
    %c0_56 = arith.constant 0 : index
    %56 = vector.load %arg17[%c8_55, %c0_56] : memref<64x128xf32, #tpu.memory_space<vmem>>, vector<16x128xf32>
    %c0_57 = arith.constant 0 : index
    %c128_58 = arith.constant 128 : index
    %57 = vector.load %arg18[%c0_57, %c128_58] : memref<32x640xf32, #tpu.memory_space<vmem>>, vector<16x128xf32>
    tpu.vector_store %arg18[%c0_57, %c128_58], %56 {strides = array<i32>} : memref<32x640xf32, #tpu.memory_space<vmem>>, vector<16x128xf32>,
    %c10_59 = arith.constant 10 : index
    %c0_60 = arith.constant 0 : index
    %58 = vector.load %arg17[%c10_59, %c0_60] : memref<64x128xf32, #tpu.memory_space<vmem>>, vector<16x128xf32>
    %c0_61 = arith.constant 0 : index
    %c256_62 = arith.constant 256 : index
    %59 = vector.load %arg18[%c0_61, %c256_62] : memref<32x640xf32, #tpu.memory_space<vmem>>, vector<16x128xf32>
    tpu.vector_store %arg18[%c0_61, %c256_62], %58 {strides = array<i32>} : memref<32x640xf32, #tpu.memory_space<vmem>>, vector<16x128xf32>,
    %c38_63 = arith.constant 38 : index
    %c0_64 = arith.constant 0 : index
    %60 = vector.load %arg17[%c38_63, %c0_64] : memref<64x128xf32, #tpu.memory_space<vmem>>, vector<16x128xf32>
    %c16_65 = arith.constant 16 : index
    %c0_66 = arith.constant 0 : index
    %61 = vector.load %arg18[%c16_65, %c0_66] : memref<32x640xf32, #tpu.memory_space<vmem>>, vector<16x128xf32>
    tpu.vector_store %arg18[%c16_65, %c0_66], %60 {strides = array<i32>} : memref<32x640xf32, #tpu.memory_space<vmem>>, vector<16x128xf32>,
    %c40_67 = arith.constant 40 : index
    %c0_68 = arith.constant 0 : index
    %62 = vector.load %arg17[%c40_67, %c0_68] : memref<64x128xf32, #tpu.memory_space<vmem>>, vector<16x128xf32>
    %c16_69 = arith.constant 16 : index
    %c128_70 = arith.constant 128 : index
    %63 = vector.load %arg18[%c16_69, %c128_70] : memref<32x640xf32, #tpu.memory_space<vmem>>, vector<16x128xf32>
    tpu.vector_store %arg18[%c16_69, %c128_70], %62 {strides = array<i32>} : memref<32x640xf32, #tpu.memory_space<vmem>>, vector<16x128xf32>,
    %c42_71 = arith.constant 42 : index
    %c0_72 = arith.constant 0 : index
    %64 = vector.load %arg17[%c42_71, %c0_72] : memref<64x128xf32, #tpu.memory_space<vmem>>, vector<16x128xf32>
    %c16_73 = arith.constant 16 : index
    %c256_74 = arith.constant 256 : index
    %65 = vector.load %arg18[%c16_73, %c256_74] : memref<32x640xf32, #tpu.memory_space<vmem>>, vector<16x128xf32>
    tpu.vector_store %arg18[%c16_73, %c256_74], %64 {strides = array<i32>} : memref<32x640xf32, #tpu.memory_space<vmem>>, vector<16x128xf32>,
    %c0_75 = arith.constant 0 : index
    %c0_76 = arith.constant 0 : index
    %66 = vector.load %arg18[%c0_75, %c0_76] : memref<32x640xf32, #tpu.memory_space<vmem>>, vector<32x384xf32>
    %c0_77 = arith.constant 0 : index
    %c0_78 = arith.constant 0 : index
    %67 = vector.load %arg6[%c0_77, %c0_78] : memref<384x128xf32, #tpu.memory_space<vmem>>, vector<384x128xf32>
    %cst_79 = arith.constant dense<0.000000e+00> : vector<32x128xf32>
    %68 = tpu.matmul %66, %67, %cst_79 {dimension_numbers = #tpu.dot_dimension_numbers<[1], [0], [0], [1], [0, 0, 1, 1], [], []>} : vector<32x384xf32>, vector<384x128xf32>, vector<32x128xf32> -> vector<32x128xf32>
    %c0_80 = arith.constant 0 : index
    %c0_81 = arith.constant 0 : index
    %69 = vector.load %arg7[%c0_80, %c0_81] : memref<1x128xf32, #tpu.memory_space<vmem>>, vector<1x128xf32>
    %70 = vector.broadcast %69 : vector<1x128xf32> to vector<32x128xf32>
    %71 = arith.addf %68, %70 : vector<32x128xf32>
    %cst_82 = arith.constant 0.000000e+00 : f32
    %72 = vector.broadcast %cst_82 : f32 to vector<32x128xf32>
    %73 = arith.cmpf oge, %71, %72 : vector<32x128xf32>
    %cst_83 = arith.constant 0.00999999977 : f32
    %74 = vector.broadcast %cst_83 : f32 to vector<32x128xf32>
    %75 = arith.mulf %74, %71 : vector<32x128xf32>
    %76 = arith.select %73, %71, %75 : vector<32x128xi1>, vector<32x128xf32>
    %c0_84 = arith.constant 0 : index
    %c128_85 = arith.constant 128 : index
    %77 = vector.load %arg18[%c0_84, %c128_85] : memref<32x640xf32, #tpu.memory_space<vmem>>, vector<32x128xf32>
    %78 = arith.addf %76, %77 : vector<32x128xf32>
    %79 = vector.extract_strided_slice %78 {offsets = [0, 0], sizes = [16, 128], strides = [1, 1]} : vector<32x128xf32> to vector<16x128xf32>
    %c8_86 = arith.constant 8 : index
    %c0_87 = arith.constant 0 : index
    %80 = vector.load %arg17[%c8_86, %c0_87] : memref<64x128xf32, #tpu.memory_space<vmem>>, vector<16x128xf32>
    tpu.vector_store %arg17[%c8_86, %c0_87], %79 {strides = array<i32>} : memref<64x128xf32, #tpu.memory_space<vmem>>, vector<16x128xf32>,
    %81 = vector.extract_strided_slice %78 {offsets = [16, 0], sizes = [16, 128], strides = [1, 1]} : vector<32x128xf32> to vector<16x128xf32>
    %c40_88 = arith.constant 40 : index
    %c0_89 = arith.constant 0 : index
    %82 = vector.load %arg17[%c40_88, %c0_89] : memref<64x128xf32, #tpu.memory_space<vmem>>, vector<16x128xf32>
    tpu.vector_store %arg17[%c40_88, %c0_89], %81 {strides = array<i32>} : memref<64x128xf32, #tpu.memory_space<vmem>>, vector<16x128xf32>,
    %c6_90 = arith.constant 6 : index
    %c0_91 = arith.constant 0 : index
    %83 = vector.load %arg17[%c6_90, %c0_91] : memref<64x128xf32, #tpu.memory_space<vmem>>, vector<16x128xf32>
    %c0_92 = arith.constant 0 : index
    %c0_93 = arith.constant 0 : index
    %84 = vector.load %arg18[%c0_92, %c0_93] : memref<32x640xf32, #tpu.memory_space<vmem>>, vector<16x128xf32>
    tpu.vector_store %arg18[%c0_92, %c0_93], %83 {strides = array<i32>} : memref<32x640xf32, #tpu.memory_space<vmem>>, vector<16x128xf32>,
    %c8_94 = arith.constant 8 : index
    %c0_95 = arith.constant 0 : index
    %85 = vector.load %arg17[%c8_94, %c0_95] : memref<64x128xf32, #tpu.memory_space<vmem>>, vector<16x128xf32>
    %c0_96 = arith.constant 0 : index
    %c128_97 = arith.constant 128 : index
    %86 = vector.load %arg18[%c0_96, %c128_97] : memref<32x640xf32, #tpu.memory_space<vmem>>, vector<16x128xf32>
    tpu.vector_store %arg18[%c0_96, %c128_97], %85 {strides = array<i32>} : memref<32x640xf32, #tpu.memory_space<vmem>>, vector<16x128xf32>,
    %c10_98 = arith.constant 10 : index
    %c0_99 = arith.constant 0 : index
    %87 = vector.load %arg17[%c10_98, %c0_99] : memref<64x128xf32, #tpu.memory_space<vmem>>, vector<16x128xf32>
    %c0_100 = arith.constant 0 : index
    %c256_101 = arith.constant 256 : index
    %88 = vector.load %arg18[%c0_100, %c256_101] : memref<32x640xf32, #tpu.memory_space<vmem>>, vector<16x128xf32>
    tpu.vector_store %arg18[%c0_100, %c256_101], %87 {strides = array<i32>} : memref<32x640xf32, #tpu.memory_space<vmem>>, vector<16x128xf32>,
    %c38_102 = arith.constant 38 : index
    %c0_103 = arith.constant 0 : index
    %89 = vector.load %arg17[%c38_102, %c0_103] : memref<64x128xf32, #tpu.memory_space<vmem>>, vector<16x128xf32>
    %c16_104 = arith.constant 16 : index
    %c0_105 = arith.constant 0 : index
    %90 = vector.load %arg18[%c16_104, %c0_105] : memref<32x640xf32, #tpu.memory_space<vmem>>, vector<16x128xf32>
    tpu.vector_store %arg18[%c16_104, %c0_105], %89 {strides = array<i32>} : memref<32x640xf32, #tpu.memory_space<vmem>>, vector<16x128xf32>,
    %c40_106 = arith.constant 40 : index
    %c0_107 = arith.constant 0 : index
    %91 = vector.load %arg17[%c40_106, %c0_107] : memref<64x128xf32, #tpu.memory_space<vmem>>, vector<16x128xf32>
    %c16_108 = arith.constant 16 : index
    %c128_109 = arith.constant 128 : index
    %92 = vector.load %arg18[%c16_108, %c128_109] : memref<32x640xf32, #tpu.memory_space<vmem>>, vector<16x128xf32>
    tpu.vector_store %arg18[%c16_108, %c128_109], %91 {strides = array<i32>} : memref<32x640xf32, #tpu.memory_space<vmem>>, vector<16x128xf32>,
    %c42_110 = arith.constant 42 : index
    %c0_111 = arith.constant 0 : index
    %93 = vector.load %arg17[%c42_110, %c0_111] : memref<64x128xf32, #tpu.memory_space<vmem>>, vector<16x128xf32>
    %c16_112 = arith.constant 16 : index
    %c256_113 = arith.constant 256 : index
    %94 = vector.load %arg18[%c16_112, %c256_113] : memref<32x640xf32, #tpu.memory_space<vmem>>, vector<16x128xf32>
    tpu.vector_store %arg18[%c16_112, %c256_113], %93 {strides = array<i32>} : memref<32x640xf32, #tpu.memory_space<vmem>>, vector<16x128xf32>,
    %c0_114 = arith.constant 0 : index
    %c0_115 = arith.constant 0 : index
    %95 = vector.load %arg18[%c0_114, %c0_115] : memref<32x640xf32, #tpu.memory_space<vmem>>, vector<32x384xf32>
    %c0_116 = arith.constant 0 : index
    %c0_117 = arith.constant 0 : index
    %96 = vector.load %arg6[%c0_116, %c0_117] : memref<384x128xf32, #tpu.memory_space<vmem>>, vector<384x128xf32>
    %cst_118 = arith.constant dense<0.000000e+00> : vector<32x128xf32>
    %97 = tpu.matmul %95, %96, %cst_118 {dimension_numbers = #tpu.dot_dimension_numbers<[1], [0], [0], [1], [0, 0, 1, 1], [], []>} : vector<32x384xf32>, vector<384x128xf32>, vector<32x128xf32> -> vector<32x128xf32>
    %c0_119 = arith.constant 0 : index
    %c0_120 = arith.constant 0 : index
    %98 = vector.load %arg7[%c0_119, %c0_120] : memref<1x128xf32, #tpu.memory_space<vmem>>, vector<1x128xf32>
    %99 = vector.broadcast %98 : vector<1x128xf32> to vector<32x128xf32>
    %100 = arith.addf %97, %99 : vector<32x128xf32>
    %cst_121 = arith.constant 0.000000e+00 : f32
    %101 = vector.broadcast %cst_121 : f32 to vector<32x128xf32>
    %102 = arith.cmpf oge, %100, %101 : vector<32x128xf32>
    %cst_122 = arith.constant 0.00999999977 : f32
    %103 = vector.broadcast %cst_122 : f32 to vector<32x128xf32>
    %104 = arith.mulf %103, %100 : vector<32x128xf32>
    %105 = arith.select %102, %100, %104 : vector<32x128xi1>, vector<32x128xf32>
    %c0_123 = arith.constant 0 : index
    %c128_124 = arith.constant 128 : index
    %106 = vector.load %arg18[%c0_123, %c128_124] : memref<32x640xf32, #tpu.memory_space<vmem>>, vector<32x128xf32>
    %107 = arith.addf %105, %106 : vector<32x128xf32>
    %108 = vector.extract_strided_slice %107 {offsets = [0, 0], sizes = [16, 128], strides = [1, 1]} : vector<32x128xf32> to vector<16x128xf32>
    %c8_125 = arith.constant 8 : index
    %c0_126 = arith.constant 0 : index
    %109 = vector.load %arg17[%c8_125, %c0_126] : memref<64x128xf32, #tpu.memory_space<vmem>>, vector<16x128xf32>
    tpu.vector_store %arg17[%c8_125, %c0_126], %108 {strides = array<i32>} : memref<64x128xf32, #tpu.memory_space<vmem>>, vector<16x128xf32>,
    %110 = vector.extract_strided_slice %107 {offsets = [16, 0], sizes = [16, 128], strides = [1, 1]} : vector<32x128xf32> to vector<16x128xf32>
    %c40_127 = arith.constant 40 : index
    %c0_128 = arith.constant 0 : index
    %111 = vector.load %arg17[%c40_127, %c0_128] : memref<64x128xf32, #tpu.memory_space<vmem>>, vector<16x128xf32>
    tpu.vector_store %arg17[%c40_127, %c0_128], %110 {strides = array<i32>} : memref<64x128xf32, #tpu.memory_space<vmem>>, vector<16x128xf32>,
    %c6_129 = arith.constant 6 : index
    %c0_130 = arith.constant 0 : index
    %112 = vector.load %arg17[%c6_129, %c0_130] : memref<64x128xf32, #tpu.memory_space<vmem>>, vector<16x128xf32>
    %c0_131 = arith.constant 0 : index
    %c0_132 = arith.constant 0 : index
    %113 = vector.load %arg18[%c0_131, %c0_132] : memref<32x640xf32, #tpu.memory_space<vmem>>, vector<16x128xf32>
    tpu.vector_store %arg18[%c0_131, %c0_132], %112 {strides = array<i32>} : memref<32x640xf32, #tpu.memory_space<vmem>>, vector<16x128xf32>,
    %c8_133 = arith.constant 8 : index
    %c0_134 = arith.constant 0 : index
    %114 = vector.load %arg17[%c8_133, %c0_134] : memref<64x128xf32, #tpu.memory_space<vmem>>, vector<16x128xf32>
    %c0_135 = arith.constant 0 : index
    %c128_136 = arith.constant 128 : index
    %115 = vector.load %arg18[%c0_135, %c128_136] : memref<32x640xf32, #tpu.memory_space<vmem>>, vector<16x128xf32>
    tpu.vector_store %arg18[%c0_135, %c128_136], %114 {strides = array<i32>} : memref<32x640xf32, #tpu.memory_space<vmem>>, vector<16x128xf32>,
    %c10_137 = arith.constant 10 : index
    %c0_138 = arith.constant 0 : index
    %116 = vector.load %arg17[%c10_137, %c0_138] : memref<64x128xf32, #tpu.memory_space<vmem>>, vector<16x128xf32>
    %c0_139 = arith.constant 0 : index
    %c256_140 = arith.constant 256 : index
    %117 = vector.load %arg18[%c0_139, %c256_140] : memref<32x640xf32, #tpu.memory_space<vmem>>, vector<16x128xf32>
    tpu.vector_store %arg18[%c0_139, %c256_140], %116 {strides = array<i32>} : memref<32x640xf32, #tpu.memory_space<vmem>>, vector<16x128xf32>,
    %c38_141 = arith.constant 38 : index
    %c0_142 = arith.constant 0 : index
    %118 = vector.load %arg17[%c38_141, %c0_142] : memref<64x128xf32, #tpu.memory_space<vmem>>, vector<16x128xf32>
    %c16_143 = arith.constant 16 : index
    %c0_144 = arith.constant 0 : index
    %119 = vector.load %arg18[%c16_143, %c0_144] : memref<32x640xf32, #tpu.memory_space<vmem>>, vector<16x128xf32>
    tpu.vector_store %arg18[%c16_143, %c0_144], %118 {strides = array<i32>} : memref<32x640xf32, #tpu.memory_space<vmem>>, vector<16x128xf32>,
    %c40_145 = arith.constant 40 : index
    %c0_146 = arith.constant 0 : index
    %120 = vector.load %arg17[%c40_145, %c0_146] : memref<64x128xf32, #tpu.memory_space<vmem>>, vector<16x128xf32>
    %c16_147 = arith.constant 16 : index
    %c128_148 = arith.constant 128 : index
    %121 = vector.load %arg18[%c16_147, %c128_148] : memref<32x640xf32, #tpu.memory_space<vmem>>, vector<16x128xf32>
    tpu.vector_store %arg18[%c16_147, %c128_148], %120 {strides = array<i32>} : memref<32x640xf32, #tpu.memory_space<vmem>>, vector<16x128xf32>,
    %c42_149 = arith.constant 42 : index
    %c0_150 = arith.constant 0 : index
    %122 = vector.load %arg17[%c42_149, %c0_150] : memref<64x128xf32, #tpu.memory_space<vmem>>, vector<16x128xf32>
    %c16_151 = arith.constant 16 : index
    %c256_152 = arith.constant 256 : index
    %123 = vector.load %arg18[%c16_151, %c256_152] : memref<32x640xf32, #tpu.memory_space<vmem>>, vector<16x128xf32>
    tpu.vector_store %arg18[%c16_151, %c256_152], %122 {strides = array<i32>} : memref<32x640xf32, #tpu.memory_space<vmem>>, vector<16x128xf32>,
    %c0_153 = arith.constant 0 : index
    %c0_154 = arith.constant 0 : index
    %124 = vector.load %arg18[%c0_153, %c0_154] : memref<32x640xf32, #tpu.memory_space<vmem>>, vector<32x384xf32>
    %c0_155 = arith.constant 0 : index
    %c0_156 = arith.constant 0 : index
    %125 = vector.load %arg6[%c0_155, %c0_156] : memref<384x128xf32, #tpu.memory_space<vmem>>, vector<384x128xf32>
    %cst_157 = arith.constant dense<0.000000e+00> : vector<32x128xf32>
    %126 = tpu.matmul %124, %125, %cst_157 {dimension_numbers = #tpu.dot_dimension_numbers<[1], [0], [0], [1], [0, 0, 1, 1], [], []>} : vector<32x384xf32>, vector<384x128xf32>, vector<32x128xf32> -> vector<32x128xf32>
    %c0_158 = arith.constant 0 : index
    %c0_159 = arith.constant 0 : index
    %127 = vector.load %arg7[%c0_158, %c0_159] : memref<1x128xf32, #tpu.memory_space<vmem>>, vector<1x128xf32>
    %128 = vector.broadcast %127 : vector<1x128xf32> to vector<32x128xf32>
    %129 = arith.addf %126, %128 : vector<32x128xf32>
    %cst_160 = arith.constant 0.000000e+00 : f32
    %130 = vector.broadcast %cst_160 : f32 to vector<32x128xf32>
    %131 = arith.cmpf oge, %129, %130 : vector<32x128xf32>
    %cst_161 = arith.constant 0.00999999977 : f32
    %132 = vector.broadcast %cst_161 : f32 to vector<32x128xf32>
    %133 = arith.mulf %132, %129 : vector<32x128xf32>
    %134 = arith.select %131, %129, %133 : vector<32x128xi1>, vector<32x128xf32>
    %c0_162 = arith.constant 0 : index
    %c128_163 = arith.constant 128 : index
    %135 = vector.load %arg18[%c0_162, %c128_163] : memref<32x640xf32, #tpu.memory_space<vmem>>, vector<32x128xf32>
    %136 = arith.addf %134, %135 : vector<32x128xf32>
    %137 = vector.extract_strided_slice %136 {offsets = [0, 0], sizes = [16, 128], strides = [1, 1]} : vector<32x128xf32> to vector<16x128xf32>
    %c8_164 = arith.constant 8 : index
    %c0_165 = arith.constant 0 : index
    %138 = vector.load %arg17[%c8_164, %c0_165] : memref<64x128xf32, #tpu.memory_space<vmem>>, vector<16x128xf32>
    tpu.vector_store %arg17[%c8_164, %c0_165], %137 {strides = array<i32>} : memref<64x128xf32, #tpu.memory_space<vmem>>, vector<16x128xf32>,
    %139 = vector.extract_strided_slice %136 {offsets = [16, 0], sizes = [16, 128], strides = [1, 1]} : vector<32x128xf32> to vector<16x128xf32>
    %c40_166 = arith.constant 40 : index
    %c0_167 = arith.constant 0 : index
    %140 = vector.load %arg17[%c40_166, %c0_167] : memref<64x128xf32, #tpu.memory_space<vmem>>, vector<16x128xf32>
    tpu.vector_store %arg17[%c40_166, %c0_167], %139 {strides = array<i32>} : memref<64x128xf32, #tpu.memory_space<vmem>>, vector<16x128xf32>,
    %c6_168 = arith.constant 6 : index
    %c0_169 = arith.constant 0 : index
    %141 = vector.load %arg17[%c6_168, %c0_169] : memref<64x128xf32, #tpu.memory_space<vmem>>, vector<16x128xf32>
    %c0_170 = arith.constant 0 : index
    %c0_171 = arith.constant 0 : index
    %142 = vector.load %arg18[%c0_170, %c0_171] : memref<32x640xf32, #tpu.memory_space<vmem>>, vector<16x128xf32>
    tpu.vector_store %arg18[%c0_170, %c0_171], %141 {strides = array<i32>} : memref<32x640xf32, #tpu.memory_space<vmem>>, vector<16x128xf32>,
    %c8_172 = arith.constant 8 : index
    %c0_173 = arith.constant 0 : index
    %143 = vector.load %arg17[%c8_172, %c0_173] : memref<64x128xf32, #tpu.memory_space<vmem>>, vector<16x128xf32>
    %c0_174 = arith.constant 0 : index
    %c128_175 = arith.constant 128 : index
    %144 = vector.load %arg18[%c0_174, %c128_175] : memref<32x640xf32, #tpu.memory_space<vmem>>, vector<16x128xf32>
    tpu.vector_store %arg18[%c0_174, %c128_175], %143 {strides = array<i32>} : memref<32x640xf32, #tpu.memory_space<vmem>>, vector<16x128xf32>,
    %c10_176 = arith.constant 10 : index
    %c0_177 = arith.constant 0 : index
    %145 = vector.load %arg17[%c10_176, %c0_177] : memref<64x128xf32, #tpu.memory_space<vmem>>, vector<16x128xf32>
    %c0_178 = arith.constant 0 : index
    %c256_179 = arith.constant 256 : index
    %146 = vector.load %arg18[%c0_178, %c256_179] : memref<32x640xf32, #tpu.memory_space<vmem>>, vector<16x128xf32>
    tpu.vector_store %arg18[%c0_178, %c256_179], %145 {strides = array<i32>} : memref<32x640xf32, #tpu.memory_space<vmem>>, vector<16x128xf32>,
    %c38_180 = arith.constant 38 : index
    %c0_181 = arith.constant 0 : index
    %147 = vector.load %arg17[%c38_180, %c0_181] : memref<64x128xf32, #tpu.memory_space<vmem>>, vector<16x128xf32>
    %c16_182 = arith.constant 16 : index
    %c0_183 = arith.constant 0 : index
    %148 = vector.load %arg18[%c16_182, %c0_183] : memref<32x640xf32, #tpu.memory_space<vmem>>, vector<16x128xf32>
    tpu.vector_store %arg18[%c16_182, %c0_183], %147 {strides = array<i32>} : memref<32x640xf32, #tpu.memory_space<vmem>>, vector<16x128xf32>,
    %c40_184 = arith.constant 40 : index
    %c0_185 = arith.constant 0 : index
    %149 = vector.load %arg17[%c40_184, %c0_185] : memref<64x128xf32, #tpu.memory_space<vmem>>, vector<16x128xf32>
    %c16_186 = arith.constant 16 : index
    %c128_187 = arith.constant 128 : index
    %150 = vector.load %arg18[%c16_186, %c128_187] : memref<32x640xf32, #tpu.memory_space<vmem>>, vector<16x128xf32>
    tpu.vector_store %arg18[%c16_186, %c128_187], %149 {strides = array<i32>} : memref<32x640xf32, #tpu.memory_space<vmem>>, vector<16x128xf32>,
    %c42_188 = arith.constant 42 : index
    %c0_189 = arith.constant 0 : index
    %151 = vector.load %arg17[%c42_188, %c0_189] : memref<64x128xf32, #tpu.memory_space<vmem>>, vector<16x128xf32>
    %c16_190 = arith.constant 16 : index
    %c256_191 = arith.constant 256 : index
    %152 = vector.load %arg18[%c16_190, %c256_191] : memref<32x640xf32, #tpu.memory_space<vmem>>, vector<16x128xf32>
    tpu.vector_store %arg18[%c16_190, %c256_191], %151 {strides = array<i32>} : memref<32x640xf32, #tpu.memory_space<vmem>>, vector<16x128xf32>,
    %c0_192 = arith.constant 0 : index
    %c0_193 = arith.constant 0 : index
    %153 = vector.load %arg18[%c0_192, %c0_193] : memref<32x640xf32, #tpu.memory_space<vmem>>, vector<32x384xf32>
    %c0_194 = arith.constant 0 : index
    %c0_195 = arith.constant 0 : index
    %154 = vector.load %arg8[%c0_194, %c0_195] : memref<384x128xf32, #tpu.memory_space<vmem>>, vector<384x128xf32>
    %cst_196 = arith.constant dense<0.000000e+00> : vector<32x128xf32>
    %155 = tpu.matmul %153, %154, %cst_196 {dimension_numbers = #tpu.dot_dimension_numbers<[1], [0], [0], [1], [0, 0, 1, 1], [], []>} : vector<32x384xf32>, vector<384x128xf32>, vector<32x128xf32> -> vector<32x128xf32>
    %c0_197 = arith.constant 0 : index
    %c0_198 = arith.constant 0 : index
    %156 = vector.load %arg9[%c0_197, %c0_198] : memref<1x128xf32, #tpu.memory_space<vmem>>, vector<1x128xf32>
    %157 = vector.broadcast %156 : vector<1x128xf32> to vector<32x128xf32>
    %158 = arith.addf %155, %157 : vector<32x128xf32>
    %cst_199 = arith.constant 0.000000e+00 : f32
    %159 = vector.broadcast %cst_199 : f32 to vector<32x128xf32>
    %160 = arith.cmpf oge, %158, %159 : vector<32x128xf32>
    %cst_200 = arith.constant 0.00999999977 : f32
    %161 = vector.broadcast %cst_200 : f32 to vector<32x128xf32>
    %162 = arith.mulf %161, %158 : vector<32x128xf32>
    %163 = arith.select %160, %158, %162 : vector<32x128xi1>, vector<32x128xf32>
    %c0_201 = arith.constant 0 : index
    %c0_202 = arith.constant 0 : index
    %164 = vector.load %arg19[%c0_201, %c0_202] : memref<32x128xf32, #tpu.memory_space<vmem>>, vector<32x128xf32>
    tpu.vector_store %arg19[%c0_201, %c0_202], %163 {strides = array<i32>} : memref<32x128xf32, #tpu.memory_space<vmem>>, vector<32x128xf32>,
    %c0_203 = arith.constant 0 : index
    %c0_204 = arith.constant 0 : index
    %165 = vector.load %arg19[%c0_203, %c0_204] : memref<32x128xf32, #tpu.memory_space<vmem>>, vector<1x128xf32>
    %c0_205 = arith.constant 0 : index
    %c0_206 = arith.constant 0 : index
    %166 = vector.load %arg20[%c0_205, %c0_206] : memref<2x2048xf32, #tpu.memory_space<vmem>>, vector<1x128xf32>
    tpu.vector_store %arg20[%c0_205, %c0_206], %165 {strides = array<i32>} : memref<2x2048xf32, #tpu.memory_space<vmem>>, vector<1x128xf32>,
    %c1 = arith.constant 1 : index
    %c0_207 = arith.constant 0 : index
    %167 = vector.load %arg19[%c1, %c0_207] : memref<32x128xf32, #tpu.memory_space<vmem>>, vector<1x128xf32>
    %c0_208 = arith.constant 0 : index
    %c128_209 = arith.constant 128 : index
    %168 = vector.load %arg20[%c0_208, %c128_209] : memref<2x2048xf32, #tpu.memory_space<vmem>>, vector<1x128xf32>
    tpu.vector_store %arg20[%c0_208, %c128_209], %167 {strides = array<i32>} : memref<2x2048xf32, #tpu.memory_space<vmem>>, vector<1x128xf32>,
    %c2 = arith.constant 2 : index
    %c0_210 = arith.constant 0 : index
    %169 = vector.load %arg19[%c2, %c0_210] : memref<32x128xf32, #tpu.memory_space<vmem>>, vector<1x128xf32>
    %c0_211 = arith.constant 0 : index
    %c256_212 = arith.constant 256 : index
    %170 = vector.load %arg20[%c0_211, %c256_212] : memref<2x2048xf32, #tpu.memory_space<vmem>>, vector<1x128xf32>
    tpu.vector_store %arg20[%c0_211, %c256_212], %169 {strides = array<i32>} : memref<2x2048xf32, #tpu.memory_space<vmem>>, vector<1x128xf32>,
    %c3 = arith.constant 3 : index
    %c0_213 = arith.constant 0 : index
    %171 = vector.load %arg19[%c3, %c0_213] : memref<32x128xf32, #tpu.memory_space<vmem>>, vector<1x128xf32>
    %c0_214 = arith.constant 0 : index
    %c384_215 = arith.constant 384 : index
    %172 = vector.load %arg20[%c0_214, %c384_215] : memref<2x2048xf32, #tpu.memory_space<vmem>>, vector<1x128xf32>
    tpu.vector_store %arg20[%c0_214, %c384_215], %171 {strides = array<i32>} : memref<2x2048xf32, #tpu.memory_space<vmem>>, vector<1x128xf32>,
    %c4_216 = arith.constant 4 : index
    %c0_217 = arith.constant 0 : index
    %173 = vector.load %arg19[%c4_216, %c0_217] : memref<32x128xf32, #tpu.memory_space<vmem>>, vector<1x128xf32>
    %c0_218 = arith.constant 0 : index
    %c512_219 = arith.constant 512 : index
    %174 = vector.load %arg20[%c0_218, %c512_219] : memref<2x2048xf32, #tpu.memory_space<vmem>>, vector<1x128xf32>
    tpu.vector_store %arg20[%c0_218, %c512_219], %173 {strides = array<i32>} : memref<2x2048xf32, #tpu.memory_space<vmem>>, vector<1x128xf32>,
    %c5 = arith.constant 5 : index
    %c0_220 = arith.constant 0 : index
    %175 = vector.load %arg19[%c5, %c0_220] : memref<32x128xf32, #tpu.memory_space<vmem>>, vector<1x128xf32>
    %c0_221 = arith.constant 0 : index
    %c640 = arith.constant 640 : index
    %176 = vector.load %arg20[%c0_221, %c640] : memref<2x2048xf32, #tpu.memory_space<vmem>>, vector<1x128xf32>
    tpu.vector_store %arg20[%c0_221, %c640], %175 {strides = array<i32>} : memref<2x2048xf32, #tpu.memory_space<vmem>>, vector<1x128xf32>,
    %c6_222 = arith.constant 6 : index
    %c0_223 = arith.constant 0 : index
    %177 = vector.load %arg19[%c6_222, %c0_223] : memref<32x128xf32, #tpu.memory_space<vmem>>, vector<1x128xf32>
    %c0_224 = arith.constant 0 : index
    %c768 = arith.constant 768 : index
    %178 = vector.load %arg20[%c0_224, %c768] : memref<2x2048xf32, #tpu.memory_space<vmem>>, vector<1x128xf32>
    tpu.vector_store %arg20[%c0_224, %c768], %177 {strides = array<i32>} : memref<2x2048xf32, #tpu.memory_space<vmem>>, vector<1x128xf32>,
    %c7 = arith.constant 7 : index
    %c0_225 = arith.constant 0 : index
    %179 = vector.load %arg19[%c7, %c0_225] : memref<32x128xf32, #tpu.memory_space<vmem>>, vector<1x128xf32>
    %c0_226 = arith.constant 0 : index
    %c896 = arith.constant 896 : index
    %180 = vector.load %arg20[%c0_226, %c896] : memref<2x2048xf32, #tpu.memory_space<vmem>>, vector<1x128xf32>
    tpu.vector_store %arg20[%c0_226, %c896], %179 {strides = array<i32>} : memref<2x2048xf32, #tpu.memory_space<vmem>>, vector<1x128xf32>,
    %c8_227 = arith.constant 8 : index
    %c0_228 = arith.constant 0 : index
    %181 = vector.load %arg19[%c8_227, %c0_228] : memref<32x128xf32, #tpu.memory_space<vmem>>, vector<1x128xf32>
    %c0_229 = arith.constant 0 : index
    %c1024 = arith.constant 1024 : index
    %182 = vector.load %arg20[%c0_229, %c1024] : memref<2x2048xf32, #tpu.memory_space<vmem>>, vector<1x128xf32>
    tpu.vector_store %arg20[%c0_229, %c1024], %181 {strides = array<i32>} : memref<2x2048xf32, #tpu.memory_space<vmem>>, vector<1x128xf32>,
    %c9 = arith.constant 9 : index
    %c0_230 = arith.constant 0 : index
    %183 = vector.load %arg19[%c9, %c0_230] : memref<32x128xf32, #tpu.memory_space<vmem>>, vector<1x128xf32>
    %c0_231 = arith.constant 0 : index
    %c1152 = arith.constant 1152 : index
    %184 = vector.load %arg20[%c0_231, %c1152] : memref<2x2048xf32, #tpu.memory_space<vmem>>, vector<1x128xf32>
    tpu.vector_store %arg20[%c0_231, %c1152], %183 {strides = array<i32>} : memref<2x2048xf32, #tpu.memory_space<vmem>>, vector<1x128xf32>,
    %c10_232 = arith.constant 10 : index
    %c0_233 = arith.constant 0 : index
    %185 = vector.load %arg19[%c10_232, %c0_233] : memref<32x128xf32, #tpu.memory_space<vmem>>, vector<1x128xf32>
    %c0_234 = arith.constant 0 : index
    %c1280 = arith.constant 1280 : index
    %186 = vector.load %arg20[%c0_234, %c1280] : memref<2x2048xf32, #tpu.memory_space<vmem>>, vector<1x128xf32>
    tpu.vector_store %arg20[%c0_234, %c1280], %185 {strides = array<i32>} : memref<2x2048xf32, #tpu.memory_space<vmem>>, vector<1x128xf32>,
    %c11 = arith.constant 11 : index
    %c0_235 = arith.constant 0 : index
    %187 = vector.load %arg19[%c11, %c0_235] : memref<32x128xf32, #tpu.memory_space<vmem>>, vector<1x128xf32>
    %c0_236 = arith.constant 0 : index
    %c1408 = arith.constant 1408 : index
    %188 = vector.load %arg20[%c0_236, %c1408] : memref<2x2048xf32, #tpu.memory_space<vmem>>, vector<1x128xf32>
    tpu.vector_store %arg20[%c0_236, %c1408], %187 {strides = array<i32>} : memref<2x2048xf32, #tpu.memory_space<vmem>>, vector<1x128xf32>,
    %c12_237 = arith.constant 12 : index
    %c0_238 = arith.constant 0 : index
    %189 = vector.load %arg19[%c12_237, %c0_238] : memref<32x128xf32, #tpu.memory_space<vmem>>, vector<1x128xf32>
    %c0_239 = arith.constant 0 : index
    %c1536 = arith.constant 1536 : index
    %190 = vector.load %arg20[%c0_239, %c1536] : memref<2x2048xf32, #tpu.memory_space<vmem>>, vector<1x128xf32>
    tpu.vector_store %arg20[%c0_239, %c1536], %189 {strides = array<i32>} : memref<2x2048xf32, #tpu.memory_space<vmem>>, vector<1x128xf32>,
    %c13 = arith.constant 13 : index
    %c0_240 = arith.constant 0 : index
    %191 = vector.load %arg19[%c13, %c0_240] : memref<32x128xf32, #tpu.memory_space<vmem>>, vector<1x128xf32>
    %c0_241 = arith.constant 0 : index
    %c1664 = arith.constant 1664 : index
    %192 = vector.load %arg20[%c0_241, %c1664] : memref<2x2048xf32, #tpu.memory_space<vmem>>, vector<1x128xf32>
    tpu.vector_store %arg20[%c0_241, %c1664], %191 {strides = array<i32>} : memref<2x2048xf32, #tpu.memory_space<vmem>>, vector<1x128xf32>,
    %c14 = arith.constant 14 : index
    %c0_242 = arith.constant 0 : index
    %193 = vector.load %arg19[%c14, %c0_242] : memref<32x128xf32, #tpu.memory_space<vmem>>, vector<1x128xf32>
    %c0_243 = arith.constant 0 : index
    %c1792 = arith.constant 1792 : index
    %194 = vector.load %arg20[%c0_243, %c1792] : memref<2x2048xf32, #tpu.memory_space<vmem>>, vector<1x128xf32>
    tpu.vector_store %arg20[%c0_243, %c1792], %193 {strides = array<i32>} : memref<2x2048xf32, #tpu.memory_space<vmem>>, vector<1x128xf32>,
    %c15 = arith.constant 15 : index
    %c0_244 = arith.constant 0 : index
    %195 = vector.load %arg19[%c15, %c0_244] : memref<32x128xf32, #tpu.memory_space<vmem>>, vector<1x128xf32>
    %c0_245 = arith.constant 0 : index
    %c1920 = arith.constant 1920 : index
    %196 = vector.load %arg20[%c0_245, %c1920] : memref<2x2048xf32, #tpu.memory_space<vmem>>, vector<1x128xf32>
    tpu.vector_store %arg20[%c0_245, %c1920], %195 {strides = array<i32>} : memref<2x2048xf32, #tpu.memory_space<vmem>>, vector<1x128xf32>,
    %c16_246 = arith.constant 16 : index
    %c0_247 = arith.constant 0 : index
    %197 = vector.load %arg19[%c16_246, %c0_247] : memref<32x128xf32, #tpu.memory_space<vmem>>, vector<1x128xf32>
    %c1_248 = arith.constant 1 : index
    %c0_249 = arith.constant 0 : index
    %198 = vector.load %arg20[%c1_248, %c0_249] : memref<2x2048xf32, #tpu.memory_space<vmem>>, vector<1x128xf32>
    tpu.vector_store %arg20[%c1_248, %c0_249], %197 {strides = array<i32>} : memref<2x2048xf32, #tpu.memory_space<vmem>>, vector<1x128xf32>,
    %c17 = arith.constant 17 : index
    %c0_250 = arith.constant 0 : index
    %199 = vector.load %arg19[%c17, %c0_250] : memref<32x128xf32, #tpu.memory_space<vmem>>, vector<1x128xf32>
    %c1_251 = arith.constant 1 : index
    %c128_252 = arith.constant 128 : index
    %200 = vector.load %arg20[%c1_251, %c128_252] : memref<2x2048xf32, #tpu.memory_space<vmem>>, vector<1x128xf32>
    tpu.vector_store %arg20[%c1_251, %c128_252], %199 {strides = array<i32>} : memref<2x2048xf32, #tpu.memory_space<vmem>>, vector<1x128xf32>,
    %c18 = arith.constant 18 : index
    %c0_253 = arith.constant 0 : index
    %201 = vector.load %arg19[%c18, %c0_253] : memref<32x128xf32, #tpu.memory_space<vmem>>, vector<1x128xf32>
    %c1_254 = arith.constant 1 : index
    %c256_255 = arith.constant 256 : index
    %202 = vector.load %arg20[%c1_254, %c256_255] : memref<2x2048xf32, #tpu.memory_space<vmem>>, vector<1x128xf32>
    tpu.vector_store %arg20[%c1_254, %c256_255], %201 {strides = array<i32>} : memref<2x2048xf32, #tpu.memory_space<vmem>>, vector<1x128xf32>,
    %c19 = arith.constant 19 : index
    %c0_256 = arith.constant 0 : index
    %203 = vector.load %arg19[%c19, %c0_256] : memref<32x128xf32, #tpu.memory_space<vmem>>, vector<1x128xf32>
    %c1_257 = arith.constant 1 : index
    %c384_258 = arith.constant 384 : index
    %204 = vector.load %arg20[%c1_257, %c384_258] : memref<2x2048xf32, #tpu.memory_space<vmem>>, vector<1x128xf32>
    tpu.vector_store %arg20[%c1_257, %c384_258], %203 {strides = array<i32>} : memref<2x2048xf32, #tpu.memory_space<vmem>>, vector<1x128xf32>,
    %c20 = arith.constant 20 : index
    %c0_259 = arith.constant 0 : index
    %205 = vector.load %arg19[%c20, %c0_259] : memref<32x128xf32, #tpu.memory_space<vmem>>, vector<1x128xf32>
    %c1_260 = arith.constant 1 : index
    %c512_261 = arith.constant 512 : index
    %206 = vector.load %arg20[%c1_260, %c512_261] : memref<2x2048xf32, #tpu.memory_space<vmem>>, vector<1x128xf32>
    tpu.vector_store %arg20[%c1_260, %c512_261], %205 {strides = array<i32>} : memref<2x2048xf32, #tpu.memory_space<vmem>>, vector<1x128xf32>,
    %c21 = arith.constant 21 : index
    %c0_262 = arith.constant 0 : index
    %207 = vector.load %arg19[%c21, %c0_262] : memref<32x128xf32, #tpu.memory_space<vmem>>, vector<1x128xf32>
    %c1_263 = arith.constant 1 : index
    %c640_264 = arith.constant 640 : index
    %208 = vector.load %arg20[%c1_263, %c640_264] : memref<2x2048xf32, #tpu.memory_space<vmem>>, vector<1x128xf32>
    tpu.vector_store %arg20[%c1_263, %c640_264], %207 {strides = array<i32>} : memref<2x2048xf32, #tpu.memory_space<vmem>>, vector<1x128xf32>,
    %c22 = arith.constant 22 : index
    %c0_265 = arith.constant 0 : index
    %209 = vector.load %arg19[%c22, %c0_265] : memref<32x128xf32, #tpu.memory_space<vmem>>, vector<1x128xf32>
    %c1_266 = arith.constant 1 : index
    %c768_267 = arith.constant 768 : index
    %210 = vector.load %arg20[%c1_266, %c768_267] : memref<2x2048xf32, #tpu.memory_space<vmem>>, vector<1x128xf32>
    tpu.vector_store %arg20[%c1_266, %c768_267], %209 {strides = array<i32>} : memref<2x2048xf32, #tpu.memory_space<vmem>>, vector<1x128xf32>,
    %c23 = arith.constant 23 : index
    %c0_268 = arith.constant 0 : index
    %211 = vector.load %arg19[%c23, %c0_268] : memref<32x128xf32, #tpu.memory_space<vmem>>, vector<1x128xf32>
    %c1_269 = arith.constant 1 : index
    %c896_270 = arith.constant 896 : index
    %212 = vector.load %arg20[%c1_269, %c896_270] : memref<2x2048xf32, #tpu.memory_space<vmem>>, vector<1x128xf32>
    tpu.vector_store %arg20[%c1_269, %c896_270], %211 {strides = array<i32>} : memref<2x2048xf32, #tpu.memory_space<vmem>>, vector<1x128xf32>,
    %c24 = arith.constant 24 : index
    %c0_271 = arith.constant 0 : index
    %213 = vector.load %arg19[%c24, %c0_271] : memref<32x128xf32, #tpu.memory_space<vmem>>, vector<1x128xf32>
    %c1_272 = arith.constant 1 : index
    %c1024_273 = arith.constant 1024 : index
    %214 = vector.load %arg20[%c1_272, %c1024_273] : memref<2x2048xf32, #tpu.memory_space<vmem>>, vector<1x128xf32>
    tpu.vector_store %arg20[%c1_272, %c1024_273], %213 {strides = array<i32>} : memref<2x2048xf32, #tpu.memory_space<vmem>>, vector<1x128xf32>,
    %c25 = arith.constant 25 : index
    %c0_274 = arith.constant 0 : index
    %215 = vector.load %arg19[%c25, %c0_274] : memref<32x128xf32, #tpu.memory_space<vmem>>, vector<1x128xf32>
    %c1_275 = arith.constant 1 : index
    %c1152_276 = arith.constant 1152 : index
    %216 = vector.load %arg20[%c1_275, %c1152_276] : memref<2x2048xf32, #tpu.memory_space<vmem>>, vector<1x128xf32>
    tpu.vector_store %arg20[%c1_275, %c1152_276], %215 {strides = array<i32>} : memref<2x2048xf32, #tpu.memory_space<vmem>>, vector<1x128xf32>,
    %c26 = arith.constant 26 : index
    %c0_277 = arith.constant 0 : index
    %217 = vector.load %arg19[%c26, %c0_277] : memref<32x128xf32, #tpu.memory_space<vmem>>, vector<1x128xf32>
    %c1_278 = arith.constant 1 : index
    %c1280_279 = arith.constant 1280 : index
    %218 = vector.load %arg20[%c1_278, %c1280_279] : memref<2x2048xf32, #tpu.memory_space<vmem>>, vector<1x128xf32>
    tpu.vector_store %arg20[%c1_278, %c1280_279], %217 {strides = array<i32>} : memref<2x2048xf32, #tpu.memory_space<vmem>>, vector<1x128xf32>,
    %c27 = arith.constant 27 : index
    %c0_280 = arith.constant 0 : index
    %219 = vector.load %arg19[%c27, %c0_280] : memref<32x128xf32, #tpu.memory_space<vmem>>, vector<1x128xf32>
    %c1_281 = arith.constant 1 : index
    %c1408_282 = arith.constant 1408 : index
    %220 = vector.load %arg20[%c1_281, %c1408_282] : memref<2x2048xf32, #tpu.memory_space<vmem>>, vector<1x128xf32>
    tpu.vector_store %arg20[%c1_281, %c1408_282], %219 {strides = array<i32>} : memref<2x2048xf32, #tpu.memory_space<vmem>>, vector<1x128xf32>,
    %c28 = arith.constant 28 : index
    %c0_283 = arith.constant 0 : index
    %221 = vector.load %arg19[%c28, %c0_283] : memref<32x128xf32, #tpu.memory_space<vmem>>, vector<1x128xf32>
    %c1_284 = arith.constant 1 : index
    %c1536_285 = arith.constant 1536 : index
    %222 = vector.load %arg20[%c1_284, %c1536_285] : memref<2x2048xf32, #tpu.memory_space<vmem>>, vector<1x128xf32>
    tpu.vector_store %arg20[%c1_284, %c1536_285], %221 {strides = array<i32>} : memref<2x2048xf32, #tpu.memory_space<vmem>>, vector<1x128xf32>,
    %c29 = arith.constant 29 : index
    %c0_286 = arith.constant 0 : index
    %223 = vector.load %arg19[%c29, %c0_286] : memref<32x128xf32, #tpu.memory_space<vmem>>, vector<1x128xf32>
    %c1_287 = arith.constant 1 : index
    %c1664_288 = arith.constant 1664 : index
    %224 = vector.load %arg20[%c1_287, %c1664_288] : memref<2x2048xf32, #tpu.memory_space<vmem>>, vector<1x128xf32>
    tpu.vector_store %arg20[%c1_287, %c1664_288], %223 {strides = array<i32>} : memref<2x2048xf32, #tpu.memory_space<vmem>>, vector<1x128xf32>,
    %c30 = arith.constant 30 : index
    %c0_289 = arith.constant 0 : index
    %225 = vector.load %arg19[%c30, %c0_289] : memref<32x128xf32, #tpu.memory_space<vmem>>, vector<1x128xf32>
    %c1_290 = arith.constant 1 : index
    %c1792_291 = arith.constant 1792 : index
    %226 = vector.load %arg20[%c1_290, %c1792_291] : memref<2x2048xf32, #tpu.memory_space<vmem>>, vector<1x128xf32>
    tpu.vector_store %arg20[%c1_290, %c1792_291], %225 {strides = array<i32>} : memref<2x2048xf32, #tpu.memory_space<vmem>>, vector<1x128xf32>,
    %c31 = arith.constant 31 : index
    %c0_292 = arith.constant 0 : index
    %227 = vector.load %arg19[%c31, %c0_292] : memref<32x128xf32, #tpu.memory_space<vmem>>, vector<1x128xf32>
    %c1_293 = arith.constant 1 : index
    %c1920_294 = arith.constant 1920 : index
    %228 = vector.load %arg20[%c1_293, %c1920_294] : memref<2x2048xf32, #tpu.memory_space<vmem>>, vector<1x128xf32>
    tpu.vector_store %arg20[%c1_293, %c1920_294], %227 {strides = array<i32>} : memref<2x2048xf32, #tpu.memory_space<vmem>>, vector<1x128xf32>,
    %c0_295 = arith.constant 0 : index
    %c0_296 = arith.constant 0 : index
    %229 = vector.load %arg20[%c0_295, %c0_296] : memref<2x2048xf32, #tpu.memory_space<vmem>>, vector<2x2048xf32>
    %c0_297 = arith.constant 0 : index
    %c0_298 = arith.constant 0 : index
    %230 = vector.load %arg10[%c0_297, %c0_298] : memref<2048x256xf32, #tpu.memory_space<vmem>>, vector<2048x256xf32>
    %cst_299 = arith.constant dense<0.000000e+00> : vector<2x256xf32>
    %231 = tpu.matmul %229, %230, %cst_299 {dimension_numbers = #tpu.dot_dimension_numbers<[1], [0], [0], [1], [0, 0, 1, 1], [], []>} : vector<2x2048xf32>, vector<2048x256xf32>, vector<2x256xf32> -> vector<2x256xf32>
    %c0_300 = arith.constant 0 : index
    %c0_301 = arith.constant 0 : index
    %232 = vector.load %arg11[%c0_300, %c0_301] : memref<1x256xf32, #tpu.memory_space<vmem>>, vector<1x256xf32>
    %233 = vector.broadcast %232 : vector<1x256xf32> to vector<2x256xf32>
    %234 = arith.addf %231, %233 : vector<2x256xf32>
    %cst_302 = arith.constant 0.000000e+00 : f32
    %235 = vector.broadcast %cst_302 : f32 to vector<2x256xf32>
    %236 = arith.cmpf oge, %234, %235 : vector<2x256xf32>
    %cst_303 = arith.constant 0.00999999977 : f32
    %237 = vector.broadcast %cst_303 : f32 to vector<2x256xf32>
    %238 = arith.mulf %237, %234 : vector<2x256xf32>
    %239 = arith.select %236, %234, %238 : vector<2x256xi1>, vector<2x256xf32>
    %c0_304 = arith.constant 0 : index
    %c0_305 = arith.constant 0 : index
    %240 = vector.load %arg12[%c0_304, %c0_305] : memref<256x256xf32, #tpu.memory_space<vmem>>, vector<256x256xf32>
    %c0_306 = arith.constant 0 : index
    %c0_307 = arith.constant 0 : index
    %241 = vector.load %arg13[%c0_306, %c0_307] : memref<1x256xf32, #tpu.memory_space<vmem>>, vector<1x256xf32>
    %cst_308 = arith.constant dense<0.000000e+00> : vector<2x256xf32>
    %242 = tpu.matmul %239, %240, %cst_308 {dimension_numbers = #tpu.dot_dimension_numbers<[1], [0], [0], [1], [0, 0, 1, 1], [], []>} : vector<2x256xf32>, vector<256x256xf32>, vector<2x256xf32> -> vector<2x256xf32>
    %243 = vector.broadcast %241 : vector<1x256xf32> to vector<2x256xf32>
    %244 = arith.addf %242, %243 : vector<2x256xf32>
    %cst_309 = arith.constant 0.000000e+00 : f32
    %245 = vector.broadcast %cst_309 : f32 to vector<2x256xf32>
    %246 = arith.cmpf oge, %244, %245 : vector<2x256xf32>
    %cst_310 = arith.constant 0.00999999977 : f32
    %247 = vector.broadcast %cst_310 : f32 to vector<2x256xf32>
    %248 = arith.mulf %247, %244 : vector<2x256xf32>
    %249 = arith.select %246, %244, %248 : vector<2x256xi1>, vector<2x256xf32>
    %250 = arith.addf %249, %239 : vector<2x256xf32>
    %cst_311 = arith.constant dense<0.000000e+00> : vector<2x256xf32>
    %251 = tpu.matmul %250, %240, %cst_311 {dimension_numbers = #tpu.dot_dimension_numbers<[1], [0], [0], [1], [0, 0, 1, 1], [], []>} : vector<2x256xf32>, vector<256x256xf32>, vector<2x256xf32> -> vector<2x256xf32>
    %252 = vector.broadcast %241 : vector<1x256xf32> to vector<2x256xf32>
    %253 = arith.addf %251, %252 : vector<2x256xf32>
    %cst_312 = arith.constant 0.000000e+00 : f32
    %254 = vector.broadcast %cst_312 : f32 to vector<2x256xf32>
    %255 = arith.cmpf oge, %253, %254 : vector<2x256xf32>
    %cst_313 = arith.constant 0.00999999977 : f32
    %256 = vector.broadcast %cst_313 : f32 to vector<2x256xf32>
    %257 = arith.mulf %256, %253 : vector<2x256xf32>
    %258 = arith.select %255, %253, %257 : vector<2x256xi1>, vector<2x256xf32>
    %259 = arith.addf %258, %250 : vector<2x256xf32>
    %cst_314 = arith.constant dense<0.000000e+00> : vector<2x256xf32>
    %260 = tpu.matmul %259, %240, %cst_314 {dimension_numbers = #tpu.dot_dimension_numbers<[1], [0], [0], [1], [0, 0, 1, 1], [], []>} : vector<2x256xf32>, vector<256x256xf32>, vector<2x256xf32> -> vector<2x256xf32>
    %261 = vector.broadcast %241 : vector<1x256xf32> to vector<2x256xf32>
    %262 = arith.addf %260, %261 : vector<2x256xf32>
    %cst_315 = arith.constant 0.000000e+00 : f32
    %263 = vector.broadcast %cst_315 : f32 to vector<2x256xf32>
    %264 = arith.cmpf oge, %262, %263 : vector<2x256xf32>
    %cst_316 = arith.constant 0.00999999977 : f32
    %265 = vector.broadcast %cst_316 : f32 to vector<2x256xf32>
    %266 = arith.mulf %265, %262 : vector<2x256xf32>
    %267 = arith.select %264, %262, %266 : vector<2x256xi1>, vector<2x256xf32>
    %268 = arith.addf %267, %259 : vector<2x256xf32>
    %c0_317 = arith.constant 0 : index
    %c0_318 = arith.constant 0 : index
    %269 = vector.load %arg14[%c0_317, %c0_318] : memref<256x128xf32, #tpu.memory_space<vmem>>, vector<256x128xf32>
    %cst_319 = arith.constant dense<0.000000e+00> : vector<2x128xf32>
    %270 = tpu.matmul %268, %269, %cst_319 {dimension_numbers = #tpu.dot_dimension_numbers<[1], [0], [0], [1], [0, 0, 1, 1], [], []>} : vector<2x256xf32>, vector<256x128xf32>, vector<2x128xf32> -> vector<2x128xf32>
    %c0_320 = arith.constant 0 : index
    %c0_321 = arith.constant 0 : index
    %271 = vector.load %arg15[%c0_320, %c0_321] : memref<1x128xf32, #tpu.memory_space<vmem>>, vector<1x128xf32>
    %272 = vector.broadcast %271 : vector<1x128xf32> to vector<2x128xf32>
    %273 = arith.addf %270, %272 : vector<2x128xf32>
    %c0_322 = arith.constant 0 : index
    %c0_323 = arith.constant 0 : index
    %274 = vector.load %arg16[%c0_322, %c0_323] : memref<2x128xf32, #tpu.memory_space<vmem>>, vector<2x128xf32>
    tpu.vector_store %arg16[%c0_322, %c0_323], %273 {strides = array<i32>} : memref<2x128xf32, #tpu.memory_space<vmem>>, vector<2x128xf32>,
    return
  }
  func.func @transform_0(%arg0: i32) -> (i32, i32) {
    %c0_i32 = arith.constant 0 : i32
    %c0_i32_0 = arith.constant 0 : i32
    %c0_i32_1 = arith.constant 0 : i32
    return %c0_i32, %c0_i32_0 : i32, i32
  }
  func.func @transform_1(%arg0: i32) -> (i32, i32) {
    %c0_i32 = arith.constant 0 : i32
    %c0_i32_0 = arith.constant 0 : i32
    %c0_i32_1 = arith.constant 0 : i32
    return %c0_i32, %c0_i32_0 : i32, i32
  }
  func.func @transform_2(%arg0: i32) -> (i32, i32) {
    %c0_i32 = arith.constant 0 : i32
    %c0_i32_0 = arith.constant 0 : i32
    %c0_i32_1 = arith.constant 0 : i32
    return %c0_i32, %c0_i32_0 : i32, i32
  }
  func.func @transform_3(%arg0: i32) -> (i32, i32) {
    %c0_i32 = arith.constant 0 : i32
    %c0_i32_0 = arith.constant 0 : i32
    %c0_i32_1 = arith.constant 0 : i32
    return %c0_i32, %c0_i32_0 : i32, i32
  }
  func.func @transform_4(%arg0: i32) -> (i32, i32) {
    %c0_i32 = arith.constant 0 : i32
    %c0_i32_0 = arith.constant 0 : i32
    %c0_i32_1 = arith.constant 0 : i32
    return %c0_i32, %c0_i32_0 : i32, i32
  }
  func.func @transform_5(%arg0: i32) -> (i32, i32) {
    %c0_i32 = arith.constant 0 : i32
    %c0_i32_0 = arith.constant 0 : i32
    %c0_i32_1 = arith.constant 0 : i32
    return %c0_i32, %c0_i32_0 : i32, i32
  }
  func.func @transform_6(%arg0: i32) -> (i32, i32) {
    %c0_i32 = arith.constant 0 : i32
    %c0_i32_0 = arith.constant 0 : i32
    %c0_i32_1 = arith.constant 0 : i32
    return %c0_i32, %c0_i32_0 : i32, i32
  }
  func.func @transform_7(%arg0: i32) -> (i32, i32) {
    %c0_i32 = arith.constant 0 : i32
    %c0_i32_0 = arith.constant 0 : i32
    %c0_i32_1 = arith.constant 0 : i32
    return %c0_i32, %c0_i32_0 : i32, i32
  }
  func.func @transform_8(%arg0: i32) -> (i32, i32) {
    %c0_i32 = arith.constant 0 : i32
    %c0_i32_0 = arith.constant 0 : i32
    %c0_i32_1 = arith.constant 0 : i32
    return %c0_i32, %c0_i32_0 : i32, i32
  }
  func.func @transform_9(%arg0: i32) -> (i32, i32) {
    %c0_i32 = arith.constant 0 : i32
    %c0_i32_0 = arith.constant 0 : i32
    %c0_i32_1 = arith.constant 0 : i32
    return %c0_i32, %c0_i32_0 : i32, i32
  }
  func.func @transform_10(%arg0: i32) -> (i32, i32) {
    %c0_i32 = arith.constant 0 : i32
    %c0_i32_0 = arith.constant 0 : i32
    %c0_i32_1 = arith.constant 0 : i32
    return %c0_i32, %c0_i32_0 : i32, i32
  }
  func.func @transform_11(%arg0: i32) -> (i32, i32) {
    %c0_i32 = arith.constant 0 : i32
    %c0_i32_0 = arith.constant 0 : i32
    %c0_i32_1 = arith.constant 0 : i32
    return %c0_i32, %c0_i32_0 : i32, i32
  }
  func.func @transform_12(%arg0: i32) -> (i32, i32) {
    %c0_i32 = arith.constant 0 : i32
    %c0_i32_0 = arith.constant 0 : i32
    %c0_i32_1 = arith.constant 0 : i32
    return %c0_i32, %c0_i32_0 : i32, i32
  }
  func.func @transform_13(%arg0: i32) -> (i32, i32) {
    %c0_i32 = arith.constant 0 : i32
    %c0_i32_0 = arith.constant 0 : i32
    %c0_i32_1 = arith.constant 0 : i32
    return %c0_i32, %c0_i32_0 : i32, i32
  }
  func.func @transform_14(%arg0: i32) -> (i32, i32) {
    %c0_i32 = arith.constant 0 : i32
    %c0_i32_0 = arith.constant 0 : i32
    %c0_i32_1 = arith.constant 0 : i32
    return %c0_i32, %c0_i32_0 : i32, i32
  }
  func.func @transform_15(%arg0: i32) -> (i32, i32) {
    %c0_i32 = arith.constant 0 : i32
    %c0_i32_0 = arith.constant 0 : i32
    %c0_i32_1 = arith.constant 0 : i32
    return %c0_i32, %c0_i32_0 : i32, i32
  }
}

</mosaic_0001>

<bundles_post_ra>
// kernel: generator_forward.1
= control target key start
LH: loop header
LB: loop body
LE: loop exit
PB: predicated region body
PF: predicated region fallthrough
CT: control target
= control target key end

     0   :  { %20 = vsyncpa [#allocation7], 0  ;;  %s6402_s0 = inlined_call_operand.vmem [shape: f32[32,1], index: 0, kind: input, shape index: {}]   ;;  %s6403_s1 = inlined_call_operand.hbm [shape: f32[1,128], index: 1, kind: input, shape index: {}]   ;;  %s6404_s2 = inlined_call_operand.hbm [shape: f32[1,128], index: 2, kind: input, shape index: {}]   ;;  %s6405_s3 = inlined_call_operand.hbm [shape: f32[640,128], index: 3, kind: input, shape index: {}]   ;;  %s6406_s4 = inlined_call_operand.hbm [shape: f32[1,128], index: 4, kind: input, shape index: {}]   ;;  %s6407_s5 = inlined_call_operand.hbm [shape: f32[384,128], index: 5, kind: input, shape index: {}]   ;;  %s6408_s6 = inlined_call_operand.hbm [shape: f32[1,128], index: 6, kind: input, shape index: {}]   ;;  %s6409_s7 = inlined_call_operand.hbm [shape: f32[384,128], index: 7, kind: input, shape index: {}]   ;;  %s6410_s8 = inlined_call_operand.hbm [shape: f32[1,128], index: 8, kind: input, shape index: {}]   ;;  %s6411_s9 = inlined_call_operand.hbm [shape: f32[2048,256], index: 9, kind: input, shape index: {}]   ;;  %s6412_s10 = inlined_call_operand.hbm [shape: f32[1,256], index: 10, kind: input, shape index: {}]   ;;  %s6413_s11 = inlined_call_operand.hbm [shape: f32[256,256], index: 11, kind: input, shape index: {}]   ;;  %s6414_s12 = inlined_call_operand.hbm [shape: f32[1,256], index: 12, kind: input, shape index: {}]   ;;  %s6415_s13 = inlined_call_operand.hbm [shape: f32[256,128], index: 13, kind: input, shape index: {}]   ;;  %s6416_s14 = inlined_call_operand.hbm [shape: f32[1,128], index: 14, kind: input, shape index: {}]   ;;  %s6417_s15 = inlined_call_operand.hbm [shape: f32[2,128], index: 15, kind: output, shape index: {}]  }
   0x1   :  { %21 = vsyncpa [#allocation10], 0 }
   0x2   :  { %22 = vsyncpa [#allocation13], 0 }
   0x3   :  { %23 = vsyncpa [#allocation16], 0 }
   0x4   :  { %24 = vsyncpa [#allocation19], 0 }
   0x5   :  { %25 = vsyncpa [#allocation22], 0 }
   0x6   :  { %26 = vsyncpa [#allocation25], 0 }
   0x7   :  { %27 = vsyncpa [#allocation28], 0 }
   0x8   :  { %28 = vsyncpa [#allocation8], 0  ;;  %s5621_s18 = smov [#allocation9]   ;;  %s5622_s20 = smov [#allocation12]  }
   0x9   :  { %s47_s19 = sshll.u32 %s5621_s18, 4  ;;  %s69_s21 = sshll.u32 %s5622_s20, 4  ;;  %s48_s19 = int_to_ptr.vmem [resolvable:$true] %s47_s19  ;;  %s70_s21 = int_to_ptr.vmem [resolvable:$true] %s69_s21 }
   0xa   :  { %s5273_s24 = scalar_lea.hbm %s6404_s2, 16 }
   0xb   :  { %p5274_p0 = scmp.ne.s32.totalorder %s6404_s2, %s5273_s24  ;;  %p5277_p1 = scmp.lt.u32.totalorder %s5273_s24, %s6404_s2 }
   0xd   :  { %p5279_p2 = pnand %p5277_p1, %p5274_p0 }
   0xf   :  { %5282 = shalt.err (!%p5279_p2)
}
  0x10   :  { %s5283_s29 = scalar_lea.vmem %s48_s19, 16  ;;  %s5287_s30 = scalar_lea.vmem %s48_s19, 32 }
  0x11   :  { %p5284_p3 = scmp.ne.s32.totalorder %s48_s19, %s5283_s29  ;;  %p5288_p4 = scmp.lt.s32.totalorder %s48_s19, %s48_s19 }
  0x12   :  { %p5289_p5 = scmp.lt.s32.totalorder %s5287_s30, %s5283_s29 }
  0x14   :  { %p5290_p6 = por %p5289_p5, %p5288_p4 }
  0x16   :  { %p5291_p7 = pnand %p5290_p6, %p5284_p3 }
  0x18   :  { %5294 = shalt.err (!%p5291_p7)
}
  0x19   :  { %50 = dma.hbm_to_vmem [thread:$0]  %s6404_s2, 16, %s48_s19, [#allocation10]  }
  0x1a   :  { %s5295_s22 = scalar_lea.hbm %s6406_s4, 16 }
  0x1b   :  { %p5296_p8 = scmp.ne.s32.totalorder %s6406_s4, %s5295_s22  ;;  %p5299_p9 = scmp.lt.u32.totalorder %s5295_s22, %s6406_s4 }
  0x1d   :  { %p5301_p10 = pnand %p5299_p9, %p5296_p8 }
  0x1f   :  { %5304 = shalt.err (!%p5301_p10)
}
  0x20   :  { %s5305_s27 = scalar_lea.vmem %s70_s21, 16  ;;  %s5309_s28 = scalar_lea.vmem %s70_s21, 32 }
  0x21   :  { %p5306_p11 = scmp.ne.s32.totalorder %s70_s21, %s5305_s27  ;;  %p5310_p12 = scmp.lt.s32.totalorder %s70_s21, %s70_s21 }
  0x22   :  { %p5311_p13 = scmp.lt.s32.totalorder %s5309_s28, %s5305_s27 }
  0x24   :  { %p5312_p0 = por %p5311_p13, %p5310_p12 }
  0x26   :  { %p5313_p1 = pnand %p5312_p0, %p5306_p11 }
  0x28   :  { %5316 = shalt.err (!%p5313_p1)
}
  0x29   :  { %72 = dma.hbm_to_vmem [thread:$0]  %s6406_s4, 16, %s70_s21, [#allocation13]  }
  0x2a   :  { %s5623_s29 = smov [#allocation15]   ;;  %s5624_s16 = smov [#allocation18]  }
  0x2b   :  { %s91_s30 = sshll.u32 %s5623_s29, 4  ;;  %s113_s17 = sshll.u32 %s5624_s16, 4  ;;  %s92_s30 = int_to_ptr.vmem [resolvable:$true] %s91_s30  ;;  %s114_s17 = int_to_ptr.vmem [resolvable:$true] %s113_s17 }
  0x2c   :  { %s5317_s22 = scalar_lea.hbm %s6408_s6, 16 }
  0x2d   :  { %p5318_p2 = scmp.ne.s32.totalorder %s6408_s6, %s5317_s22  ;;  %p5321_p3 = scmp.lt.u32.totalorder %s5317_s22, %s6408_s6 }
  0x2f   :  { %p5323_p4 = pnand %p5321_p3, %p5318_p2 }
  0x31   :  { %5326 = shalt.err (!%p5323_p4)
}
  0x32   :  { %s5327_s4 = scalar_lea.vmem %s92_s30, 16  ;;  %s5331_s21 = scalar_lea.vmem %s92_s30, 32 }
  0x33   :  { %p5328_p5 = scmp.ne.s32.totalorder %s92_s30, %s5327_s4  ;;  %p5332_p6 = scmp.lt.s32.totalorder %s92_s30, %s92_s30 }
  0x34   :  { %p5333_p7 = scmp.lt.s32.totalorder %s5331_s21, %s5327_s4 }
  0x36   :  { %p5334_p8 = por %p5333_p7, %p5332_p6 }
  0x38   :  { %p5335_p9 = pnand %p5334_p8, %p5328_p5 }
  0x3a   :  { %5338 = shalt.err (!%p5335_p9)
}
  0x3b   :  { %94 = dma.hbm_to_vmem [thread:$0]  %s6408_s6, 16, %s92_s30, [#allocation16]  }
  0x3c   :  { %s5339_s29 = scalar_lea.hbm %s6410_s8, 16 }
  0x3d   :  { %p5340_p10 = scmp.ne.s32.totalorder %s6410_s8, %s5339_s29  ;;  %p5343_p11 = scmp.lt.u32.totalorder %s5339_s29, %s6410_s8 }
  0x3f   :  { %p5345_p12 = pnand %p5343_p11, %p5340_p10 }
  0x41   :  { %5348 = shalt.err (!%p5345_p12)
}
  0x42   :  { %s5349_s23 = scalar_lea.vmem %s114_s17, 16  ;;  %s5353_s24 = scalar_lea.vmem %s114_s17, 32 }
  0x43   :  { %p5350_p13 = scmp.ne.s32.totalorder %s114_s17, %s5349_s23  ;;  %p5354_p0 = scmp.lt.s32.totalorder %s114_s17, %s114_s17 }
  0x44   :  { %p5355_p1 = scmp.lt.s32.totalorder %s5353_s24, %s5349_s23 }
  0x46   :  { %p5356_p2 = por %p5355_p1, %p5354_p0 }
  0x48   :  { %p5357_p3 = pnand %p5356_p2, %p5350_p13 }
  0x4a   :  { %5360 = shalt.err (!%p5357_p3)
}
  0x4b   :  { %116 = dma.hbm_to_vmem [thread:$0]  %s6410_s8, 16, %s114_s17, [#allocation19]  }
  0x4c   :  { %s5625_s25 = smov [#allocation21]   ;;  %s5626_s4 = smov [#allocation24]  }
  0x4d   :  { %s135_s26 = sshll.u32 %s5625_s25, 4  ;;  %s157_s21 = sshll.u32 %s5626_s4, 4  ;;  %s136_s26 = int_to_ptr.vmem [resolvable:$true] %s135_s26  ;;  %s158_s21 = int_to_ptr.vmem [resolvable:$true] %s157_s21 }
  0x4e   :  { %s5361_s2 = scalar_lea.hbm %s6412_s10, 32 }
  0x4f   :  { %p5362_p4 = scmp.ne.s32.totalorder %s6412_s10, %s5361_s2  ;;  %p5365_p5 = scmp.lt.u32.totalorder %s5361_s2, %s6412_s10 }
  0x51   :  { %p5367_p6 = pnand %p5365_p5, %p5362_p4 }
  0x53   :  { %5370 = shalt.err (!%p5367_p6)
}
  0x54   :  { %s5371_s8 = scalar_lea.vmem %s136_s26, 32  ;;  %p5376_p8 = scmp.lt.s32.totalorder %s136_s26, %s136_s26 }
  0x55   :  { %p5372_p7 = scmp.ne.s32.totalorder %s136_s26, %s5371_s8  ;;  %p5377_p9 = scmp.lt.s32.totalorder %s5371_s8, %s5371_s8 }
  0x57   :  { %p5378_p10 = por %p5377_p9, %p5376_p8 }
  0x59   :  { %p5379_p11 = pnand %p5378_p10, %p5372_p7 }
  0x5b   :  { %5382 = shalt.err (!%p5379_p11)
}
  0x5c   :  { %138 = dma.hbm_to_vmem [thread:$0]  %s6412_s10, 32, %s136_s26, [#allocation22]  }
  0x5d   :  { %s5383_s24 = scalar_lea.hbm %s6414_s12, 32 }
  0x5e   :  { %p5384_p12 = scmp.ne.s32.totalorder %s6414_s12, %s5383_s24  ;;  %p5387_p13 = scmp.lt.u32.totalorder %s5383_s24, %s6414_s12 }
  0x60   :  { %p5389_p0 = pnand %p5387_p13, %p5384_p12 }
  0x62   :  { %5392 = shalt.err (!%p5389_p0)
}
  0x63   :  { %s5393_s27 = scalar_lea.vmem %s158_s21, 32  ;;  %p5398_p2 = scmp.lt.s32.totalorder %s158_s21, %s158_s21 }
  0x64   :  { %p5394_p1 = scmp.ne.s32.totalorder %s158_s21, %s5393_s27  ;;  %p5399_p3 = scmp.lt.s32.totalorder %s5393_s27, %s5393_s27 }
  0x66   :  { %p5400_p4 = por %p5399_p3, %p5398_p2 }
  0x68   :  { %p5401_p5 = pnand %p5400_p4, %p5394_p1 }
  0x6a   :  { %5404 = shalt.err (!%p5401_p5)
}
  0x6b   :  { %160 = dma.hbm_to_vmem [thread:$0]  %s6414_s12, 32, %s158_s21, [#allocation25]  }
  0x6c   :  { %s5627_s28 = smov [#allocation6]   ;;  %s5628_s19 = smov [#allocation11]  }
  0x6d   :  { %s37_s2 = sshll.u32 %s5627_s28, 4  ;;  %s56_s29 = sshll.u32 %s5628_s19, 4  ;;  %s38_s2 = int_to_ptr.vmem [resolvable:$true] %s37_s2  ;;  %s5795_s29 = int_to_ptr.vmem [resolvable:$true] %s56_s29 }
  0x6e   :  { %s5405_s8 = scalar_lea.hbm %s6403_s1, 16 }
  0x6f   :  { %p5406_p6 = scmp.ne.s32.totalorder %s6403_s1, %s5405_s8  ;;  %p5409_p7 = scmp.lt.u32.totalorder %s5405_s8, %s6403_s1 }
  0x71   :  { %p5411_p8 = pnand %p5409_p7, %p5406_p6 }
  0x73   :  { %5414 = shalt.err (!%p5411_p8)
}
  0x74   :  { %s5415_s12 = scalar_lea.vmem %s38_s2, 16  ;;  %s5419_s21 = scalar_lea.vmem %s38_s2, 32 }
  0x75   :  { %p5416_p9 = scmp.ne.s32.totalorder %s38_s2, %s5415_s12  ;;  %p5420_p10 = scmp.lt.s32.totalorder %s38_s2, %s38_s2 }
  0x76   :  { %p5421_p11 = scmp.lt.s32.totalorder %s5419_s21, %s5415_s12 }
  0x78   :  { %p5422_p12 = por %p5421_p11, %p5420_p10 }
  0x7a   :  { %p5423_p13 = pnand %p5422_p12, %p5416_p9 }
  0x7c   :  { %5426 = shalt.err (!%p5423_p13)
}
  0x7d   :  { %40 = dma.hbm_to_vmem [thread:$0]  %s6403_s1, 16, %s38_s2, [#allocation7]  }
  0x7e   :  { %s5427_s4 = scalar_lea.hbm %s6405_s3, 10240 }
  0x7f   :  { %p5428_p0 = scmp.ne.s32.totalorder %s6405_s3, %s5427_s4  ;;  %p5431_p1 = scmp.lt.u32.totalorder %s5427_s4, %s6405_s3 }
  0x81   :  { %p5433_p2 = pnand %p5431_p1, %p5428_p0 }
  0x83   :  { %5436 = shalt.err (!%p5433_p2)
}
  0x84   :  { %s5437_s19 = scalar_lea.vmem %s5795_s29, 10240  ;;  %p5442_p4 = scmp.lt.s32.totalorder %s5795_s29, %s5795_s29 }
  0x85   :  { %p5438_p3 = scmp.ne.s32.totalorder %s5795_s29, %s5437_s19  ;;  %p5443_p5 = scmp.lt.s32.totalorder %s5437_s19, %s5437_s19 }
  0x87   :  { %p5444_p6 = por %p5443_p5, %p5442_p4 }
  0x89   :  { %p5445_p7 = pnand %p5444_p6, %p5438_p3 }
  0x8b   :  { %5448 = shalt.err (!%p5445_p7)
}
  0x8c   :  { %s5629_s1 = smov 128   ;;  %s5630_s2 = smov 8  }
  0x8d   :  { %62 = dma.hbm_to_vmem [thread:$0]  %s6405_s3, 10240, %s5795_s29, [#allocation10], %s5629_s1, %s5629_s1, %s5630_s2  }
  0x8e   :  { %s5631_s8 = smov [#allocation14]   ;;  %s5632_s20 = smov [#allocation17]  }
  0x8f   :  { %s78_s17 = sshll.u32 %s5631_s8, 4  ;;  %s100_s22 = sshll.u32 %s5632_s20, 4  ;;  %s79_s17 = int_to_ptr.vmem [resolvable:$true] %s78_s17  ;;  %s5829_s22 = int_to_ptr.vmem [resolvable:$true] %s100_s22 }
  0x90   :  { %s5449_s21 = scalar_lea.hbm %s6407_s5, 6144 }
  0x91   :  { %p5450_p8 = scmp.ne.s32.totalorder %s6407_s5, %s5449_s21  ;;  %p5453_p9 = scmp.lt.u32.totalorder %s5449_s21, %s6407_s5 }
  0x93   :  { %p5455_p10 = pnand %p5453_p9, %p5450_p8 }
  0x95   :  { %5458 = shalt.err (!%p5455_p10)
}
  0x96   :  { %s5459_s3 = scalar_lea.vmem %s79_s17, 6144  ;;  %p5464_p12 = scmp.lt.s32.totalorder %s79_s17, %s79_s17 }
  0x97   :  { %p5460_p11 = scmp.ne.s32.totalorder %s79_s17, %s5459_s3  ;;  %p5465_p13 = scmp.lt.s32.totalorder %s5459_s3, %s5459_s3 }
  0x99   :  { %p5466_p0 = por %p5465_p13, %p5464_p12 }
  0x9b   :  { %p5467_p1 = pnand %p5466_p0, %p5460_p11 }
  0x9d   :  { %5470 = shalt.err (!%p5467_p1)
}
  0x9e   :  { %84 = dma.hbm_to_vmem [thread:$0]  %s6407_s5, 6144, %s79_s17, [#allocation13], %s5629_s1, %s5629_s1, %s5630_s2  }
  0x9f   :  { %s5471_s26 = scalar_lea.hbm %s6409_s7, 6144 }
  0xa0   :  { %p5472_p2 = scmp.ne.s32.totalorder %s6409_s7, %s5471_s26  ;;  %p5475_p3 = scmp.lt.u32.totalorder %s5471_s26, %s6409_s7 }
  0xa2   :  { %p5477_p4 = pnand %p5475_p3, %p5472_p2 }
  0xa4   :  { %5480 = shalt.err (!%p5477_p4)
}
  0xa5   :  { %s5481_s8 = scalar_lea.vmem %s5829_s22, 6144  ;;  %p5486_p6 = scmp.lt.s32.totalorder %s5829_s22, %s5829_s22 }
  0xa6   :  { %p5482_p5 = scmp.ne.s32.totalorder %s5829_s22, %s5481_s8  ;;  %p5487_p7 = scmp.lt.s32.totalorder %s5481_s8, %s5481_s8 }
  0xa8   :  { %p5488_p8 = por %p5487_p7, %p5486_p6 }
  0xaa   :  { %p5489_p9 = pnand %p5488_p8, %p5482_p5 }
  0xac   :  { %5492 = shalt.err (!%p5489_p9)
}
  0xad   :  { %106 = dma.hbm_to_vmem [thread:$0]  %s6409_s7, 6144, %s5829_s22, [#allocation16], %s5629_s1, %s5629_s1, %s5630_s2  }
  0xae   :  { %s5633_s20 = smov [#allocation20]   ;;  %s5493_s24 = scalar_lea.hbm %s6411_s9, 65536 }
  0xaf   :  { %s122_s23 = sshll.u32 %s5633_s20, 4  ;;  %p5494_p10 = scmp.ne.s32.totalorder %s6411_s9, %s5493_s24  ;;  %s123_s23 = int_to_ptr.vmem [resolvable:$true] %s122_s23 }
  0xb0   :  { %p5497_p11 = scmp.lt.u32.totalorder %s5493_s24, %s6411_s9 }
  0xb2   :  { %p5499_p12 = pnand %p5497_p11, %p5494_p10 }
  0xb4   :  { %5502 = shalt.err (!%p5499_p12)
}
  0xb5   :  { %s5503_s29 = scalar_lea.vmem %s123_s23, 65536  ;;  %p5508_p0 = scmp.lt.s32.totalorder %s123_s23, %s123_s23 }
  0xb6   :  { %p5504_p13 = scmp.ne.s32.totalorder %s123_s23, %s5503_s29  ;;  %p5509_p1 = scmp.lt.s32.totalorder %s5503_s29, %s5503_s29 }
  0xb8   :  { %p5510_p2 = por %p5509_p1, %p5508_p0 }
  0xba   :  { %p5511_p3 = pnand %p5510_p2, %p5504_p13 }
  0xbc   :  { %5514 = shalt.err (!%p5511_p3)
}
  0xbd   :  { %s5634_s7 = smov 256   ;;  %s5635_s22 = smov 16  }
  0xbe   :  { %128 = dma.hbm_to_vmem [thread:$0]  %s6411_s9, 65536, %s123_s23, [#allocation19], %s5634_s7, %s5634_s7, %s5635_s22  }
  0xbf   :  { %s5636_s10 = smov [#allocation23]   ;;  %s5637_s28 = smov [#allocation26]  }
  0xc0   :  { %s144_s26 = sshll.u32 %s5636_s10, 4  ;;  %s166_s19 = sshll.u32 %s5637_s28, 4  ;;  %s145_s26 = int_to_ptr.vmem [resolvable:$true] %s144_s26  ;;  %s167_s19 = int_to_ptr.vmem [resolvable:$true] %s166_s19 }
  0xc1   :  { %s5515_s8 = scalar_lea.hbm %s6413_s11, 8192 }
  0xc2   :  { %p5516_p4 = scmp.ne.s32.totalorder %s6413_s11, %s5515_s8  ;;  %p5519_p5 = scmp.lt.u32.totalorder %s5515_s8, %s6413_s11 }
  0xc4   :  { %p5521_p6 = pnand %p5519_p5, %p5516_p4 }
  0xc6   :  { %5524 = shalt.err (!%p5521_p6)
}
  0xc7   :  { %s5525_s9 = scalar_lea.vmem %s145_s26, 8192  ;;  %p5530_p8 = scmp.lt.s32.totalorder %s145_s26, %s145_s26 }
  0xc8   :  { %p5526_p7 = scmp.ne.s32.totalorder %s145_s26, %s5525_s9  ;;  %p5531_p9 = scmp.lt.s32.totalorder %s5525_s9, %s5525_s9 }
  0xca   :  { %p5532_p10 = por %p5531_p9, %p5530_p8 }
  0xcc   :  { %p5533_p11 = pnand %p5532_p10, %p5526_p7 }
  0xce   :  { %5536 = shalt.err (!%p5533_p11)
}
  0xcf   :  { %150 = dma.hbm_to_vmem [thread:$0]  %s6413_s11, 8192, %s145_s26, [#allocation22], %s5634_s7, %s5634_s7, %s5635_s22  }
  0xd0   :  { %s5537_s30 = scalar_lea.hbm %s6415_s13, 4096 }
  0xd1   :  { %p5538_p12 = scmp.ne.s32.totalorder %s6415_s13, %s5537_s30  ;;  %p5541_p13 = scmp.lt.u32.totalorder %s5537_s30, %s6415_s13 }
  0xd3   :  { %p5543_p0 = pnand %p5541_p13, %p5538_p12 }
  0xd5   :  { %5546 = shalt.err (!%p5543_p0)
}
  0xd6   :  { %s5547_s27 = scalar_lea.vmem %s167_s19, 4096  ;;  %p5552_p2 = scmp.lt.s32.totalorder %s167_s19, %s167_s19 }
  0xd7   :  { %p5548_p1 = scmp.ne.s32.totalorder %s167_s19, %s5547_s27  ;;  %p5553_p3 = scmp.lt.s32.totalorder %s5547_s27, %s5547_s27 }
  0xd9   :  { %p5554_p4 = por %p5553_p3, %p5552_p2 }
  0xdb   :  { %p5555_p5 = pnand %p5554_p4, %p5548_p1 }
  0xdd   :  { %5558 = shalt.err (!%p5555_p5)
}
  0xde   :  { %172 = dma.hbm_to_vmem [thread:$0]  %s6415_s13, 4096, %s167_s19, [#allocation25], %s5629_s1, %s5629_s1, %s5630_s2  }
  0xdf   :  { %s5638_s22 = smov [#allocation27]   ;;  %s5559_s16 = scalar_lea.hbm %s6416_s14, 16 }
  0xe0   :  { %s179_s10 = sshll.u32 %s5638_s22, 4  ;;  %p5560_p6 = scmp.ne.s32.totalorder %s6416_s14, %s5559_s16  ;;  %s180_s10 = int_to_ptr.vmem [resolvable:$true] %s179_s10 }
  0xe1   :  { %p5563_p7 = scmp.lt.u32.totalorder %s5559_s16, %s6416_s14 }
  0xe3   :  { %p5565_p8 = pnand %p5563_p7, %p5560_p6 }
  0xe5   :  { %5568 = shalt.err (!%p5565_p8)
}
  0xe6   :  { %s5569_s20 = scalar_lea.vmem %s180_s10, 16  ;;  %s5573_s13 = scalar_lea.vmem %s180_s10, 32 }
  0xe7   :  { %p5570_p9 = scmp.ne.s32.totalorder %s180_s10, %s5569_s20  ;;  %p5574_p10 = scmp.lt.s32.totalorder %s180_s10, %s180_s10 }
  0xe8   :  { %p5575_p11 = scmp.lt.s32.totalorder %s5573_s13, %s5569_s20 }
  0xea   :  { %p5576_p12 = por %p5575_p11, %p5574_p10 }
  0xec   :  { %p5577_p13 = pnand %p5576_p12, %p5570_p9 }
  0xee   :  { %5580 = shalt.err (!%p5577_p13)
}
  0xef   :  { %182 = dma.hbm_to_vmem [thread:$0]  %s6416_s14, 16, %s180_s10, [#allocation28]  }
  0xf0   :  { %5603 = dma.done.wait [#allocation7], 16  }
  0xf1   :  { %5604 = vsyncadd [#allocation7], 4294967280 }
  0xf2   :  { %5605 = dma.done.wait [#allocation10], 10256  }
  0xf3   :  { %5606 = vsyncadd [#allocation10], 4294957040 }
  0xf4   :  { %5607 = dma.done.wait [#allocation13], 6160  }
  0xf5   :  { %5608 = vsyncadd [#allocation13], 4294961136 }
  0xf6   :  { %5609 = dma.done.wait [#allocation16], 6160  }
  0xf7   :  { %5610 = vsyncadd [#allocation16], 4294961136 }
  0xf8   :  { %5611 = dma.done.wait [#allocation19], 65552  }
  0xf9   :  { %5612 = vsyncadd [#allocation19], 4294901744 }
  0xfa   :  { %5613 = dma.done.wait [#allocation22], 8224  }
  0xfb   :  { %5614 = vsyncadd [#allocation22], 4294959072 }
  0xfc   :  { %5615 = dma.done.wait [#allocation25], 4128  }
  0xfd   :  { %5616 = vsyncadd [#allocation25], 4294963168 }
  0xfe   :  { %5617 = dma.done.wait [#allocation28], 16  }
  0xff   :  { %5618 = vsyncadd [#allocation28], 4294967280  ;;  %v5639_v0 = vmov 0   ;;  %v5640_v1 = vmov 0.0   ;;  %v233_v2 = vld [vmem:[%s6402_s0] sm:$0xff]  ;;  %v234_v3 = vld [vmem:[%s6402_s0 + $0x8] sm:$0xff] }
 0x100   :  { %5267 = vset.pattern.permute.xlu0 %v5639_v0  ;;  %5268 = vset.pattern.permute.xlu1 %v5639_v0  ;;  %225 = vst [vmem:[#allocation2] sm:$0xff] %v5640_v1  ;;  %228 = vst [vmem:[#allocation2 + $0x18] sm:$0xff] %v5640_v1  ;;  %v235_v4 = vld [vmem:[%s6402_s0 + $0x10] sm:$0xff]  ;;  %v236_v5 = vld [vmem:[%s6402_s0 + $0x18] sm:$0xff]  ;;  %s5642_s0 = smov [#allocation29]  }
 0x101   :  { %229 = vst [vmem:[#allocation2 + $0x20] sm:$0xff] %v5640_v1  ;;  %232 = vst [vmem:[#allocation2 + $0x38] sm:$0xff] %v5640_v1  ;;  %240 = vperm.xlu0 %5267, %v233_v2   ;;  %250 = vperm.xlu1 %5268, %v235_v4   ;;  %v371_v6 = vld [vmem:[#allocation11 + $0x80] sm:$0xff]  ;;  %v372_v7 = vld [vmem:[#allocation11 + $0x88] sm:$0xff]  ;;  %s3528_s30 = sshll.u32 %s5642_s0, 4  ;;  %s3529_s30 = int_to_ptr.vmem [resolvable:$true] %s3528_s30 }
 0x102   :  { %v4141_v8 = vpack.c.bf16 %v372_v7, %v371_v6  ;;  %v355_v9 = vld [vmem:[#allocation11] sm:$0xff]  ;;  %v356_v10 = vld [vmem:[#allocation11 + $0x8] sm:$0xff]  ;;  %v373_v11 = vld [vmem:[#allocation11 + $0x90] sm:$0xff]  ;;  %s5581_s25 = scalar_lea.vmem %s3529_s30, 32  ;;  %p5586_p1 = scmp.lt.s32.totalorder %s3529_s30, %s3529_s30 }
 0x103   :  { %v4143_v12 = vpack.c.bf16 %v356_v10, %v355_v9  ;;  %v374_v13 = vld [vmem:[#allocation11 + $0x98] sm:$0xff]  ;;  %v357_v14 = vld [vmem:[#allocation11 + $0x10] sm:$0xff]  ;;  %v403_v17 = vld [vmem:[#allocation11 + $0x180] sm:$0xff]  ;;  %p5582_p0 = scmp.ne.s32.totalorder %s3529_s30, %s5581_s25  ;;  %p5587_p2 = scmp.lt.s32.totalorder %s5581_s25, %s5581_s25 }
 0x104   :  { %v358_v15 = vld [vmem:[#allocation11 + $0x18] sm:$0xff]  ;;  %4142 = vmatprep.subr.bf16.mxu0 %v4141_v8  ;;  %v4145_v16 = vpack.c.bf16 %v374_v13, %v373_v11  ;;  %v404_v18 = vld [vmem:[#allocation11 + $0x188] sm:$0xff]  ;;  %v387_v19 = vld [vmem:[#allocation11 + $0x100] sm:$0xff] }
 0x105   :  { %245 = vperm.xlu0 %5267, %v234_v3   ;;  %255 = vperm.xlu1 %5268, %v236_v5   ;;  %v4173_v20 = vpack.c.bf16 %v404_v18, %v403_v17  ;;  %v388_v21 = vld [vmem:[#allocation11 + $0x108] sm:$0xff]  ;;  %v375_v22 = vld [vmem:[#allocation11 + $0xa0] sm:$0xff]  ;;  %v4147_v24 = vpack.c.bf16 %v358_v15, %v357_v14  ;;  %v405_v28 = vld [vmem:[#allocation11 + $0x190] sm:$0xff]  ;;  %p5588_p3 = por %p5587_p2, %p5586_p1 }
 0x106   :  { %v376_v23 = vld [vmem:[#allocation11 + $0xa8] sm:$0xff]  ;;  %4144 = vmatpush3.bf16.msra.mxu0 %v4143_v12  ;;  %v4175_v25 = vpack.c.bf16 %v388_v21, %v387_v19  ;;  %v359_v26 = vld [vmem:[#allocation11 + $0x20] sm:$0xff]  ;;  %v406_v30 = vld [vmem:[#allocation11 + $0x198] sm:$0xff] }
 0x107   :  { %v360_v27 = vld [vmem:[#allocation11 + $0x28] sm:$0xff]  ;;  %4146 = vmatprep.subr.bf16.mxu0 %v4145_v16  ;;  %4174 = vmatprep.subr.bf16.mxu1 %v4173_v20  ;;  %v4149_v29 = vpack.c.bf16 %v376_v23, %v375_v22  ;;  %v389_v31 = vld [vmem:[#allocation11 + $0x110] sm:$0xff]  ;;  %v390_v32 = vld [vmem:[#allocation11 + $0x118] sm:$0xff]  ;;  %v4177_v33 = vpack.c.bf16 %v406_v30, %v405_v28  ;;  %p5589_p4 = pnand %p5588_p3, %p5582_p0 }
 0x108   :  { %4176 = vmatpush3.bf16.msra.mxu1 %v4175_v25  ;;  %v4179_v34 = vpack.c.bf16 %v390_v32, %v389_v31  ;;  %v377_v35 = vld [vmem:[#allocation11 + $0xb0] sm:$0xff]  ;;  %v378_v36 = vld [vmem:[#allocation11 + $0xb8] sm:$0xff]  ;;  %v407_v37 = vld [vmem:[#allocation11 + $0x1a0] sm:$0xff]  ;;  %v4151_v39 = vpack.c.bf16 %v360_v27, %v359_v26 }
 0x109   :  { %v408_v38 = vld [vmem:[#allocation11 + $0x1a8] sm:$0xff]  ;;  %4178 = vmatprep.subr.bf16.mxu1 %v4177_v33  ;;  %v391_v41 = vld [vmem:[#allocation11 + $0x120] sm:$0xff]  ;;  %v4153_v43 = vpack.c.bf16 %v378_v36, %v377_v35  ;;  %v361_v44 = vld [vmem:[#allocation11 + $0x30] sm:$0xff] }
 0x10a   :  { %4148 = vmatpush3.bf16.msra.mxu0 %v4147_v24  ;;  %v4181_v40 = vpack.c.bf16 %v408_v38, %v407_v37  ;;  %v392_v42 = vld [vmem:[#allocation11 + $0x128] sm:$0xff]  ;;  %v362_v45 = vld [vmem:[#allocation11 + $0x38] sm:$0xff]  ;;  %v379_v47 = vld [vmem:[#allocation11 + $0xc0] sm:$0xff] }
 0x10b   :  { %4150 = vmatprep.subr.bf16.mxu0 %v4149_v29  ;;  %v4183_v46 = vpack.c.bf16 %v392_v42, %v391_v41  ;;  %v380_v48 = vld [vmem:[#allocation11 + $0xc8] sm:$0xff]  ;;  %v409_v49 = vld [vmem:[#allocation11 + $0x1b0] sm:$0xff]  ;;  %v410_v50 = vld [vmem:[#allocation11 + $0x1b8] sm:$0xff]  ;;  %v4155_v53 = vpack.c.bf16 %v362_v45, %v361_v44 }
 0x10c   :  { %4180 = vmatpush3.bf16.msra.mxu1 %v4179_v34  ;;  %v393_v51 = vld [vmem:[#allocation11 + $0x130] sm:$0xff]  ;;  %v394_v52 = vld [vmem:[#allocation11 + $0x138] sm:$0xff]  ;;  %v363_v54 = vld [vmem:[#allocation11 + $0x40] sm:$0xff]  ;;  %v4185_v55 = vpack.c.bf16 %v410_v50, %v409_v49  ;;  %v4157_v56 = vpack.c.bf16 %v380_v48, %v379_v47 }
 0x10d   :  { %4182 = vmatprep.subr.bf16.mxu1 %v4181_v40  ;;  %v364_v57 = vld [vmem:[#allocation11 + $0x48] sm:$0xff]  ;;  %v411_v58 = vld [vmem:[#allocation11 + $0x1c0] sm:$0xff]  ;;  %v4187_v60 = vpack.c.bf16 %v394_v52, %v393_v51  ;;  %v381_v61 = vld [vmem:[#allocation11 + $0xd0] sm:$0xff] }
 0x10e   :  { %4152 = vmatpush3.bf16.msra.mxu0 %v4151_v39  ;;  %v412_v59 = vld [vmem:[#allocation11 + $0x1c8] sm:$0xff]  ;;  %v382_v62 = vld [vmem:[#allocation11 + $0xd8] sm:$0xff]  ;;  %v395_v0 = vld [vmem:[#allocation11 + $0x140] sm:$0xff]  ;;  %v4159_v2 = vpack.c.bf16 %v364_v57, %v363_v54 }
 0x10f   :  { %4154 = vmatprep.subr.bf16.mxu0 %v4153_v43  ;;  %v4189_v63 = vpack.c.bf16 %v412_v59, %v411_v58  ;;  %v396_v1 = vld [vmem:[#allocation11 + $0x148] sm:$0xff]  ;;  %v413_v3 = vld [vmem:[#allocation11 + $0x1d0] sm:$0xff]  ;;  %v414_v4 = vld [vmem:[#allocation11 + $0x1d8] sm:$0xff]  ;;  %v4161_v5 = vpack.c.bf16 %v382_v62, %v381_v61 }
 0x110   :  { %4184 = vmatpush3.bf16.msra.mxu1 %v4183_v46  ;;  %v365_v6 = vld [vmem:[#allocation11 + $0x50] sm:$0xff]  ;;  %v366_v7 = vld [vmem:[#allocation11 + $0x58] sm:$0xff]  ;;  %v4191_v8 = vpack.c.bf16 %v396_v1, %v395_v0  ;;  %v383_v9 = vld [vmem:[#allocation11 + $0xe0] sm:$0xff]  ;;  %v4193_v11 = vpack.c.bf16 %v414_v4, %v413_v3 }
 0x111   :  { %4186 = vmatprep.subr.bf16.mxu1 %v4185_v55  ;;  %v384_v10 = vld [vmem:[#allocation11 + $0xe8] sm:$0xff]  ;;  %v397_v12 = vld [vmem:[#allocation11 + $0x150] sm:$0xff]  ;;  %v398_v13 = vld [vmem:[#allocation11 + $0x158] sm:$0xff]  ;;  %v4163_v14 = vpack.c.bf16 %v366_v7, %v365_v6 }
 0x112   :  { %4156 = vmatpush3.bf16.msra.mxu0 %v4155_v53  ;;  %v415_v15 = vld [vmem:[#allocation11 + $0x1e0] sm:$0xff]  ;;  %v416_v16 = vld [vmem:[#allocation11 + $0x1e8] sm:$0xff]  ;;  %v4165_v17 = vpack.c.bf16 %v384_v10, %v383_v9  ;;  %v4195_v20 = vpack.c.bf16 %v398_v13, %v397_v12  ;;  %v385_v21 = vld [vmem:[#allocation11 + $0xf0] sm:$0xff] }
 0x113   :  { %4158 = vmatprep.subr.bf16.mxu0 %v4157_v56  ;;  %v367_v18 = vld [vmem:[#allocation11 + $0x60] sm:$0xff]  ;;  %v368_v19 = vld [vmem:[#allocation11 + $0x68] sm:$0xff]  ;;  %v386_v22 = vld [vmem:[#allocation11 + $0xf8] sm:$0xff]  ;;  %v4197_v23 = vpack.c.bf16 %v416_v16, %v415_v15 }
 0x114   :  { %4188 = vmatpush3.bf16.msra.mxu1 %v4187_v60  ;;  %v399_v24 = vld [vmem:[#allocation11 + $0x160] sm:$0xff]  ;;  %v400_v25 = vld [vmem:[#allocation11 + $0x168] sm:$0xff]  ;;  %v4167_v26 = vpack.c.bf16 %v368_v19, %v367_v18  ;;  %v417_v27 = vld [vmem:[#allocation11 + $0x1f0] sm:$0xff]  ;;  %v4169_v29 = vpack.c.bf16 %v386_v22, %v385_v21 }
 0x115   :  { %4190 = vmatprep.subr.bf16.mxu1 %v4189_v63  ;;  %v418_v28 = vld [vmem:[#allocation11 + $0x1f8] sm:$0xff]  ;;  %v369_v30 = vld [vmem:[#allocation11 + $0x70] sm:$0xff]  ;;  %v4199_v32 = vpack.c.bf16 %v400_v25, %v399_v24  ;;  %v419_v33 = vld [vmem:[#allocation11 + $0x200] sm:$0xff] }
 0x116   :  { %4160 = vmatpush3.bf16.msra.mxu0 %v4159_v2  ;;  %v370_v31 = vld [vmem:[#allocation11 + $0x78] sm:$0xff]  ;;  %v420_v34 = vld [vmem:[#allocation11 + $0x208] sm:$0xff]  ;;  %v4201_v35 = vpack.c.bf16 %v418_v28, %v417_v27  ;;  %v401_v36 = vld [vmem:[#allocation11 + $0x170] sm:$0xff] }
 0x117   :  { %4162 = vmatprep.subr.bf16.mxu0 %v4161_v5  ;;  %v402_v37 = vld [vmem:[#allocation11 + $0x178] sm:$0xff]  ;;  %v4171_v38 = vpack.c.bf16 %v370_v31, %v369_v30  ;;  %v4205_v39 = vpack.c.bf16 %v420_v34, %v419_v33  ;;  %v421_v63 = vld [vmem:[#allocation11 + $0x210] sm:$0xff]  ;;  %v423_v4 = vld [vmem:[#allocation11 + $0x220] sm:$0xff] }
 0x118   :  { %4192 = vmatpush3.bf16.msra.mxu1 %v4191_v8  ;;  %v4203_v40 = vpack.c.bf16 %v402_v37, %v401_v36  ;;  %v3544_v41 = vld [vmem:[#allocation6] ss:$0 sm:$0xff]  ;;  %v3545_v42 = vld [vmem:[#allocation9] ss:$0 sm:$0xff]  ;;  %v424_v5 = vld [vmem:[#allocation11 + $0x228] sm:$0xff] }
 0x119   :  { %4194 = vmatprep.subr.bf16.mxu1 %v4193_v11  ;;  %v422_v0 = vld [vmem:[#allocation11 + $0x218] sm:$0xff]  ;;  %v4213_v9 = vpack.c.bf16 %v424_v5, %v423_v4  ;;  %v425_v11 = vld [vmem:[#allocation11 + $0x230] sm:$0xff]  ;;  %v427_v18 = vld [vmem:[#allocation11 + $0x240] sm:$0xff] }
 0x11a   :  { %4164 = vmatpush3.bf16.msra.mxu0 %v4163_v14  ;;  %v4209_v3 = vpack.c.bf16 %v422_v0, %v421_v63  ;;  %v426_v12 = vld [vmem:[#allocation11 + $0x238] sm:$0xff]  ;;  %v428_v19 = vld [vmem:[#allocation11 + $0x248] sm:$0xff] }
 0x11b   :  { %4166 = vmatprep.subr.bf16.mxu0 %v4165_v17  ;;  %v4217_v16 = vpack.c.bf16 %v426_v12, %v425_v11  ;;  %v4221_v21 = vpack.c.bf16 %v428_v19, %v427_v18  ;;  %v430_v24 = vld [vmem:[#allocation11 + $0x258] sm:$0xff]  ;;  %v432_v27 = vld [vmem:[#allocation11 + $0x268] sm:$0xff] }
 0x11c   :  { %4196 = vmatpush3.bf16.msra.mxu1 %v4195_v20  ;;  %v434_v30 = vld [vmem:[#allocation11 + $0x278] sm:$0xff]  ;;  %v765_v34 = vld [vmem:[#allocation14 + $0x80] sm:$0xff] }
 0x11d   :  { %4198 = vmatprep.subr.bf16.mxu1 %v4197_v23  ;;  %v429_v23 = vld [vmem:[#allocation11 + $0x250] sm:$0xff]  ;;  %v781_v36 = vld [vmem:[#allocation14 + $0x100] sm:$0xff]  ;;  %v788_v0 = vld [vmem:[#allocation14 + $0x138] sm:$0xff] }
 0x11e   :  { %4168 = vmatpush3.bf16.msra.mxu0 %v4167_v26  ;;  %v4225_v25 = vpack.c.bf16 %v430_v24, %v429_v23  ;;  %v431_v26 = vld [vmem:[#allocation11 + $0x260] sm:$0xff]  ;;  %v787_v63 = vld [vmem:[#allocation14 + $0x130] sm:$0xff] }
 0x11f   :  { %4170 = vmatprep.subr.bf16.mxu0 %v4169_v29  ;;  %v4229_v28 = vpack.c.bf16 %v432_v27, %v431_v26  ;;  %v433_v29 = vld [vmem:[#allocation11 + $0x270] sm:$0xff]  ;;  %v756_v4 = vld [vmem:[#allocation14 + $0x38] sm:$0xff]  ;;  %v757_v11 = vld [vmem:[#allocation14 + $0x40] sm:$0xff] }
 0x120   :  { %4200 = vmatpush3.bf16.msra.mxu1 %v4199_v32  ;;  %v4233_v31 = vpack.c.bf16 %v434_v30, %v433_v29  ;;  %v791_v18 = vld [vmem:[#allocation14 + $0x150] sm:$0xff]  ;;  %v792_v19 = vld [vmem:[#allocation14 + $0x158] sm:$0xff]  ;;  %v777_v24 = vld [vmem:[#allocation14 + $0xe0] sm:$0xff] }
 0x121   :  { %4202 = vmatprep.subr.bf16.mxu1 %v4201_v35  ;;  %v766_v35 = vld [vmem:[#allocation14 + $0x88] sm:$0xff]  ;;  %v793_v27 = vld [vmem:[#allocation14 + $0x160] sm:$0xff] }
 0x122   :  { %4172 = vmatpush3.bf16.msra.mxu0 %v4171_v38  ;;  %v5929_v37 = vpack.c.bf16 %v766_v35, %v765_v34  ;;  %v782_v38 = vld [vmem:[#allocation14 + $0x108] sm:$0xff]  ;;  %v761_v29 = vld [vmem:[#allocation14 + $0x60] sm:$0xff]  ;;  %v780_v34 = vld [vmem:[#allocation14 + $0xf8] sm:$0xff] }
 0x123   :  { %4206 = vmatprep.subr.bf16.mxu0 %v4205_v39 }
 0x124   :  { %4204 = vmatpush3.bf16.msra.mxu1 %v4203_v40  ;;  %v749_v40 = vld [vmem:[#allocation14] sm:$0xff] }
 0x125   :  { %4238 = vmatprep.subr.bf16.mxu1 %v5929_v37 }
 0x180   :  { %v241_v43 = vpop.permute.xlu0 %240  ;;  %v251_v44 = vpop.permute.xlu1 %250 }
 0x181   :  { %v264_v45 = vmul.f32 %v3544_v41, %v241_v43  ;;  %v266_v46 = vmul.f32 %v3544_v41, %v251_v44  ;;  %v767_v43 = vld [vmem:[#allocation14 + $0x90] sm:$0xff]  ;;  %v768_v44 = vld [vmem:[#allocation14 + $0x98] sm:$0xff] }
 0x183   :  { %v275_v47 = vadd.f32 %v3545_v42, %v264_v45  ;;  %v277_v48 = vadd.f32 %v3545_v42, %v266_v46  ;;  %v783_v45 = vld [vmem:[#allocation14 + $0x110] sm:$0xff]  ;;  %v5939_v46 = vpack.c.bf16 %v768_v44, %v767_v43  ;;  %v764_v43 = vld [vmem:[#allocation14 + $0x78] sm:$0xff] }
 0x184   :  { %v246_v49 = vpop.permute.xlu0 %245  ;;  %v256_v50 = vpop.permute.xlu1 %255 }
 0x185   :  { %vm279_vm0 = vcmp.ge.f32.partialorder %v275_v47, 0.0  ;;  %v283_v51 = vmul.f32 0.01, %v275_v47  ;;  %v265_v52 = vmul.f32 %v3544_v41, %v246_v49  ;;  %vm281_vm1 = vcmp.ge.f32.partialorder %v277_v48, 0.0  ;;  %v751_v49 = vld [vmem:[#allocation14 + $0x10] sm:$0xff] }
 0x186   :  { %v285_v53 = vmul.f32 0.01, %v277_v48  ;;  %v267_v54 = vmul.f32 %v3544_v41, %v256_v50  ;;  %v750_v41 = vld [vmem:[#allocation14 + $0x8] sm:$0xff]  ;;  %v752_v50 = vld [vmem:[#allocation14 + $0x18] sm:$0xff] }
 0x187   :  { %v287_v55 = vsel %vm279_vm0, %v275_v47, %v283_v51  ;;  %v276_v56 = vadd.f32 %v3545_v42, %v265_v52  ;;  %v784_v47 = vld [vmem:[#allocation14 + $0x118] sm:$0xff]  ;;  %v769_v51 = vld [vmem:[#allocation14 + $0xa0] sm:$0xff]  ;;  %v5944_v52 = vpack.c.bf16 %v752_v50, %v751_v49 }
 0x188   :  { %291 = vst [vmem:[#allocation2 + $0x8] sm:$0xff] %v287_v55  ;;  %v289_v57 = vsel %vm281_vm1, %v277_v48, %v285_v53  ;;  %v278_v58 = vadd.f32 %v3545_v42, %v267_v54  ;;  %v5934_v42 = vpack.c.bf16 %v750_v41, %v749_v40  ;;  %v5941_v48 = vpack.c.bf16 %v784_v47, %v783_v45  ;;  %v770_v53 = vld [vmem:[#allocation14 + $0xa8] sm:$0xff]  ;;  %v785_v54 = vld [vmem:[#allocation14 + $0x120] sm:$0xff]  ;;  %v763_v40 = vld [vmem:[#allocation14 + $0x70] sm:$0xff] }
 0x189   :  { %vm280_vm2 = vcmp.ge.f32.partialorder %v276_v56, 0.0  ;;  %v284_v59 = vmul.f32 0.01, %v276_v56  ;;  %293 = vst [vmem:[#allocation2 + $0x28] sm:$0xff] %v289_v57  ;;  %v6004_v44 = vpack.c.bf16 %v764_v43, %v763_v40  ;;  %v3546_v50 = vld [vmem:[#allocation12] ss:$0 sm:$0xff] }
 0x18a   :  { %vm282_vm3 = vcmp.ge.f32.partialorder %v278_v58, 0.0  ;;  %v286_v60 = vmul.f32 0.01, %v278_v58 }
 0x18b   :  { %v288_v61 = vsel %vm280_vm2, %v276_v56, %v284_v59  ;;  %v5947_v56 = vpack.c.bf16 %v770_v53, %v769_v51  ;;  %v754_v59 = vld [vmem:[#allocation14 + $0x28] sm:$0xff] }
 0x18c   :  { %292 = vst [vmem:[#allocation2 + $0x10] sm:$0xff] %v288_v61  ;;  %v290_v62 = vsel %vm282_vm3, %v278_v58, %v286_v60  ;;  %v753_v58 = vld [vmem:[#allocation14 + $0x20] sm:$0xff]  ;;  %v771_v60 = vld [vmem:[#allocation14 + $0xb0] sm:$0xff] }
 0x18d   :  { %294 = vst [vmem:[#allocation2 + $0x30] sm:$0xff] %v290_v62 }
 0x18f   :  { %v299_v1 = vld [vmem:[#allocation2 + $0x6] sm:$0xff] }
 0x190   :  { %v295_v2 = vld [vmem:[#allocation2 + $0x4] sm:$0xff]  ;;  %506 = vmatprep.mubr.f32.mxu0 %v299_v1 }
 0x191   :  { %507 = vmatmul.mubr.f32.vlgmr.msra.gmra.mrb[0].mxu0 %v295_v2  ;;  %v319_v10 = vld [vmem:[#allocation2 + $0x26] sm:$0xff]  ;;  %v5959_v2 = vpack.c.bf16 %v788_v0, %v787_v63 }
 0x192   :  { %4208 = vmatpush3.bf16.msra.mxu0 %v4205_v39  ;;  %v315_v14 = vld [vmem:[#allocation2 + $0x24] sm:$0xff]  ;;  %v5931_v39 = vpack.c.bf16 %v782_v38, %v781_v36  ;;  %v795_v36 = vld [vmem:[#allocation14 + $0x170] sm:$0xff] }
 0x193   :  { %v300_v6 = vld [vmem:[#allocation2 + $0xe] sm:$0xff]  ;;  %4210 = vmatprep.subr.bf16.mxu0 %v4209_v3  ;;  %v796_v38 = vld [vmem:[#allocation14 + $0x178] sm:$0xff] }
 0x194   :  { %v307_v7 = vld [vmem:[#allocation2 + $0xa] sm:$0xff]  ;;  %511 = vmatprep.mubr.f32.mxu0 %v300_v6  ;;  %v308_v13 = vld [vmem:[#allocation2 + $0x12] sm:$0xff]  ;;  %v6001_v41 = vpack.c.bf16 %v796_v38, %v795_v36 }
 0x195   :  { %v296_v8 = vld [vmem:[#allocation2 + $0xc] sm:$0xff]  ;;  %591 = vmatprep.mubr.f32.mxu1 %v307_v7  ;;  %v312_v32 = vld [vmem:[#allocation2 + $0x14] sm:$0xff] }
 0x196   :  { %512 = vmatmul.mubr.f32.gmra.mrb[2].mxu0 %v296_v8  ;;  %592 = vmatmul.mubr.f32.vlgmr.msra.gmra.mrb[0].mxu1 %v287_v55  ;;  %v320_v15 = vld [vmem:[#allocation2 + $0x2e] sm:$0xff]  ;;  %v773_v6 = vld [vmem:[#allocation14 + $0xc0] sm:$0xff] }
 0x197   :  { %4212 = vmatpush3.bf16.msra.mxu0 %v4209_v3  ;;  %596 = vmatprep.mubr.f32.mxu1 %v308_v13  ;;  %v327_v17 = vld [vmem:[#allocation2 + $0x2a] sm:$0xff]  ;;  %v328_v22 = vld [vmem:[#allocation2 + $0x32] sm:$0xff] }
 0x198   :  { %516 = vmatprep.mubr.f32.mxu0 %v319_v10  ;;  %4214 = vmatprep.subr.bf16.mxu0 %v4213_v9  ;;  %v316_v20 = vld [vmem:[#allocation2 + $0x2c] sm:$0xff]  ;;  %v332_v33 = vld [vmem:[#allocation2 + $0x34] sm:$0xff] }
 0x199   :  { %4240 = vmatpush3.bf16.msra.mxu1 %v5934_v42  ;;  %v786_v55 = vld [vmem:[#allocation14 + $0x128] sm:$0xff]  ;;  %v755_v3 = vld [vmem:[#allocation14 + $0x30] sm:$0xff] }
 0x19a   :  { %517 = vmatmul.mubr.f32.gmra.mrb[4].mxu0 %v315_v14  ;;  %597 = vmatmul.mubr.f32.gmra.mrb[2].mxu1 %v288_v61  ;;  %v5953_v61 = vpack.c.bf16 %v754_v59, %v753_v58  ;;  %v5963_v5 = vpack.c.bf16 %v756_v4, %v755_v3  ;;  %v774_v7 = vld [vmem:[#allocation14 + $0xc8] sm:$0xff] }
 0x19b   :  { %4216 = vmatpush3.bf16.msra.mxu0 %v4213_v9  ;;  %521 = vmatprep.mubr.f32.mxu0 %v320_v15  ;;  %v789_v9 = vld [vmem:[#allocation14 + $0x140] sm:$0xff]  ;;  %v790_v10 = vld [vmem:[#allocation14 + $0x148] sm:$0xff]  ;;  %v775_v15 = vld [vmem:[#allocation14 + $0xd0] sm:$0xff] }
 0x19c   :  { %4218 = vmatprep.subr.bf16.mxu0 %v4217_v16  ;;  %601 = vmatprep.mubr.f32.mxu1 %v327_v17  ;;  %v5971_v12 = vpack.c.bf16 %v790_v10, %v789_v9  ;;  %v758_v13 = vld [vmem:[#allocation14 + $0x48] sm:$0xff] }
 0x19d   :  { %4242 = vmatprep.subr.bf16.mxu1 %v5939_v46  ;;  %v5974_v14 = vpack.c.bf16 %v758_v13, %v757_v11 }
 0x19e   :  { %522 = vmatmul.mubr.f32.gmra.mrb[6].mxu0 %v316_v20  ;;  %602 = vmatmul.mubr.f32.gmra.mrb[4].mxu1 %v289_v57  ;;  %v5949_v57 = vpack.c.bf16 %v786_v55, %v785_v54 }
 0x19f   :  { %4220 = vmatpush3.bf16.msra.mxu0 %v4217_v16  ;;  %3983 = vmatprep.mubr.f32.mxu0 %v296_v8  ;;  %v5969_v8 = vpack.c.bf16 %v774_v7, %v773_v6  ;;  %v776_v16 = vld [vmem:[#allocation14 + $0xd8] sm:$0xff] }
 0x1a0   :  { %4222 = vmatprep.subr.bf16.mxu0 %v4221_v21  ;;  %606 = vmatprep.mubr.f32.mxu1 %v328_v22  ;;  %v5979_v17 = vpack.c.bf16 %v776_v16, %v775_v15  ;;  %v760_v22 = vld [vmem:[#allocation14 + $0x58] sm:$0xff] }
 0x1a1   :  { %4244 = vmatpush3.bf16.msra.mxu1 %v5944_v52 }
 0x1a2   :  { %607 = vmatmul.mubr.f32.gmra.mrb[6].mxu1 %v290_v62  ;;  %v772_v62 = vld [vmem:[#allocation14 + $0xb8] sm:$0xff]  ;;  %4246 = vmatprep.subr.bf16.mxu1 %v5947_v56 }
 0x1a3   :  { %4224 = vmatpush3.bf16.msra.mxu0 %v4221_v21  ;;  %v5957_v1 = vpack.c.bf16 %v772_v62, %v771_v60  ;;  %v5981_v21 = vpack.c.bf16 %v792_v19, %v791_v18 }
 0x1a4   :  { %4226 = vmatprep.subr.bf16.mxu0 %v4225_v25 }
 0x1a5   :  { %4248 = vmatpush3.bf16.msra.mxu1 %v5953_v61 }
 0x1a6   :  { %4250 = vmatprep.subr.bf16.mxu1 %v5957_v1 }
 0x1a7   :  { %4228 = vmatpush3.bf16.msra.mxu0 %v4225_v25  ;;  %v778_v25 = vld [vmem:[#allocation14 + $0xe8] sm:$0xff] }
 0x1a8   :  { %4230 = vmatprep.subr.bf16.mxu0 %v4229_v28  ;;  %v5989_v26 = vpack.c.bf16 %v778_v25, %v777_v24 }
 0x1a9   :  { %4252 = vmatpush3.bf16.msra.mxu1 %v5963_v5 }
 0x1aa   :  { %4254 = vmatprep.subr.bf16.mxu1 %v5969_v8 }
 0x1ab   :  { %4232 = vmatpush3.bf16.msra.mxu0 %v4229_v28  ;;  %v794_v28 = vld [vmem:[#allocation14 + $0x168] sm:$0xff] }
 0x1ac   :  { %4234 = vmatprep.subr.bf16.mxu0 %v4233_v31  ;;  %v5991_v30 = vpack.c.bf16 %v794_v28, %v793_v27 }
 0x1ad   :  { %4256 = vmatpush3.bf16.msra.mxu1 %v5974_v14 }
 0x1ae   :  { %4258 = vmatprep.subr.bf16.mxu1 %v5979_v17 }
 0x1af   :  { %4236 = vmatpush3.bf16.msra.mxu0 %v4233_v31  ;;  %v762_v31 = vld [vmem:[#allocation14 + $0x68] sm:$0xff] }
 0x1b0   :  { %4270 = vmatprep.subr.bf16.mxu0 %v5931_v39 }
 0x1b2   :  { %3984 = vmatmul.mubr.f32.vlgmr.msra.gmra.mrb[8].mxu0 %v312_v32  ;;  %v5994_v32 = vpack.c.bf16 %v762_v31, %v761_v29 }
 0x1b3   :  { %3986 = vmatprep.mubr.f32.mxu0 %v316_v20  ;;  %4272 = vmatpush3.bf16.msra.mxu0 %v5931_v39  ;;  %v759_v20 = vld [vmem:[#allocation14 + $0x50] sm:$0xff] }
 0x1b4   :  { %4274 = vmatprep.subr.bf16.mxu0 %v5941_v48  ;;  %v5984_v23 = vpack.c.bf16 %v760_v22, %v759_v20 }
 0x1b6   :  { %3987 = vmatmul.mubr.f32.gmra.mrb[10].mxu0 %v332_v33  ;;  %4260 = vmatpush3.bf16.msra.mxu1 %v5984_v23  ;;  %v779_v33 = vld [vmem:[#allocation14 + $0xf0] sm:$0xff] }
 0x1b7   :  { %4276 = vmatpush3.bf16.msra.mxu0 %v5941_v48  ;;  %4262 = vmatprep.subr.bf16.mxu1 %v5989_v26  ;;  %v5999_v35 = vpack.c.bf16 %v780_v34, %v779_v33 }
 0x1b8   :  { %4278 = vmatprep.subr.bf16.mxu0 %v5949_v57 }
 0x1ba   :  { %4264 = vmatpush3.bf16.msra.mxu1 %v5994_v32 }
 0x1bb   :  { %4280 = vmatpush3.bf16.msra.mxu0 %v5949_v57  ;;  %4266 = vmatprep.subr.bf16.mxu1 %v5999_v35 }
 0x1bc   :  { %4282 = vmatprep.subr.bf16.mxu0 %v5959_v2 }
 0x1be   :  { %4268 = vmatpush3.bf16.msra.mxu1 %v6004_v44 }
 0x1bf   :  { %4284 = vmatpush3.bf16.msra.mxu0 %v5959_v2  ;;  %4302 = vmatprep.subr.bf16.mxu1 %v5929_v37 }
 0x1c0   :  { %4286 = vmatprep.subr.bf16.mxu0 %v5971_v12 }
 0x1c3   :  { %4288 = vmatpush3.bf16.msra.mxu0 %v5971_v12 }
 0x1c4   :  { %4290 = vmatprep.subr.bf16.mxu0 %v5981_v21 }
 0x1c7   :  { %4292 = vmatpush3.bf16.msra.mxu0 %v5981_v21 }
 0x1c8   :  { %4294 = vmatprep.subr.bf16.mxu0 %v5991_v30 }
 0x1cb   :  { %4296 = vmatpush3.bf16.msra.mxu0 %v5991_v30 }
 0x1cc   :  { %4298 = vmatprep.subr.bf16.mxu0 %v6001_v41 }
 0x1cf   :  { %4300 = vmatpush3.bf16.msra.mxu0 %v6001_v41 }
 0x1d0   :  { %4334 = vmatprep.subr.bf16.mxu0 %v5931_v39 }
 0x264   :  { %v3584_v45 = vpop.f32.mrb[0].mxu0 }
 0x265   :  { %v3585_v47 = vpop.f32.mrb[1].mxu0 }
 0x266   :  { %v3586_v49 = vadd.f32 %v3585_v47, %v3584_v45 }
 0x268   :  { %v509_v58 = vadd.f32 %v3586_v49, %v3546_v50 }
 0x269   :  { %v3587_v51 = vpop.f32.mrb[2].mxu0  ;;  %v3628_v53 = vpop.f32.mrb[0].mxu1 }
 0x26a   :  { %v3588_v54 = vpop.f32.mrb[3].mxu0  ;;  %v3629_v55 = vpop.f32.mrb[1].mxu1 }
 0x26b   :  { %v3589_v59 = vadd.f32 %v3588_v54, %v3587_v51  ;;  %v3630_v60 = vadd.f32 %v3629_v55, %v3628_v53 }
 0x26d   :  { %v3631_v62 = vpop.f32.mrb[2].mxu1  ;;  %v3590_v63 = vpop.f32.mrb[4].mxu0  ;;  %v594_v0 = vadd.f32 %v3630_v60, %v509_v58  ;;  %v514_v6 = vadd.f32 %v3589_v59, %v3546_v50 }
 0x26e   :  { %v3632_v3 = vpop.f32.mrb[3].mxu1  ;;  %v3591_v4 = vpop.f32.mrb[5].mxu0 }
 0x26f   :  { %v3633_v7 = vadd.f32 %v3632_v3, %v3631_v62  ;;  %v3592_v9 = vadd.f32 %v3591_v4, %v3590_v63 }
 0x271   :  { %v519_v10 = vadd.f32 %v3592_v9, %v3546_v50  ;;  %v3593_v11 = vpop.f32.mrb[6].mxu0  ;;  %v3634_v13 = vpop.f32.mrb[4].mxu1  ;;  %v599_v15 = vadd.f32 %v3633_v7, %v514_v6 }
 0x272   :  { %v3594_v16 = vpop.f32.mrb[7].mxu0  ;;  %v3635_v18 = vpop.f32.mrb[5].mxu1 }
 0x273   :  { %v3595_v19 = vadd.f32 %v3594_v16, %v3593_v11  ;;  %v3636_v20 = vadd.f32 %v3635_v18, %v3634_v13  ;;  %v6059_v11 = vld [vmem:[#allocation15] ss:$0 sm:$0xff] }
 0x275   :  { %v524_v22 = vadd.f32 %v3595_v19, %v3546_v50  ;;  %v3637_v24 = vpop.f32.mrb[6].mxu1  ;;  %v604_v25 = vadd.f32 %v3636_v20, %v519_v10 }
 0x276   :  { %v3638_v27 = vpop.f32.mrb[7].mxu1 }
 0x277   :  { %v3639_v28 = vadd.f32 %v3638_v27, %v3637_v24 }
 0x279   :  { %v609_v29 = vadd.f32 %v3639_v28, %v524_v22 }
 0x285   :  { %v3985_v31 = vpop.f32.mrb[8].mxu0 }
 0x286   :  { %v684_v33 = vadd.f32 %v3985_v31, %v599_v15  ;;  %v678_v34 = vpop.f32.mrb[9].mxu0 }
 0x287   :  { %v679_v36 = vadd.f32 %v678_v34, %v594_v0 }
 0x288   :  { %vm698_vm4 = vcmp.ge.f32.partialorder %v684_v33, 0.0  ;;  %v702_v38 = vmul.f32 0.01, %v684_v33 }
 0x289   :  { %vm697_vm5 = vcmp.ge.f32.partialorder %v679_v36, 0.0  ;;  %v701_v40 = vmul.f32 0.01, %v679_v36  ;;  %v3988_v43 = vpop.f32.mrb[10].mxu0 }
 0x28a   :  { %v6011_v45 = vsel %vm698_vm4, %v684_v33, %v702_v38  ;;  %v694_v47 = vadd.f32 %v3988_v43, %v609_v29  ;;  %v688_v49 = vpop.f32.mrb[11].mxu0 }
 0x28b   :  { %710 = vst [vmem:[#allocation2 + $0x10] sm:$0xff] %v6011_v45  ;;  %v6014_v50 = vsel %vm697_vm5, %v679_v36, %v701_v40  ;;  %v689_v51 = vadd.f32 %v688_v49, %v604_v25 }
 0x28c   :  { %709 = vst [vmem:[#allocation2 + $0x8] sm:$0xff] %v6014_v50  ;;  %vm700_vm6 = vcmp.ge.f32.partialorder %v694_v47, 0.0  ;;  %v704_v53 = vmul.f32 0.01, %v694_v47  ;;  %868 = vmatprep.mubr.f32.mxu1 %v6014_v50 }
 0x28d   :  { %vm699_vm7 = vcmp.ge.f32.partialorder %v689_v51, 0.0  ;;  %v703_v54 = vmul.f32 0.01, %v689_v51 }
 0x28e   :  { %v6018_v55 = vsel %vm700_vm6, %v694_v47, %v704_v53 }
 0x28f   :  { %712 = vst [vmem:[#allocation2 + $0x30] sm:$0xff] %v6018_v55  ;;  %v6021_v58 = vsel %vm699_vm7, %v689_v51, %v703_v54 }
 0x290   :  { %711 = vst [vmem:[#allocation2 + $0x28] sm:$0xff] %v6021_v58 }
 0x292   :  { %v722_v62 = vld [vmem:[#allocation2 + $0x12] sm:$0xff] }
 0x293   :  { %v721_v59 = vld [vmem:[#allocation2 + $0xa] sm:$0xff] }
 0x294   :  { %v713_v60 = vld [vmem:[#allocation2 + $0x6] sm:$0xff]  ;;  %4021 = vmatprep.mubr.f32.mxu0 %v721_v59  ;;  %v714_v0 = vld [vmem:[#allocation2 + $0xe] sm:$0xff] }
 0x295   :  { %869 = vmatmul.mubr.f32.vlgmr.msra.gmra.mrb[8].mxu1 %v713_v60  ;;  %4022 = vmatmul.mubr.f32.vlgmr.msra.gmra.mrb[12].mxu0 %v722_v62 }
 0x296   :  { %873 = vmatprep.mubr.f32.mxu1 %v6011_v45  ;;  %4304 = vmatpush3.bf16.msra.mxu1 %v5934_v42  ;;  %v734_v3 = vld [vmem:[#allocation2 + $0x32] sm:$0xff] }
 0x297   :  { %4336 = vmatpush3.bf16.msra.mxu0 %v5931_v39  ;;  %v733_v63 = vld [vmem:[#allocation2 + $0x2a] sm:$0xff]  ;;  %4306 = vmatprep.subr.bf16.mxu1 %v5939_v46 }
 0x298   :  { %4338 = vmatprep.subr.bf16.mxu0 %v5941_v48  ;;  %4024 = vmatprep.mubr.f32.mxu0 %v733_v63  ;;  %v725_v4 = vld [vmem:[#allocation2 + $0x26] sm:$0xff]  ;;  %v726_v6 = vld [vmem:[#allocation2 + $0x2e] sm:$0xff] }
 0x299   :  { %874 = vmatmul.mubr.f32.gmra.mrb[10].mxu1 %v714_v0  ;;  %4025 = vmatmul.mubr.f32.gmra.mrb[14].mxu0 %v734_v3 }
 0x29a   :  { %878 = vmatprep.mubr.f32.mxu1 %v6021_v58  ;;  %4308 = vmatpush3.bf16.msra.mxu1 %v5944_v52 }
 0x29b   :  { %4340 = vmatpush3.bf16.msra.mxu0 %v5941_v48  ;;  %4310 = vmatprep.subr.bf16.mxu1 %v5947_v56 }
 0x29c   :  { %4342 = vmatprep.subr.bf16.mxu0 %v5949_v57 }
 0x29d   :  { %879 = vmatmul.mubr.f32.gmra.mrb[12].mxu1 %v725_v4 }
 0x29e   :  { %883 = vmatprep.mubr.f32.mxu1 %v6018_v55  ;;  %4312 = vmatpush3.bf16.msra.mxu1 %v5953_v61 }
 0x29f   :  { %4344 = vmatpush3.bf16.msra.mxu0 %v5949_v57  ;;  %4314 = vmatprep.subr.bf16.mxu1 %v5957_v1 }
 0x2a0   :  { %4346 = vmatprep.subr.bf16.mxu0 %v5959_v2 }
 0x2a1   :  { %884 = vmatmul.mubr.f32.gmra.mrb[14].mxu1 %v726_v6 }
 0x2a2   :  { %4316 = vmatpush3.bf16.msra.mxu1 %v5963_v5 }
 0x2a3   :  { %4348 = vmatpush3.bf16.msra.mxu0 %v5959_v2  ;;  %4318 = vmatprep.subr.bf16.mxu1 %v5969_v8 }
 0x2a4   :  { %4350 = vmatprep.subr.bf16.mxu0 %v5971_v12 }
 0x2a6   :  { %4320 = vmatpush3.bf16.msra.mxu1 %v5974_v14 }
 0x2a7   :  { %4352 = vmatpush3.bf16.msra.mxu0 %v5971_v12  ;;  %4322 = vmatprep.subr.bf16.mxu1 %v5979_v17 }
 0x2a8   :  { %4354 = vmatprep.subr.bf16.mxu0 %v5981_v21 }
 0x2aa   :  { %4324 = vmatpush3.bf16.msra.mxu1 %v5984_v23 }
 0x2ab   :  { %4356 = vmatpush3.bf16.msra.mxu0 %v5981_v21  ;;  %4326 = vmatprep.subr.bf16.mxu1 %v5989_v26 }
 0x2ac   :  { %4358 = vmatprep.subr.bf16.mxu0 %v5991_v30 }
 0x2ae   :  { %4328 = vmatpush3.bf16.msra.mxu1 %v5994_v32 }
 0x2af   :  { %4360 = vmatpush3.bf16.msra.mxu0 %v5991_v30  ;;  %4330 = vmatprep.subr.bf16.mxu1 %v5999_v35 }
 0x2b0   :  { %4362 = vmatprep.subr.bf16.mxu0 %v6001_v41 }
 0x2b2   :  { %4332 = vmatpush3.bf16.msra.mxu1 %v6004_v44 }
 0x2b3   :  { %4364 = vmatpush3.bf16.msra.mxu0 %v6001_v41  ;;  %4366 = vmatprep.subr.bf16.mxu1 %v5929_v37 }
 0x2b4   :  { %4398 = vmatprep.subr.bf16.mxu0 %v5931_v39 }
 0x368   :  { %v3692_v7 = vpop.f32.mrb[8].mxu1  ;;  %v4023_v9 = vpop.f32.mrb[12].mxu0 }
 0x369   :  { %v3693_v10 = vpop.f32.mrb[9].mxu1  ;;  %v955_v15 = vpop.f32.mrb[13].mxu0 }
 0x36a   :  { %v3694_v13 = vadd.f32 %v3693_v10, %v3692_v7 }
 0x36c   :  { %v871_v16 = vadd.f32 %v3694_v13, %v6059_v11  ;;  %v3695_v18 = vpop.f32.mrb[10].mxu1  ;;  %v4026_v19 = vpop.f32.mrb[14].mxu0 }
 0x36d   :  { %v3696_v20 = vpop.f32.mrb[11].mxu1  ;;  %v965_v25 = vpop.f32.mrb[15].mxu0 }
 0x36e   :  { %v956_v22 = vadd.f32 %v955_v15, %v871_v16  ;;  %v3697_v24 = vadd.f32 %v3696_v20, %v3695_v18 }
 0x370   :  { %vm974_vm8 = vcmp.ge.f32.partialorder %v956_v22, 0.0  ;;  %v978_v27 = vmul.f32 0.01, %v956_v22  ;;  %v876_v37 = vadd.f32 %v3697_v24, %v6059_v11  ;;  %v3698_v28 = vpop.f32.mrb[12].mxu1 }
 0x371   :  { %v3699_v29 = vpop.f32.mrb[13].mxu1 }
 0x372   :  { %v982_v31 = vsel %vm974_vm8, %v956_v22, %v978_v27  ;;  %v961_v33 = vadd.f32 %v4023_v9, %v876_v37  ;;  %v3700_v34 = vadd.f32 %v3699_v29, %v3698_v28 }
 0x373   :  { %v6064_v36 = vadd.f32 %v982_v31, %v6014_v50  ;;  %v1604_v31 = vld [vmem:[#allocation17] sm:$0xff] }
 0x374   :  { %vm975_vm9 = vcmp.ge.f32.partialorder %v961_v33, 0.0  ;;  %v979_v38 = vmul.f32 0.01, %v961_v33  ;;  %v881_v40 = vadd.f32 %v3700_v34, %v6059_v11  ;;  %v3701_v43 = vpop.f32.mrb[14].mxu1 }
 0x375   :  { %994 = vst [vmem:[#allocation2 + $0x8] sm:$0xff] %v6064_v36  ;;  %v3702_v47 = vpop.f32.mrb[15].mxu1  ;;  %1153 = vmatprep.mubr.f32.mxu1 %v6064_v36 }
 0x376   :  { %v983_v49 = vsel %vm975_vm9, %v961_v33, %v979_v38  ;;  %v966_v51 = vadd.f32 %v965_v25, %v881_v40  ;;  %v3703_v53 = vadd.f32 %v3702_v47, %v3701_v43  ;;  %v1605_v33 = vld [vmem:[#allocation17 + $0x8] sm:$0xff]  ;;  %v1623_v38 = vld [vmem:[#allocation17 + $0x98] sm:$0xff] }
 0x377   :  { %v6070_v54 = vadd.f32 %v983_v49, %v6011_v45  ;;  %v4431_v47 = vpack.c.bf16 %v1605_v33, %v1604_v31  ;;  %v1633_v31 = vld [vmem:[#allocation17 + $0xe8] sm:$0xff] }
 0x378   :  { %vm976_vm10 = vcmp.ge.f32.partialorder %v966_v51, 0.0  ;;  %v980_v59 = vmul.f32 0.01, %v966_v51  ;;  %v886_v50 = vadd.f32 %v3703_v53, %v6059_v11 }
 0x379   :  { %995 = vst [vmem:[#allocation2 + $0x10] sm:$0xff] %v6070_v54 }
 0x37a   :  { %v984_v60 = vsel %vm976_vm10, %v966_v51, %v980_v59  ;;  %v971_v62 = vadd.f32 %v4026_v19, %v886_v50  ;;  %v1607_v59 = vld [vmem:[#allocation17 + $0x18] sm:$0xff] }
 0x37b   :  { %v6075_v63 = vadd.f32 %v984_v60, %v6021_v58  ;;  %v1624_v60 = vld [vmem:[#allocation17 + $0xa0] sm:$0xff] }
 0x37c   :  { %vm977_vm11 = vcmp.ge.f32.partialorder %v971_v62, 0.0  ;;  %v981_v0 = vmul.f32 0.01, %v971_v62  ;;  %v998_v3 = vld [vmem:[#allocation2 + $0x6] sm:$0xff] }
 0x37d   :  { %996 = vst [vmem:[#allocation2 + $0x28] sm:$0xff] %v6075_v63  ;;  %1154 = vmatmul.mubr.f32.vlgmr.msra.gmra.mrb[16].mxu1 %v998_v3  ;;  %v1638_v3 = vld [vmem:[#allocation17 + $0x110] sm:$0xff] }
 0x37e   :  { %v985_v4 = vsel %vm977_vm11, %v971_v62, %v981_v0  ;;  %1158 = vmatprep.mubr.f32.mxu1 %v6070_v54  ;;  %4368 = vmatpush3.bf16.msra.mxu1 %v5934_v42  ;;  %v1625_v62 = vld [vmem:[#allocation17 + $0xa8] sm:$0xff] }
 0x37f   :  { %v6081_v45 = vadd.f32 %v985_v4, %v6018_v55  ;;  %4370 = vmatprep.subr.bf16.mxu1 %v5939_v46  ;;  %v1639_v4 = vld [vmem:[#allocation17 + $0x118] sm:$0xff] }
 0x380   :  { %v1006_v6 = vld [vmem:[#allocation2 + $0xa] sm:$0xff]  ;;  %v1007_v58 = vld [vmem:[#allocation2 + $0x12] sm:$0xff] }
 0x381   :  { %v999_v7 = vld [vmem:[#allocation2 + $0xe] sm:$0xff]  ;;  %997 = vst [vmem:[#allocation2 + $0x30] sm:$0xff] %v6081_v45  ;;  %4059 = vmatprep.mubr.f32.mxu0 %v1006_v6 }
 0x382   :  { %1159 = vmatmul.mubr.f32.gmra.mrb[18].mxu1 %v999_v7  ;;  %4060 = vmatmul.mubr.f32.vlgmr.msra.gmra.mrb[16].mxu0 %v1007_v58  ;;  %v1608_v7 = vld [vmem:[#allocation17 + $0x20] sm:$0xff]  ;;  %v1609_v58 = vld [vmem:[#allocation17 + $0x28] sm:$0xff] }
 0x383   :  { %1163 = vmatprep.mubr.f32.mxu1 %v6075_v63  ;;  %4372 = vmatpush3.bf16.msra.mxu1 %v5944_v52 }
 0x384   :  { %4400 = vmatpush3.bf16.msra.mxu0 %v5931_v39  ;;  %v1010_v42 = vld [vmem:[#allocation2 + $0x26] sm:$0xff]  ;;  %4374 = vmatprep.subr.bf16.mxu1 %v5947_v56 }
 0x385   :  { %4402 = vmatprep.subr.bf16.mxu0 %v5941_v48  ;;  %v1620_v39 = vld [vmem:[#allocation17 + $0x80] sm:$0xff] }
 0x386   :  { %1164 = vmatmul.mubr.f32.gmra.mrb[20].mxu1 %v1010_v42  ;;  %v1636_v56 = vld [vmem:[#allocation17 + $0x100] sm:$0xff] }
 0x387   :  { %1168 = vmatprep.mubr.f32.mxu1 %v6081_v45  ;;  %4376 = vmatpush3.bf16.msra.mxu1 %v5953_v61 }
 0x388   :  { %4404 = vmatpush3.bf16.msra.mxu0 %v5941_v48  ;;  %v1018_v46 = vld [vmem:[#allocation2 + $0x2a] sm:$0xff]  ;;  %v1019_v9 = vld [vmem:[#allocation2 + $0x32] sm:$0xff]  ;;  %4378 = vmatprep.subr.bf16.mxu1 %v5957_v1 }
 0x389   :  { %v1011_v55 = vld [vmem:[#allocation2 + $0x2e] sm:$0xff]  ;;  %4406 = vmatprep.subr.bf16.mxu0 %v5949_v57  ;;  %4062 = vmatprep.mubr.f32.mxu0 %v1018_v46 }
 0x38a   :  { %1169 = vmatmul.mubr.f32.gmra.mrb[22].mxu1 %v1011_v55  ;;  %4063 = vmatmul.mubr.f32.gmra.mrb[18].mxu0 %v1019_v9  ;;  %v1621_v48 = vld [vmem:[#allocation17 + $0x88] sm:$0xff]  ;;  %v4437_v9 = vpack.c.bf16 %v1625_v62, %v1624_v60  ;;  %v1618_v60 = vld [vmem:[#allocation17 + $0x70] sm:$0xff] }
 0x38b   :  { %4380 = vmatpush3.bf16.msra.mxu1 %v5963_v5  ;;  %v4429_v52 = vpack.c.bf16 %v1621_v48, %v1620_v39  ;;  %v4465_v39 = vpack.c.bf16 %v1639_v4, %v1638_v3  ;;  %v1650_v4 = vld [vmem:[#allocation17 + $0x170] sm:$0xff] }
 0x38c   :  { %4408 = vmatpush3.bf16.msra.mxu0 %v5949_v57  ;;  %4382 = vmatprep.subr.bf16.mxu1 %v5969_v8  ;;  %v1637_v57 = vld [vmem:[#allocation17 + $0x108] sm:$0xff] }
 0x38d   :  { %4410 = vmatprep.subr.bf16.mxu0 %v5959_v2  ;;  %v6115_v61 = vpack.c.bf16 %v1637_v57, %v1636_v56 }
 0x38f   :  { %4384 = vmatpush3.bf16.msra.mxu1 %v5974_v14 }
 0x390   :  { %4412 = vmatpush3.bf16.msra.mxu0 %v5959_v2  ;;  %4386 = vmatprep.subr.bf16.mxu1 %v5979_v17 }
 0x391   :  { %4414 = vmatprep.subr.bf16.mxu0 %v5971_v12 }
 0x393   :  { %4388 = vmatpush3.bf16.msra.mxu1 %v5984_v23 }
 0x394   :  { %4416 = vmatpush3.bf16.msra.mxu0 %v5971_v12  ;;  %4390 = vmatprep.subr.bf16.mxu1 %v5989_v26 }
 0x395   :  { %4418 = vmatprep.subr.bf16.mxu0 %v5981_v21 }
 0x397   :  { %4392 = vmatpush3.bf16.msra.mxu1 %v5994_v32 }
 0x398   :  { %4420 = vmatpush3.bf16.msra.mxu0 %v5981_v21  ;;  %4394 = vmatprep.subr.bf16.mxu1 %v5999_v35 }
 0x399   :  { %4422 = vmatprep.subr.bf16.mxu0 %v5991_v30 }
 0x39b   :  { %4396 = vmatpush3.bf16.msra.mxu1 %v6004_v44 }
 0x39c   :  { %4424 = vmatpush3.bf16.msra.mxu0 %v5991_v30  ;;  %4430 = vmatprep.subr.bf16.mxu1 %v4429_v52 }
 0x39d   :  { %4426 = vmatprep.subr.bf16.mxu0 %v6001_v41 }
 0x3a0   :  { %4428 = vmatpush3.bf16.msra.mxu0 %v6001_v41 }
 0x3a1   :  { %4462 = vmatprep.subr.bf16.mxu0 %v6115_v61 }
 0x450   :  { %v3756_v1 = vpop.f32.mrb[16].mxu1 }
 0x451   :  { %v3757_v2 = vpop.f32.mrb[17].mxu1 }
 0x452   :  { %v3758_v5 = vadd.f32 %v3757_v2, %v3756_v1  ;;  %v1626_v1 = vld [vmem:[#allocation17 + $0xb0] sm:$0xff]  ;;  %v1627_v2 = vld [vmem:[#allocation17 + $0xb8] sm:$0xff] }
 0x454   :  { %v1156_v12 = vadd.f32 %v3758_v5, %v6059_v11  ;;  %v4441_v5 = vpack.c.bf16 %v1627_v2, %v1626_v1 }
 0x455   :  { %v3759_v8 = vpop.f32.mrb[18].mxu1  ;;  %v4061_v14 = vpop.f32.mrb[16].mxu0 }
 0x456   :  { %v3760_v17 = vpop.f32.mrb[19].mxu1  ;;  %v1240_v23 = vpop.f32.mrb[17].mxu0 }
 0x457   :  { %v3761_v21 = vadd.f32 %v3760_v17, %v3759_v8  ;;  %v1241_v26 = vadd.f32 %v1240_v23, %v1156_v12  ;;  %v1640_v8 = vld [vmem:[#allocation17 + $0x120] sm:$0xff]  ;;  %v1641_v12 = vld [vmem:[#allocation17 + $0x128] sm:$0xff]  ;;  %v1611_v17 = vld [vmem:[#allocation17 + $0x38] sm:$0xff] }
 0x458   :  { %v1628_v23 = vld [vmem:[#allocation17 + $0xc0] sm:$0xff] }
 0x459   :  { %v1161_v30 = vadd.f32 %v3761_v21, %v6059_v11  ;;  %v3762_v32 = vpop.f32.mrb[20].mxu1  ;;  %vm1259_vm12 = vcmp.ge.f32.partialorder %v1241_v26, 0.0  ;;  %v1263_v35 = vmul.f32 0.01, %v1241_v26 }
 0x45a   :  { %v3763_v41 = vpop.f32.mrb[21].mxu1 }
 0x45b   :  { %v1246_v44 = vadd.f32 %v4061_v14, %v1161_v30  ;;  %v3764_v10 = vadd.f32 %v3763_v41, %v3762_v32  ;;  %v1267_v13 = vsel %vm1259_vm12, %v1241_v26, %v1263_v35  ;;  %v4469_v14 = vpack.c.bf16 %v1641_v12, %v1640_v8  ;;  %v1629_v26 = vld [vmem:[#allocation17 + $0xc8] sm:$0xff]  ;;  %v1642_v32 = vld [vmem:[#allocation17 + $0x130] sm:$0xff]  ;;  %v1643_v35 = vld [vmem:[#allocation17 + $0x138] sm:$0xff] }
 0x45c   :  { %v6121_v16 = vadd.f32 %v1267_v13, %v6064_v36  ;;  %v1622_v36 = vld [vmem:[#allocation17 + $0x90] sm:$0xff]  ;;  %v4445_v30 = vpack.c.bf16 %v1629_v26, %v1628_v23  ;;  %v1612_v41 = vld [vmem:[#allocation17 + $0x40] sm:$0xff] }
 0x45d   :  { %vm1260_vm13 = vcmp.ge.f32.partialorder %v1246_v44, 0.0  ;;  %v1264_v15 = vmul.f32 0.01, %v1246_v44  ;;  %v3765_v18 = vpop.f32.mrb[22].mxu1  ;;  %v1166_v19 = vadd.f32 %v3764_v10, %v6059_v11  ;;  %v4064_v20 = vpop.f32.mrb[18].mxu0  ;;  %v4433_v53 = vpack.c.bf16 %v1623_v38, %v1622_v36  ;;  %v1613_v10 = vld [vmem:[#allocation17 + $0x48] sm:$0xff] }
 0x45e   :  { %v3766_v22 = vpop.f32.mrb[23].mxu1  ;;  %1279 = vst [vmem:[#allocation2 + $0x8] sm:$0xff] %v6121_v16  ;;  %v1250_v27 = vpop.f32.mrb[19].mxu0  ;;  %1438 = vmatprep.mubr.f32.mxu1 %v6121_v16  ;;  %v4447_v13 = vpack.c.bf16 %v1613_v10, %v1612_v41  ;;  %v1647_v36 = vld [vmem:[#allocation17 + $0x158] sm:$0xff]  ;;  %v1616_v38 = vld [vmem:[#allocation17 + $0x60] sm:$0xff] }
 0x45f   :  { %v1268_v24 = vsel %vm1260_vm13, %v1246_v44, %v1264_v15  ;;  %v3767_v25 = vadd.f32 %v3766_v22, %v3765_v18  ;;  %v1251_v28 = vadd.f32 %v1250_v27, %v1166_v19  ;;  %v4473_v44 = vpack.c.bf16 %v1643_v35, %v1642_v32  ;;  %v1630_v15 = vld [vmem:[#allocation17 + $0xd0] sm:$0xff]  ;;  %v1631_v18 = vld [vmem:[#allocation17 + $0xd8] sm:$0xff]  ;;  %v1645_v22 = vld [vmem:[#allocation17 + $0x148] sm:$0xff] }
 0x460   :  { %v6127_v37 = vadd.f32 %v1268_v24, %v6070_v54  ;;  %v1606_v54 = vld [vmem:[#allocation17 + $0x10] sm:$0xff]  ;;  %v4449_v19 = vpack.c.bf16 %v1631_v18, %v1630_v15  ;;  %v1615_v27 = vld [vmem:[#allocation17 + $0x58] sm:$0xff] }
 0x461   :  { %v1171_v29 = vadd.f32 %v3767_v25, %v6059_v11  ;;  %vm1261_vm14 = vcmp.ge.f32.partialorder %v1251_v28, 0.0  ;;  %v1265_v34 = vmul.f32 0.01, %v1251_v28  ;;  %v1614_v24 = vld [vmem:[#allocation17 + $0x50] sm:$0xff] }
 0x462   :  { %1280 = vst [vmem:[#allocation2 + $0x10] sm:$0xff] %v6127_v37 }
 0x463   :  { %v1256_v40 = vadd.f32 %v4064_v20, %v1171_v29  ;;  %v1269_v43 = vsel %vm1261_vm14, %v1251_v28, %v1265_v34  ;;  %v1644_v20 = vld [vmem:[#allocation17 + $0x140] sm:$0xff]  ;;  %v4451_v28 = vpack.c.bf16 %v1615_v27, %v1614_v24  ;;  %v1646_v34 = vld [vmem:[#allocation17 + $0x150] sm:$0xff] }
 0x464   :  { %v6132_v51 = vadd.f32 %v1269_v43, %v6075_v63  ;;  %v4435_v63 = vpack.c.bf16 %v1607_v59, %v1606_v54  ;;  %v4477_v25 = vpack.c.bf16 %v1645_v22, %v1644_v20  ;;  %v1632_v29 = vld [vmem:[#allocation17 + $0xe0] sm:$0xff]  ;;  %v1617_v43 = vld [vmem:[#allocation17 + $0x68] sm:$0xff] }
 0x465   :  { %vm1262_vm15 = vcmp.ge.f32.partialorder %v1256_v40, 0.0  ;;  %v1266_v49 = vmul.f32 0.01, %v1256_v40  ;;  %v1283_v50 = vld [vmem:[#allocation2 + $0x6] sm:$0xff]  ;;  %v4453_v33 = vpack.c.bf16 %v1633_v31, %v1632_v29 }
 0x466   :  { %1281 = vst [vmem:[#allocation2 + $0x28] sm:$0xff] %v6132_v51  ;;  %1439 = vmatmul.mubr.f32.vlgmr.msra.gmra.mrb[24].mxu1 %v1283_v50  ;;  %v1648_v59 = vld [vmem:[#allocation17 + $0x160] sm:$0xff]  ;;  %v1649_v50 = vld [vmem:[#allocation17 + $0x168] sm:$0xff] }
 0x467   :  { %v1270_v0 = vsel %vm1262_vm15, %v1256_v40, %v1266_v49  ;;  %1443 = vmatprep.mubr.f32.mxu1 %v6127_v37  ;;  %4432 = vmatpush3.bf16.msra.mxu1 %v4431_v47  ;;  %v4481_v40 = vpack.c.bf16 %v1647_v36, %v1646_v34  ;;  %v4455_v47 = vpack.c.bf16 %v1617_v43, %v1616_v38  ;;  %v1634_v49 = vld [vmem:[#allocation17 + $0xf0] sm:$0xff]  ;;  %v2041_v24 = vld [vmem:[#allocation20 + $0x400] sm:$0xff]  ;;  %v2048_v29 = vld [vmem:[#allocation20 + $0x438] sm:$0xff] }
 0x468   :  { %v6136_v6 = vadd.f32 %v1270_v0, %v6081_v45  ;;  %4434 = vmatprep.subr.bf16.mxu1 %v4433_v53  ;;  %v4439_v45 = vpack.c.bf16 %v1609_v58, %v1608_v7  ;;  %v1635_v53 = vld [vmem:[#allocation17 + $0xf8] sm:$0xff]  ;;  %v4485_v62 = vpack.c.bf16 %v1649_v50, %v1648_v59  ;;  %v1914_v58 = vld [vmem:[#allocation20 + $0x8] sm:$0xff]  ;;  %v1913_v38 = vld [vmem:[#allocation20] sm:$0xff] }
 0x469   :  { %v1291_v42 = vld [vmem:[#allocation2 + $0xa] sm:$0xff]  ;;  %v1292_v55 = vld [vmem:[#allocation2 + $0x12] sm:$0xff]  ;;  %v4457_v54 = vpack.c.bf16 %v1635_v53, %v1634_v49  ;;  %v1619_v0 = vld [vmem:[#allocation17 + $0x78] sm:$0xff] }
 0x46a   :  { %v1284_v46 = vld [vmem:[#allocation2 + $0xe] sm:$0xff]  ;;  %1282 = vst [vmem:[#allocation2 + $0x30] sm:$0xff] %v6136_v6  ;;  %4097 = vmatprep.mubr.f32.mxu0 %v1291_v42  ;;  %v4459_v3 = vpack.c.bf16 %v1619_v0, %v1618_v60  ;;  %v1916_v42 = vld [vmem:[#allocation20 + $0x18] sm:$0xff]  ;;  %v1919_v0 = vld [vmem:[#allocation20 + $0x30] sm:$0xff] }
 0x46b   :  { %1444 = vmatmul.mubr.f32.gmra.mrb[26].mxu1 %v1284_v46  ;;  %4098 = vmatmul.mubr.f32.vlgmr.msra.gmra.mrb[20].mxu0 %v1292_v55  ;;  %v2042_v46 = vld [vmem:[#allocation20 + $0x408] sm:$0xff]  ;;  %v4493_v55 = vpack.c.bf16 %v1916_v42, %v1914_v58  ;;  %v2045_v53 = vld [vmem:[#allocation20 + $0x420] sm:$0xff]  ;;  %v2052_v50 = vld [vmem:[#allocation20 + $0x458] sm:$0xff] }
 0x46c   :  { %1448 = vmatprep.mubr.f32.mxu1 %v6132_v51  ;;  %4436 = vmatpush3.bf16.msra.mxu1 %v4435_v63  ;;  %v1651_v63 = vld [vmem:[#allocation17 + $0x178] sm:$0xff]  ;;  %v1918_v43 = vld [vmem:[#allocation20 + $0x28] sm:$0xff] }
 0x46d   :  { %4464 = vmatpush3.bf16.msra.mxu0 %v6115_v61  ;;  %4438 = vmatprep.subr.bf16.mxu1 %v4437_v9  ;;  %v1295_v48 = vld [vmem:[#allocation2 + $0x26] sm:$0xff]  ;;  %v1610_v61 = vld [vmem:[#allocation17 + $0x30] sm:$0xff]  ;;  %v4489_v7 = vpack.c.bf16 %v1651_v63, %v1650_v4 }
 0x46e   :  { %4466 = vmatprep.subr.bf16.mxu0 %v4465_v39  ;;  %v4443_v21 = vpack.c.bf16 %v1611_v17, %v1610_v61  ;;  %v2044_v9 = vld [vmem:[#allocation20 + $0x418] sm:$0xff]  ;;  %v2050_v59 = vld [vmem:[#allocation20 + $0x448] sm:$0xff]  ;;  %v2051_v58 = vld [vmem:[#allocation20 + $0x450] sm:$0xff] }
 0x46f   :  { %1449 = vmatmul.mubr.f32.gmra.mrb[28].mxu1 %v1295_v48  ;;  %v1922_v63 = vld [vmem:[#allocation20 + $0x48] sm:$0xff] }
 0x470   :  { %1453 = vmatprep.mubr.f32.mxu1 %v6136_v6  ;;  %4440 = vmatpush3.bf16.msra.mxu1 %v4439_v45 }
 0x471   :  { %v1303_v52 = vld [vmem:[#allocation2 + $0x2a] sm:$0xff]  ;;  %v1304_v57 = vld [vmem:[#allocation2 + $0x32] sm:$0xff]  ;;  %4468 = vmatpush3.bf16.msra.mxu0 %v4465_v39  ;;  %4442 = vmatprep.subr.bf16.mxu1 %v4441_v5  ;;  %v4621_v39 = vpack.c.bf16 %v2044_v9, %v2042_v46 }
 0x472   :  { %v1296_v56 = vld [vmem:[#allocation2 + $0x2e] sm:$0xff]  ;;  %4100 = vmatprep.mubr.f32.mxu0 %v1303_v52  ;;  %4470 = vmatprep.subr.bf16.mxu0 %v4469_v14 }
 0x473   :  { %1454 = vmatmul.mubr.f32.gmra.mrb[30].mxu1 %v1296_v56  ;;  %4101 = vmatmul.mubr.f32.gmra.mrb[22].mxu0 %v1304_v57 }
 0x474   :  { %4444 = vmatpush3.bf16.msra.mxu1 %v4443_v21 }
 0x475   :  { %4472 = vmatpush3.bf16.msra.mxu0 %v4469_v14  ;;  %4446 = vmatprep.subr.bf16.mxu1 %v4445_v30 }
 0x476   :  { %4474 = vmatprep.subr.bf16.mxu0 %v4473_v44 }
 0x478   :  { %4448 = vmatpush3.bf16.msra.mxu1 %v4447_v13 }
 0x479   :  { %4476 = vmatpush3.bf16.msra.mxu0 %v4473_v44  ;;  %4450 = vmatprep.subr.bf16.mxu1 %v4449_v19 }
 0x47a   :  { %4478 = vmatprep.subr.bf16.mxu0 %v4477_v25 }
 0x47c   :  { %4452 = vmatpush3.bf16.msra.mxu1 %v4451_v28  ;;  %v2046_v28 = vld [vmem:[#allocation20 + $0x428] sm:$0xff] }
 0x47d   :  { %4480 = vmatpush3.bf16.msra.mxu0 %v4477_v25  ;;  %4454 = vmatprep.subr.bf16.mxu1 %v4453_v33  ;;  %v2043_v25 = vld [vmem:[#allocation20 + $0x410] sm:$0xff] }
 0x47e   :  { %4482 = vmatprep.subr.bf16.mxu0 %v4481_v40  ;;  %v4623_v34 = vpack.c.bf16 %v2043_v25, %v2041_v24  ;;  %v2062_v24 = vld [vmem:[#allocation20 + $0x4a8] sm:$0xff]  ;;  %v2064_v25 = vld [vmem:[#allocation20 + $0x4b8] sm:$0xff] }
 0x480   :  { %4456 = vmatpush3.bf16.msra.mxu1 %v4455_v47  ;;  %v4625_v47 = vpack.c.bf16 %v2048_v29, %v2046_v28  ;;  %v1931_v28 = vld [vmem:[#allocation20 + $0x90] sm:$0xff] }
 0x481   :  { %4484 = vmatpush3.bf16.msra.mxu0 %v4481_v40  ;;  %4458 = vmatprep.subr.bf16.mxu1 %v4457_v54  ;;  %v1915_v40 = vld [vmem:[#allocation20 + $0x10] sm:$0xff] }
 0x482   :  { %4486 = vmatprep.subr.bf16.mxu0 %v4485_v62  ;;  %v2047_v54 = vld [vmem:[#allocation20 + $0x430] sm:$0xff] }
 0x483   :  { %v4627_v4 = vpack.c.bf16 %v2047_v54, %v2045_v53  ;;  %v1933_v54 = vld [vmem:[#allocation20 + $0xa0] sm:$0xff] }
 0x484   :  { %4460 = vmatpush3.bf16.msra.mxu1 %v4459_v3  ;;  %v4495_v3 = vpack.c.bf16 %v1915_v40, %v1913_v38  ;;  %v2063_v38 = vld [vmem:[#allocation20 + $0x4b0] sm:$0xff]  ;;  %v1936_v40 = vld [vmem:[#allocation20 + $0xb8] sm:$0xff] }
 0x485   :  { %4488 = vmatpush3.bf16.msra.mxu0 %v4485_v62  ;;  %4622 = vmatprep.subr.bf16.mxu1 %v4621_v39  ;;  %v1917_v62 = vld [vmem:[#allocation20 + $0x20] sm:$0xff]  ;;  %v4629_v39 = vpack.c.bf16 %v2052_v50, %v2050_v59  ;;  %v1938_v50 = vld [vmem:[#allocation20 + $0xc8] sm:$0xff] }
 0x486   :  { %4490 = vmatprep.subr.bf16.mxu0 %v4489_v7 }
 0x489   :  { %4492 = vmatpush3.bf16.msra.mxu0 %v4489_v7  ;;  %v2049_v7 = vld [vmem:[#allocation20 + $0x440] sm:$0xff] }
 0x48a   :  { %4494 = vmatprep.subr.bf16.mxu0 %v4493_v55 }
 0x539   :  { %v3820_v45 = vpop.f32.mrb[24].mxu1 }
 0x53a   :  { %v3821_v48 = vpop.f32.mrb[25].mxu1 }
 0x53b   :  { %v3822_v52 = vadd.f32 %v3821_v48, %v3820_v45  ;;  %v1924_v45 = vld [vmem:[#allocation20 + $0x58] sm:$0xff]  ;;  %v2054_v48 = vld [vmem:[#allocation20 + $0x468] sm:$0xff] }
 0x53d   :  { %v1441_v1 = vadd.f32 %v3822_v52, %v6059_v11  ;;  %v2056_v52 = vld [vmem:[#allocation20 + $0x478] sm:$0xff] }
 0x53e   :  { %v3823_v56 = vpop.f32.mrb[26].mxu1  ;;  %v4099_v57 = vpop.f32.mrb[20].mxu0 }
 0x53f   :  { %v3824_v2 = vpop.f32.mrb[27].mxu1  ;;  %v1525_v5 = vpop.f32.mrb[21].mxu0 }
 0x540   :  { %v3825_v8 = vadd.f32 %v3824_v2, %v3823_v56  ;;  %v1526_v12 = vadd.f32 %v1525_v5, %v1441_v1  ;;  %v1921_v56 = vld [vmem:[#allocation20 + $0x40] sm:$0xff]  ;;  %v4631_v1 = vpack.c.bf16 %v2051_v58, %v2049_v7  ;;  %v1926_v2 = vld [vmem:[#allocation20 + $0x68] sm:$0xff]  ;;  %v2067_v7 = vld [vmem:[#allocation20 + $0x4d0] sm:$0xff] }
 0x542   :  { %v1446_v61 = vadd.f32 %v3825_v8, %v6059_v11  ;;  %vm1544_vm0 = vcmp.ge.f32.partialorder %v1526_v12, 0.0  ;;  %v1548_v14 = vmul.f32 0.01, %v1526_v12  ;;  %v3826_v17 = vpop.f32.mrb[28].mxu1  ;;  %v4501_v8 = vpack.c.bf16 %v1924_v45, %v1922_v63  ;;  %v1941_v45 = vld [vmem:[#allocation20 + $0xe0] sm:$0xff] }
 0x543   :  { %v3827_v21 = vpop.f32.mrb[29].mxu1 }
 0x544   :  { %v1531_v23 = vadd.f32 %v4099_v57, %v1446_v61  ;;  %v1552_v26 = vsel %vm1544_vm0, %v1526_v12, %v1548_v14  ;;  %v3828_v30 = vadd.f32 %v3827_v21, %v3826_v17  ;;  %v1923_v57 = vld [vmem:[#allocation20 + $0x50] sm:$0xff]  ;;  %v4633_v12 = vpack.c.bf16 %v2056_v52, %v2054_v48  ;;  %v2053_v61 = vld [vmem:[#allocation20 + $0x460] sm:$0xff]  ;;  %v1928_v17 = vld [vmem:[#allocation20 + $0x78] sm:$0xff] }
 0x545   :  { %v1560_v32 = vadd.f32 %v1552_v26, %v6121_v16  ;;  %v2055_v14 = vld [vmem:[#allocation20 + $0x470] sm:$0xff]  ;;  %v2058_v21 = vld [vmem:[#allocation20 + $0x488] sm:$0xff]  ;;  %v1925_v26 = vld [vmem:[#allocation20 + $0x60] sm:$0xff] }
 0x546   :  { %vm1545_vm1 = vcmp.ge.f32.partialorder %v1531_v23, 0.0  ;;  %v1549_v35 = vmul.f32 0.01, %v1531_v23  ;;  %v3829_v41 = vpop.f32.mrb[30].mxu1  ;;  %v4102_v44 = vpop.f32.mrb[22].mxu0  ;;  %v1451_v10 = vadd.f32 %v3828_v30, %v6059_v11  ;;  %v1927_v30 = vld [vmem:[#allocation20 + $0x70] sm:$0xff] }
 0x547   :  { %1564 = vst [vmem:[#allocation2 + $0x8] sm:$0xff] %v1560_v32  ;;  %v3830_v13 = vpop.f32.mrb[31].mxu1  ;;  %v1535_v15 = vpop.f32.mrb[23].mxu0  ;;  %1723 = vmatprep.mubr.f32.mxu1 %v1560_v32  ;;  %v4503_v32 = vpack.c.bf16 %v1923_v57, %v1921_v56  ;;  %v1943_v48 = vld [vmem:[#allocation20 + $0xf0] sm:$0xff]  ;;  %v2069_v56 = vld [vmem:[#allocation20 + $0x4e0] sm:$0xff] }
 0x548   :  { %v1553_v18 = vsel %vm1545_vm1, %v1531_v23, %v1549_v35  ;;  %v3831_v19 = vadd.f32 %v3830_v13, %v3829_v41  ;;  %v1536_v20 = vadd.f32 %v1535_v15, %v1451_v10  ;;  %v2060_v23 = vld [vmem:[#allocation20 + $0x498] sm:$0xff]  ;;  %v4635_v35 = vpack.c.bf16 %v2055_v14, %v2053_v61  ;;  %v1930_v41 = vld [vmem:[#allocation20 + $0x88] sm:$0xff]  ;;  %v2059_v10 = vld [vmem:[#allocation20 + $0x490] sm:$0xff] }
 0x549   :  { %v1561_v22 = vadd.f32 %v1553_v18, %v6127_v37  ;;  %v2071_v57 = vld [vmem:[#allocation20 + $0x4f0] sm:$0xff]  ;;  %v2076_v61 = vld [vmem:[#allocation20 + $0x518] sm:$0xff]  ;;  %v1945_v14 = vld [vmem:[#allocation20 + $0x100] sm:$0xff] }
 0x54a   :  { %v1456_v27 = vadd.f32 %v3831_v19, %v6059_v11  ;;  %vm1546_vm2 = vcmp.ge.f32.partialorder %v1536_v20, 0.0  ;;  %v1550_v16 = vmul.f32 0.01, %v1536_v20  ;;  %v1920_v11 = vld [vmem:[#allocation20 + $0x38] sm:$0xff]  ;;  %v4505_v19 = vpack.c.bf16 %v1928_v17, %v1926_v2  ;;  %v1946_v2 = vld [vmem:[#allocation20 + $0x108] sm:$0xff]  ;;  %v1947_v17 = vld [vmem:[#allocation20 + $0x110] sm:$0xff] }
 0x54b   :  { %1565 = vst [vmem:[#allocation2 + $0x10] sm:$0xff] %v1561_v22  ;;  %v4497_v9 = vpack.c.bf16 %v1920_v11, %v1918_v43  ;;  %v2066_v43 = vld [vmem:[#allocation20 + $0x4c8] sm:$0xff]  ;;  %v1935_v11 = vld [vmem:[#allocation20 + $0xb0] sm:$0xff] }
 0x54c   :  { %v1541_v31 = vadd.f32 %v4102_v44, %v1456_v27  ;;  %v1554_v33 = vsel %vm1546_vm2, %v1536_v20, %v1550_v16  ;;  %v2057_v44 = vld [vmem:[#allocation20 + $0x480] sm:$0xff]  ;;  %v4637_v20 = vpack.c.bf16 %v2060_v23, %v2058_v21  ;;  %v4507_v27 = vpack.c.bf16 %v1927_v30, %v1925_v26  ;;  %v2075_v30 = vld [vmem:[#allocation20 + $0x510] sm:$0xff] }
 0x54d   :  { %v1562_v36 = vadd.f32 %v1554_v33, %v6132_v51  ;;  %v1929_v16 = vld [vmem:[#allocation20 + $0x80] sm:$0xff]  ;;  %v4639_v29 = vpack.c.bf16 %v2059_v10, %v2057_v44  ;;  %v1934_v33 = vld [vmem:[#allocation20 + $0xa8] sm:$0xff]  ;;  %v4527_v23 = vpack.c.bf16 %v1947_v17, %v1945_v14  ;;  %v2095_v17 = vld [vmem:[#allocation20 + $0x5b0] sm:$0xff] }
 0x54e   :  { %vm1547_vm3 = vcmp.ge.f32.partialorder %v1541_v31, 0.0  ;;  %v1551_v37 = vmul.f32 0.01, %v1541_v31  ;;  %v1568_v49 = vld [vmem:[#allocation2 + $0x6] sm:$0xff]  ;;  %v4513_v53 = vpack.c.bf16 %v1936_v40, %v1934_v33  ;;  %v2078_v44 = vld [vmem:[#allocation20 + $0x528] sm:$0xff] }
 0x54f   :  { %1566 = vst [vmem:[#allocation2 + $0x28] sm:$0xff] %v1562_v36  ;;  %1724 = vmatmul.mubr.f32.vlgmr.msra.gmra.mrb[32].mxu1 %v1568_v49  ;;  %v2073_v26 = vld [vmem:[#allocation20 + $0x500] sm:$0xff] }
 0x550   :  { %v1555_v60 = vsel %vm1547_vm3, %v1541_v31, %v1551_v37  ;;  %1728 = vmatprep.mubr.f32.mxu1 %v1561_v22  ;;  %4624 = vmatpush1.bf16.msra.mxu1 %v4623_v34  ;;  %v1932_v22 = vld [vmem:[#allocation20 + $0x98] sm:$0xff]  ;;  %v4641_v34 = vpack.c.bf16 %v2064_v25, %v2062_v24  ;;  %v4511_v37 = vpack.c.bf16 %v1931_v28, %v1929_v16  ;;  %v2079_v24 = vld [vmem:[#allocation20 + $0x530] sm:$0xff]  ;;  %v2082_v28 = vld [vmem:[#allocation20 + $0x548] sm:$0xff] }
 0x551   :  { %v1563_v51 = vadd.f32 %v1555_v60, %v6136_v6  ;;  %4626 = vmatprep.subr.bf16.mxu1 %v4625_v47  ;;  %v4499_v6 = vpack.c.bf16 %v1919_v0, %v1917_v62  ;;  %v4509_v31 = vpack.c.bf16 %v1932_v22, %v1930_v41  ;;  %v2068_v47 = vld [vmem:[#allocation20 + $0x4d8] sm:$0xff]  ;;  %v4515_v62 = vpack.c.bf16 %v1935_v11, %v1933_v54  ;;  %v2077_v22 = vld [vmem:[#allocation20 + $0x520] sm:$0xff] }
 0x552   :  { %v1576_v42 = vld [vmem:[#allocation2 + $0xa] sm:$0xff]  ;;  %v1577_v55 = vld [vmem:[#allocation2 + $0x12] sm:$0xff]  ;;  %v4645_v59 = vpack.c.bf16 %v2068_v47, %v2066_v43  ;;  %v1940_v60 = vld [vmem:[#allocation20 + $0xd8] sm:$0xff]  ;;  %v4659_v25 = vpack.c.bf16 %v2079_v24, %v2077_v22 }
 0x553   :  { %v1569_v46 = vld [vmem:[#allocation2 + $0xe] sm:$0xff]  ;;  %1567 = vst [vmem:[#allocation2 + $0x30] sm:$0xff] %v1563_v51  ;;  %4135 = vmatprep.mubr.f32.mxu0 %v1576_v42  ;;  %v4517_v0 = vpack.c.bf16 %v1940_v60, %v1938_v50  ;;  %v1952_v41 = vld [vmem:[#allocation20 + $0x138] sm:$0xff]  ;;  %v2083_v43 = vld [vmem:[#allocation20 + $0x550] sm:$0xff] }
 0x554   :  { %1729 = vmatmul.mubr.f32.gmra.mrb[34].mxu1 %v1569_v46  ;;  %4136 = vmatmul.mubr.f32.vlgmr.msra.gmra.mrb[24].mxu0 %v1577_v55  ;;  %v1942_v42 = vld [vmem:[#allocation20 + $0xe8] sm:$0xff]  ;;  %v1944_v46 = vld [vmem:[#allocation20 + $0xf8] sm:$0xff]  ;;  %v1953_v33 = vld [vmem:[#allocation20 + $0x140] sm:$0xff] }
 0x555   :  { %1733 = vmatprep.mubr.f32.mxu1 %v1562_v36  ;;  %4496 = vmatpush1.bf16.msra.mxu0 %v4495_v3  ;;  %v2061_v36 = vld [vmem:[#allocation20 + $0x4a0] sm:$0xff]  ;;  %v1939_v3 = vld [vmem:[#allocation20 + $0xd0] sm:$0xff]  ;;  %v2070_v55 = vld [vmem:[#allocation20 + $0x4e8] sm:$0xff] }
 0x556   :  { %4628 = vmatpush1.bf16.msra.mxu1 %v4627_v4  ;;  %v1580_v5 = vld [vmem:[#allocation2 + $0x26] sm:$0xff]  ;;  %4498 = vmatprep.subr.bf16.mxu0 %v4497_v9  ;;  %v4643_v49 = vpack.c.bf16 %v2063_v38, %v2061_v36  ;;  %v4521_v9 = vpack.c.bf16 %v1944_v46, %v1942_v42  ;;  %v1959_v50 = vld [vmem:[#allocation20 + $0x170] sm:$0xff]  ;;  %v2102_v24 = vld [vmem:[#allocation20 + $0x5e8] sm:$0xff] }
 0x557   :  { %4630 = vmatprep.subr.bf16.mxu1 %v4629_v39  ;;  %v2065_v4 = vld [vmem:[#allocation20 + $0x4c0] sm:$0xff]  ;;  %v2072_v39 = vld [vmem:[#allocation20 + $0x4f8] sm:$0xff] }
 0x558   :  { %1734 = vmatmul.mubr.f32.gmra.mrb[36].mxu1 %v1580_v5  ;;  %v4647_v58 = vpack.c.bf16 %v2067_v7, %v2065_v4  ;;  %v4649_v52 = vpack.c.bf16 %v2072_v39, %v2070_v55  ;;  %v1948_v5 = vld [vmem:[#allocation20 + $0x118] sm:$0xff]  ;;  %v2081_v40 = vld [vmem:[#allocation20 + $0x540] sm:$0xff]  ;;  %v1962_v4 = vld [vmem:[#allocation20 + $0x188] sm:$0xff] }
 0x559   :  { %1738 = vmatprep.mubr.f32.mxu1 %v1563_v51  ;;  %4500 = vmatpush1.bf16.msra.mxu0 %v4499_v6  ;;  %v1937_v51 = vld [vmem:[#allocation20 + $0xc0] sm:$0xff]  ;;  %v4523_v6 = vpack.c.bf16 %v1943_v48, %v1941_v45  ;;  %v1956_v16 = vld [vmem:[#allocation20 + $0x158] sm:$0xff]  ;;  %v4663_v47 = vpack.c.bf16 %v2083_v43, %v2081_v40  ;;  %v2090_v7 = vld [vmem:[#allocation20 + $0x588] sm:$0xff] }
 0x55a   :  { %4632 = vmatpush1.bf16.msra.mxu1 %v4631_v1  ;;  %v1588_v13 = vld [vmem:[#allocation2 + $0x2a] sm:$0xff]  ;;  %v1589_v18 = vld [vmem:[#allocation2 + $0x32] sm:$0xff]  ;;  %4502 = vmatprep.subr.bf16.mxu0 %v4501_v8  ;;  %v4519_v63 = vpack.c.bf16 %v1939_v3, %v1937_v51  ;;  %v4651_v1 = vpack.c.bf16 %v2071_v57, %v2069_v56  ;;  %v2088_v11 = vld [vmem:[#allocation20 + $0x578] sm:$0xff] }
 0x55b   :  { %v1581_v15 = vld [vmem:[#allocation2 + $0x2e] sm:$0xff]  ;;  %4634 = vmatprep.subr.bf16.mxu1 %v4633_v12  ;;  %4138 = vmatprep.mubr.f32.mxu0 %v1588_v13  ;;  %v4525_v12 = vpack.c.bf16 %v1948_v5, %v1946_v2  ;;  %v2080_v13 = vld [vmem:[#allocation20 + $0x538] sm:$0xff]  ;;  %v2087_v51 = vld [vmem:[#allocation20 + $0x570] sm:$0xff] }
 0x55c   :  { %1739 = vmatmul.mubr.f32.gmra.mrb[38].mxu1 %v1581_v15  ;;  %4139 = vmatmul.mubr.f32.gmra.mrb[26].mxu0 %v1589_v18  ;;  %v2074_v8 = vld [vmem:[#allocation20 + $0x508] sm:$0xff]  ;;  %v1949_v15 = vld [vmem:[#allocation20 + $0x120] sm:$0xff]  ;;  %v1951_v18 = vld [vmem:[#allocation20 + $0x130] sm:$0xff] }
 0x55d   :  { %4504 = vmatpush1.bf16.msra.mxu0 %v4503_v32  ;;  %v4653_v21 = vpack.c.bf16 %v2076_v61, %v2074_v8  ;;  %v4655_v32 = vpack.c.bf16 %v2075_v30, %v2073_v26  ;;  %v2092_v42 = vld [vmem:[#allocation20 + $0x598] sm:$0xff]  ;;  %v1961_v46 = vld [vmem:[#allocation20 + $0x180] sm:$0xff]  ;;  %v1963_v55 = vld [vmem:[#allocation20 + $0x190] sm:$0xff] }
 0x55e   :  { %4636 = vmatpush1.bf16.msra.mxu1 %v4635_v35  ;;  %4506 = vmatprep.subr.bf16.mxu0 %v4505_v19  ;;  %v1950_v35 = vld [vmem:[#allocation20 + $0x128] sm:$0xff]  ;;  %v4657_v19 = vpack.c.bf16 %v2080_v13, %v2078_v44  ;;  %v4543_v39 = vpack.c.bf16 %v1963_v55, %v1961_v46  ;;  %v2089_v45 = vld [vmem:[#allocation20 + $0x580] sm:$0xff]  ;;  %v2091_v48 = vld [vmem:[#allocation20 + $0x590] sm:$0xff] }
 0x55f   :  { %4638 = vmatprep.subr.bf16.mxu1 %v4637_v20  ;;  %v4529_v10 = vpack.c.bf16 %v1952_v41, %v1950_v35  ;;  %v4531_v20 = vpack.c.bf16 %v1951_v18, %v1949_v15  ;;  %v1968_v56 = vld [vmem:[#allocation20 + $0x1b8] sm:$0xff]  ;;  %v2094_v57 = vld [vmem:[#allocation20 + $0x5a8] sm:$0xff]  ;;  %v1965_v5 = vld [vmem:[#allocation20 + $0x1a0] sm:$0xff] }
 0x560   :  { %v2096_v2 = vld [vmem:[#allocation20 + $0x5b8] sm:$0xff]  ;;  %v1967_v8 = vld [vmem:[#allocation20 + $0x1b0] sm:$0xff]  ;;  %v2093_v14 = vld [vmem:[#allocation20 + $0x5a0] sm:$0xff] }
 0x561   :  { %4508 = vmatpush1.bf16.msra.mxu0 %v4507_v27  ;;  %v1954_v27 = vld [vmem:[#allocation20 + $0x148] sm:$0xff]  ;;  %v4547_v61 = vpack.c.bf16 %v1967_v8, %v1965_v5  ;;  %v1972_v26 = vld [vmem:[#allocation20 + $0x1d8] sm:$0xff]  ;;  %v1969_v41 = vld [vmem:[#allocation20 + $0x1c0] sm:$0xff] }
 0x562   :  { %4640 = vmatpush1.bf16.msra.mxu1 %v4639_v29  ;;  %4510 = vmatprep.subr.bf16.mxu0 %v4509_v31  ;;  %v4533_v29 = vpack.c.bf16 %v1956_v16, %v1954_v27  ;;  %v2084_v31 = vld [vmem:[#allocation20 + $0x558] sm:$0xff]  ;;  %v2098_v30 = vld [vmem:[#allocation20 + $0x5c8] sm:$0xff]  ;;  %v1971_v44 = vld [vmem:[#allocation20 + $0x1d0] sm:$0xff] }
 0x563   :  { %4642 = vmatprep.subr.bf16.mxu1 %v4641_v34  ;;  %v1955_v34 = vld [vmem:[#allocation20 + $0x150] sm:$0xff]  ;;  %v4661_v36 = vpack.c.bf16 %v2084_v31, %v2082_v28  ;;  %v2100_v35 = vld [vmem:[#allocation20 + $0x5d8] sm:$0xff]  ;;  %v4551_v13 = vpack.c.bf16 %v1971_v44, %v1969_v41  ;;  %v2097_v15 = vld [vmem:[#allocation20 + $0x5c0] sm:$0xff] }
 0x564   :  { %v4535_v38 = vpack.c.bf16 %v1955_v34, %v1953_v33  ;;  %v2099_v18 = vld [vmem:[#allocation20 + $0x5d0] sm:$0xff]  ;;  %v1976_v22 = vld [vmem:[#allocation20 + $0x1f8] sm:$0xff]  ;;  %v1973_v28 = vld [vmem:[#allocation20 + $0x1e0] sm:$0xff] }
 0x565   :  { %4512 = vmatpush1.bf16.msra.mxu0 %v4511_v37  ;;  %v1958_v37 = vld [vmem:[#allocation20 + $0x168] sm:$0xff]  ;;  %v2101_v31 = vld [vmem:[#allocation20 + $0x5e0] sm:$0xff]  ;;  %v2103_v34 = vld [vmem:[#allocation20 + $0x5f0] sm:$0xff] }
 0x566   :  { %4644 = vmatpush1.bf16.msra.mxu1 %v4643_v49  ;;  %4514 = vmatprep.subr.bf16.mxu0 %v4513_v53  ;;  %v1960_v49 = vld [vmem:[#allocation20 + $0x178] sm:$0xff]  ;;  %v2086_v53 = vld [vmem:[#allocation20 + $0x568] sm:$0xff] }
 0x567   :  { %4646 = vmatprep.subr.bf16.mxu1 %v4645_v59  ;;  %v4537_v54 = vpack.c.bf16 %v1960_v49, %v1958_v37  ;;  %v1957_v59 = vld [vmem:[#allocation20 + $0x160] sm:$0xff]  ;;  %v4665_v60 = vpack.c.bf16 %v2088_v11, %v2086_v53  ;;  %v1980_v40 = vld [vmem:[#allocation20 + $0x218] sm:$0xff]  ;;  %v2106_v43 = vld [vmem:[#allocation20 + $0x608] sm:$0xff] }
 0x568   :  { %v2108_v37 = vld [vmem:[#allocation20 + $0x618] sm:$0xff] }
 0x569   :  { %4516 = vmatpush1.bf16.msra.mxu0 %v4515_v62  ;;  %v4539_v62 = vpack.c.bf16 %v1959_v50, %v1957_v59  ;;  %v4685_v49 = vpack.c.bf16 %v2108_v37, %v2106_v43  ;;  %v3550_v11 = vld [vmem:[#allocation18] ss:$0 sm:$0xff] }
 0x56a   :  { %4518 = vmatprep.subr.bf16.mxu0 %v4517_v0  ;;  %4648 = vmatpush1.bf16.msra.mxu1 %v4647_v58  ;;  %v2085_v0 = vld [vmem:[#allocation20 + $0x560] sm:$0xff] }
 0x56b   :  { %4650 = vmatprep.subr.bf16.mxu1 %v4649_v52  ;;  %v4667_v3 = vpack.c.bf16 %v2087_v51, %v2085_v0  ;;  %v4671_v52 = vpack.c.bf16 %v2091_v48, %v2089_v45 }
 0x56d   :  { %4520 = vmatpush1.bf16.msra.mxu0 %v4519_v63  ;;  %v1964_v63 = vld [vmem:[#allocation20 + $0x198] sm:$0xff] }
 0x56e   :  { %4522 = vmatprep.subr.bf16.mxu0 %v4521_v9  ;;  %4652 = vmatpush1.bf16.msra.mxu1 %v4651_v1  ;;  %v4541_v58 = vpack.c.bf16 %v1964_v63, %v1962_v4  ;;  %v4669_v9 = vpack.c.bf16 %v2092_v42, %v2090_v7 }
 0x56f   :  { %4654 = vmatprep.subr.bf16.mxu1 %v4653_v21  ;;  %v4675_v21 = vpack.c.bf16 %v2095_v17, %v2093_v14 }
 0x571   :  { %4524 = vmatpush1.bf16.msra.mxu0 %v4523_v6  ;;  %v1966_v6 = vld [vmem:[#allocation20 + $0x1a8] sm:$0xff] }
 0x572   :  { %4526 = vmatprep.subr.bf16.mxu0 %v4525_v12  ;;  %4656 = vmatpush1.bf16.msra.mxu1 %v4655_v32  ;;  %v4545_v1 = vpack.c.bf16 %v1968_v56, %v1966_v6  ;;  %v4673_v12 = vpack.c.bf16 %v2096_v2, %v2094_v57 }
 0x573   :  { %4658 = vmatprep.subr.bf16.mxu1 %v4657_v19  ;;  %v1974_v19 = vld [vmem:[#allocation20 + $0x1e8] sm:$0xff] }
 0x574   :  { %v4553_v27 = vpack.c.bf16 %v1976_v22, %v1974_v19  ;;  %v2427_v19 = vlaneseq }
 0x575   :  { %4528 = vmatpush1.bf16.msra.mxu0 %v4527_v23  ;;  %v1970_v23 = vld [vmem:[#allocation20 + $0x1c8] sm:$0xff] }
 0x576   :  { %4530 = vmatprep.subr.bf16.mxu0 %v4529_v10  ;;  %4660 = vmatpush1.bf16.msra.mxu1 %v4659_v25  ;;  %v4549_v32 = vpack.c.bf16 %v1972_v26, %v1970_v23  ;;  %v4677_v10 = vpack.c.bf16 %v2100_v35, %v2098_v30  ;;  %v2104_v25 = vld [vmem:[#allocation20 + $0x5f8] sm:$0xff] }
 0x577   :  { %4662 = vmatprep.subr.bf16.mxu1 %v4661_v36  ;;  %v4681_v16 = vpack.c.bf16 %v2104_v25, %v2102_v24  ;;  %v4683_v36 = vpack.c.bf16 %v2103_v34, %v2101_v31 }
 0x579   :  { %4532 = vmatpush1.bf16.msra.mxu0 %v4531_v20  ;;  %v4679_v20 = vpack.c.bf16 %v2099_v18, %v2097_v15 }
 0x57a   :  { %4534 = vmatprep.subr.bf16.mxu0 %v4533_v29  ;;  %4664 = vmatpush1.bf16.msra.mxu1 %v4663_v47  ;;  %v1975_v29 = vld [vmem:[#allocation20 + $0x1f0] sm:$0xff] }
 0x57b   :  { %4666 = vmatprep.subr.bf16.mxu1 %v4665_v60  ;;  %v4555_v33 = vpack.c.bf16 %v1975_v29, %v1973_v28 }
 0x57d   :  { %4536 = vmatpush1.bf16.msra.mxu0 %v4535_v38  ;;  %v1978_v38 = vld [vmem:[#allocation20 + $0x208] sm:$0xff] }
 0x57e   :  { %4538 = vmatprep.subr.bf16.mxu0 %v4537_v54  ;;  %4668 = vmatpush1.bf16.msra.mxu1 %v4667_v3  ;;  %v4557_v47 = vpack.c.bf16 %v1980_v40, %v1978_v38  ;;  %v6151_v40 = vshrl.u32 %v2427_v19, 7 }
 0x57f   :  { %4670 = vmatprep.subr.bf16.mxu1 %v4669_v9 }
 0x581   :  { %4540 = vmatpush1.bf16.msra.mxu0 %v4539_v62 }
 0x582   :  { %4542 = vmatprep.subr.bf16.mxu0 %v4541_v58  ;;  %4672 = vmatpush1.bf16.msra.mxu1 %v4671_v52 }
 0x583   :  { %4674 = vmatprep.subr.bf16.mxu1 %v4673_v12 }
 0x585   :  { %4544 = vmatpush1.bf16.msra.mxu0 %v4543_v39 }
 0x586   :  { %4546 = vmatprep.subr.bf16.mxu0 %v4545_v1  ;;  %4676 = vmatpush1.bf16.msra.mxu1 %v4675_v21 }
 0x587   :  { %4678 = vmatprep.subr.bf16.mxu1 %v4677_v10 }
 0x589   :  { %4548 = vmatpush1.bf16.msra.mxu0 %v4547_v61 }
 0x58a   :  { %4550 = vmatprep.subr.bf16.mxu0 %v4549_v32  ;;  %4680 = vmatpush1.bf16.msra.mxu1 %v4679_v20  ;;  %v5641_v20 = vmov 1983009808  }
 0x58b   :  { %4682 = vmatprep.subr.bf16.mxu1 %v4681_v16  ;;  %v2443_v22 = vunpack.c.l.s4 %v5641_v20  ;;  %v2115_v20 = vld [vmem:[#allocation20 + $0x650] sm:$0xff] }
 0x58d   :  { %4552 = vmatpush1.bf16.msra.mxu0 %v4551_v13  ;;  %v2444_v43 = vunpack.c.0.s8 %v2443_v22  ;;  %v1990_v22 = vld [vmem:[#allocation20 + $0x268] sm:$0xff] }
 0x58e   :  { %4554 = vmatprep.subr.bf16.mxu0 %v4553_v27  ;;  %4684 = vmatpush1.bf16.msra.mxu1 %v4683_v36 }
 0x58f   :  { %4686 = vmatprep.subr.bf16.mxu1 %v4685_v49 }
 0x591   :  { %4556 = vmatpush1.bf16.msra.mxu0 %v4555_v33 }
 0x592   :  { %4558 = vmatprep.subr.bf16.mxu0 %v4557_v47 }
 0x622   :  { %v3884_v53 = vpop.f32.mrb[32].mxu1 }
 0x623   :  { %v3885_v54 = vpop.f32.mrb[33].mxu1 }
 0x624   :  { %v3886_v59 = vadd.f32 %v3885_v54, %v3884_v53  ;;  %v6154_v54 = vsub.s32 %v2444_v43, %v6151_v40  ;;  %v1994_v43 = vld [vmem:[#allocation20 + $0x288] sm:$0xff] }
 0x626   :  { %v1726_v60 = vadd.f32 %v3886_v59, %v3550_v11 }
 0x627   :  { %v3887_v50 = vpop.f32.mrb[34].mxu1  ;;  %v4137_v62 = vpop.f32.mrb[24].mxu0 }
 0x628   :  { %v3888_v0 = vpop.f32.mrb[35].mxu1  ;;  %v1810_v3 = vpop.f32.mrb[25].mxu0 }
 0x629   :  { %v3889_v51 = vadd.f32 %v3888_v0, %v3887_v50  ;;  %v1811_v4 = vadd.f32 %v1810_v3, %v1726_v60  ;;  %v1979_v3 = vld [vmem:[#allocation20 + $0x210] sm:$0xff] }
 0x62b   :  { %v1731_v63 = vadd.f32 %v3889_v51, %v3550_v11  ;;  %v3890_v7 = vpop.f32.mrb[36].mxu1  ;;  %vm1829_vm4 = vcmp.ge.f32.partialorder %v1811_v4, 0.0  ;;  %v1833_v58 = vmul.f32 0.01, %v1811_v4  ;;  %v1977_v51 = vld [vmem:[#allocation20 + $0x200] sm:$0xff] }
 0x62c   :  { %v3891_v42 = vpop.f32.mrb[37].mxu1 }
 0x62d   :  { %v1816_v46 = vadd.f32 %v4137_v62, %v1731_v63  ;;  %v3892_v55 = vadd.f32 %v3891_v42, %v3890_v7  ;;  %v1837_v9 = vsel %vm1829_vm4, %v1811_v4, %v1833_v58  ;;  %v2105_v7 = vld [vmem:[#allocation20 + $0x600] sm:$0xff]  ;;  %v2107_v58 = vld [vmem:[#allocation20 + $0x610] sm:$0xff] }
 0x62e   :  { %1841 = vst [vmem:[#allocation4] sm:$0xff] %v1837_v9  ;;  %v1982_v9 = vld [vmem:[#allocation20 + $0x228] sm:$0xff] }
 0x62f   :  { %vm1830_vm5 = vcmp.ge.f32.partialorder %v1816_v46, 0.0  ;;  %v1834_v39 = vmul.f32 0.01, %v1816_v46  ;;  %v3893_v45 = vpop.f32.mrb[38].mxu1  ;;  %v1736_v48 = vadd.f32 %v3892_v55, %v3550_v11  ;;  %v4140_v52 = vpop.f32.mrb[26].mxu0 }
 0x630   :  { %v3894_v6 = vpop.f32.mrb[39].mxu1  ;;  %v1820_v1 = vpop.f32.mrb[27].mxu0 }
 0x631   :  { %v1838_v56 = vsel %vm1830_vm5, %v1816_v46, %v1834_v39  ;;  %v3895_v57 = vadd.f32 %v3894_v6, %v3893_v45  ;;  %v1821_v2 = vadd.f32 %v1820_v1, %v1736_v48  ;;  %v1984_v39 = vld [vmem:[#allocation20 + $0x238] sm:$0xff]  ;;  %v4559_v48 = vpack.c.bf16 %v1979_v3, %v1977_v51  ;;  %v2110_v6 = vld [vmem:[#allocation20 + $0x628] sm:$0xff]  ;;  %v2123_v51 = vld [vmem:[#allocation20 + $0x690] sm:$0xff] }
 0x632   :  { %1842 = vst [vmem:[#allocation4 + $0x8] sm:$0xff] %v1838_v56  ;;  %v2112_v56 = vld [vmem:[#allocation20 + $0x638] sm:$0xff]  ;;  %v4687_v1 = vpack.c.bf16 %v2107_v58, %v2105_v7  ;;  %v1998_v3 = vld [vmem:[#allocation20 + $0x2a8] sm:$0xff] }
 0x633   :  { %v1741_v5 = vadd.f32 %v3895_v57, %v3550_v11  ;;  %vm1831_vm6 = vcmp.ge.f32.partialorder %v1821_v2, 0.0  ;;  %v1835_v8 = vmul.f32 0.01, %v1821_v2  ;;  %v2128_v7 = vld [vmem:[#allocation20 + $0x6b8] sm:$0xff] }
 0x635   :  { %v1826_v12 = vadd.f32 %v4140_v52, %v1741_v5  ;;  %v1845_v61 = vld [vmem:[#allocation4] sm:$0x1]  ;;  %v1847_v14 = vld [vmem:[#allocation4 + $0x1] sm:$0x1]  ;;  %v1849_v17 = vld [vmem:[#allocation4 + $0x2] sm:$0x1]  ;;  %v1839_v21 = vsel %vm1831_vm6, %v1821_v2, %v1835_v8 }
 0x636   :  { %v1851_v23 = vld [vmem:[#allocation4 + $0x3] sm:$0x1]  ;;  %v1853_v26 = vld [vmem:[#allocation4 + $0x4] sm:$0x1]  ;;  %v1855_v30 = vld [vmem:[#allocation4 + $0x5] sm:$0x1] }
 0x637   :  { %1846 = vst [vmem:[#allocation5] sm:$0x1] %v1845_v61  ;;  %1848 = vst [vmem:[#allocation5 + $0x2] sm:$0x1] %v1847_v14  ;;  %v1857_v32 = vld [vmem:[#allocation4 + $0x6] sm:$0x1]  ;;  %v4561_v14 = vpack.c.bf16 %v1984_v39, %v1982_v9 }
 0x638   :  { %1850 = vst [vmem:[#allocation5 + $0x4] sm:$0x1] %v1849_v17  ;;  %1843 = vst [vmem:[#allocation4 + $0x10] sm:$0xff] %v1839_v21  ;;  %v1859_v35 = vld [vmem:[#allocation4 + $0x7] sm:$0x1]  ;;  %vm1832_vm7 = vcmp.ge.f32.partialorder %v1826_v12, 0.0 }
 0x639   :  { %1852 = vst [vmem:[#allocation5 + $0x6] sm:$0x1] %v1851_v23  ;;  %1854 = vst [vmem:[#allocation5 + $0x8] sm:$0x1] %v1853_v26  ;;  %v1836_v41 = vmul.f32 0.01, %v1826_v12 }
 0x63a   :  { %1856 = vst [vmem:[#allocation5 + $0xa] sm:$0x1] %v1855_v30  ;;  %1858 = vst [vmem:[#allocation5 + $0xc] sm:$0x1] %v1857_v32  ;;  %v1861_v44 = vld [vmem:[#allocation4 + $0x8] sm:$0x1]  ;;  %v4689_v30 = vpack.c.bf16 %v2112_v56, %v2110_v6 }
 0x63b   :  { %1860 = vst [vmem:[#allocation5 + $0xe] sm:$0x1] %v1859_v35  ;;  %v1863_v10 = vld [vmem:[#allocation4 + $0x9] sm:$0x1]  ;;  %1862 = vst [vmem:[#allocation5 + $0x10] sm:$0x1] %v1861_v44  ;;  %v1840_v18 = vsel %vm1832_vm7, %v1826_v12, %v1836_v41 }
 0x63c   :  { %1864 = vst [vmem:[#allocation5 + $0x12] sm:$0x1] %v1863_v10  ;;  %v1865_v13 = vld [vmem:[#allocation4 + $0xa] sm:$0x1]  ;;  %v1867_v15 = vld [vmem:[#allocation4 + $0xb] sm:$0x1] }
 0x63d   :  { %1866 = vst [vmem:[#allocation5 + $0x14] sm:$0x1] %v1865_v13  ;;  %1868 = vst [vmem:[#allocation5 + $0x16] sm:$0x1] %v1867_v15  ;;  %v1869_v24 = vld [vmem:[#allocation4 + $0xc] sm:$0x1] }
 0x63e   :  { %1844 = vst [vmem:[#allocation4 + $0x18] sm:$0xff] %v1840_v18  ;;  %v1871_v25 = vld [vmem:[#allocation4 + $0xd] sm:$0x1]  ;;  %v1873_v27 = vld [vmem:[#allocation4 + $0xe] sm:$0x1]  ;;  %v1983_v8 = vld [vmem:[#allocation20 + $0x230] sm:$0xff] }
 0x63f   :  { %v1877_v16 = vld [vmem:[#allocation4 + $0x10] sm:$0x1]  ;;  %v1879_v28 = vld [vmem:[#allocation4 + $0x11] sm:$0x1]  ;;  %v1881_v29 = vld [vmem:[#allocation4 + $0x12] sm:$0x1] }
 0x640   :  { %1870 = vst [vmem:[#allocation5 + $0x18] sm:$0x1] %v1869_v24  ;;  %1872 = vst [vmem:[#allocation5 + $0x1a] sm:$0x1] %v1871_v25  ;;  %v1883_v31 = vld [vmem:[#allocation4 + $0x13] sm:$0x1] }
 0x641   :  { %1874 = vst [vmem:[#allocation5 + $0x1c] sm:$0x1] %v1873_v27  ;;  %v1885_v33 = vld [vmem:[#allocation4 + $0x14] sm:$0x1]  ;;  %v1887_v34 = vld [vmem:[#allocation4 + $0x15] sm:$0x1] }
 0x642   :  { %1878 = vst [vmem:[#allocation5 + $0x1] sm:$0x1] %v1877_v16  ;;  %1880 = vst [vmem:[#allocation5 + $0x3] sm:$0x1] %v1879_v28  ;;  %v1889_v36 = vld [vmem:[#allocation4 + $0x16] sm:$0x1] }
 0x643   :  { %1882 = vst [vmem:[#allocation5 + $0x5] sm:$0x1] %v1881_v29  ;;  %v1891_v38 = vld [vmem:[#allocation4 + $0x17] sm:$0x1]  ;;  %1884 = vst [vmem:[#allocation5 + $0x7] sm:$0x1] %v1883_v31 }
 0x644   :  { %1886 = vst [vmem:[#allocation5 + $0x9] sm:$0x1] %v1885_v33  ;;  %1888 = vst [vmem:[#allocation5 + $0xb] sm:$0x1] %v1887_v34  ;;  %v1875_v47 = vld [vmem:[#allocation4 + $0xf] sm:$0x1] }
 0x645   :  { %1890 = vst [vmem:[#allocation5 + $0xd] sm:$0x1] %v1889_v36  ;;  %1892 = vst [vmem:[#allocation5 + $0xf] sm:$0x1] %v1891_v38  ;;  %v1893_v37 = vld [vmem:[#allocation4 + $0x18] sm:$0x1] }
 0x646   :  { %v1895_v49 = vld [vmem:[#allocation4 + $0x19] sm:$0x1]  ;;  %v1897_v53 = vld [vmem:[#allocation4 + $0x1a] sm:$0x1]  ;;  %1876 = vst [vmem:[#allocation5 + $0x1e] sm:$0x1] %v1875_v47 }
 0x647   :  { %1894 = vst [vmem:[#allocation5 + $0x11] sm:$0x1] %v1893_v37  ;;  %1896 = vst [vmem:[#allocation5 + $0x13] sm:$0x1] %v1895_v49  ;;  %v1899_v11 = vld [vmem:[#allocation4 + $0x1b] sm:$0x1] }
 0x648   :  { %1898 = vst [vmem:[#allocation5 + $0x15] sm:$0x1] %v1897_v53  ;;  %1900 = vst [vmem:[#allocation5 + $0x17] sm:$0x1] %v1899_v11  ;;  %v1901_v59 = vld [vmem:[#allocation4 + $0x1c] sm:$0x1] }
 0x649   :  { %1902 = vst [vmem:[#allocation5 + $0x19] sm:$0x1] %v1901_v59  ;;  %v1903_v50 = vld [vmem:[#allocation4 + $0x1d] sm:$0x1]  ;;  %v1905_v60 = vld [vmem:[#allocation4 + $0x1e] sm:$0x1] }
 0x64a   :  { %v1907_v62 = vld [vmem:[#allocation4 + $0x1f] sm:$0x1]  ;;  %v1909_v0 = vld [vmem:[#allocation5] sm:$0xff]  ;;  %1904 = vst [vmem:[#allocation5 + $0x1b] sm:$0x1] %v1903_v50  ;;  %v1981_v5 = vld [vmem:[#allocation20 + $0x220] sm:$0xff] }
 0x64b   :  { %1906 = vst [vmem:[#allocation5 + $0x1d] sm:$0x1] %v1905_v60  ;;  %1908 = vst [vmem:[#allocation5 + $0x1f] sm:$0x1] %v1907_v62  ;;  %v2448_v4 = vrot.slane %v1909_v0, %v6154_v54  ;;  %v2441_v42 = vcombine.high %v1909_v0, %v1909_v0  ;;  %v2109_v12 = vld [vmem:[#allocation20 + $0x620] sm:$0xff]  ;;  %v2111_v17 = vld [vmem:[#allocation20 + $0x630] sm:$0xff]  ;;  %v4563_v41 = vpack.c.bf16 %v1983_v8, %v1981_v5 }
 0x64c   :  { %v1910_v63 = vld [vmem:[#allocation5 + $0x8] sm:$0xff]  ;;  %v1986_v21 = vld [vmem:[#allocation20 + $0x248] sm:$0xff]  ;;  %v4691_v44 = vpack.c.bf16 %v2111_v17, %v2109_v12  ;;  %v1987_v15 = vld [vmem:[#allocation20 + $0x250] sm:$0xff] }
 0x64d   :  { %v2465_v46 = vrot.slane %v1910_v63, %v6154_v54  ;;  %v2458_v55 = vcombine.high %v1910_v63, %v1910_v63  ;;  %v2456_v45 = vcombine.high %v2448_v4, %v2448_v4  ;;  %v6159_v52 = vrot.slane %v2441_v42, %v6154_v54  ;;  %v1988_v23 = vld [vmem:[#allocation20 + $0x258] sm:$0xff]  ;;  %v2114_v32 = vld [vmem:[#allocation20 + $0x648] sm:$0xff]  ;;  %v1985_v13 = vld [vmem:[#allocation20 + $0x240] sm:$0xff] }
 0x64e   :  { %v2116_v35 = vld [vmem:[#allocation20 + $0x658] sm:$0xff]  ;;  %v4565_v10 = vpack.c.bf16 %v1988_v23, %v1986_v21  ;;  %v2113_v18 = vld [vmem:[#allocation20 + $0x640] sm:$0xff]  ;;  %v2118_v25 = vld [vmem:[#allocation20 + $0x668] sm:$0xff]  ;;  %v4567_v16 = vpack.c.bf16 %v1987_v15, %v1985_v13 }
 0x64f   :  { %v2473_v57 = vcombine.high %v2465_v46, %v2465_v46  ;;  %v6162_v2 = vrot.slane %v2458_v55, %v6154_v54  ;;  %2589 = vmatprep.mubr.f32.mxu0 %v2456_v45  ;;  %v2457_v61 = vcombine.high %v6159_v52, %v6159_v52  ;;  %v4693_v19 = vpack.c.bf16 %v2116_v35, %v2114_v32  ;;  %v1992_v24 = vld [vmem:[#allocation20 + $0x278] sm:$0xff]  ;;  %v1989_v31 = vld [vmem:[#allocation20 + $0x260] sm:$0xff]  ;;  %v1991_v33 = vld [vmem:[#allocation20 + $0x270] sm:$0xff] }
 0x650   :  { %2590 = vmatmul.mubr.f32.vlgmr.msra.gmra.mrb[28].mxu0 %v2448_v4  ;;  %v2120_v27 = vld [vmem:[#allocation20 + $0x678] sm:$0xff]  ;;  %v4695_v28 = vpack.c.bf16 %v2115_v20, %v2113_v18  ;;  %v4569_v29 = vpack.c.bf16 %v1992_v24, %v1990_v22  ;;  %v2117_v34 = vld [vmem:[#allocation20 + $0x660] sm:$0xff]  ;;  %v2119_v38 = vld [vmem:[#allocation20 + $0x670] sm:$0xff]  ;;  %v4571_v53 = vpack.c.bf16 %v1991_v33, %v1989_v31 }
 0x651   :  { %2731 = vmatprep.mubr.f32.mxu1 %v2473_v57  ;;  %v2474_v26 = vcombine.high %v6162_v2, %v6162_v2  ;;  %4560 = vmatpush1.bf16.msra.mxu0 %v4559_v48  ;;  %v4697_v36 = vpack.c.bf16 %v2120_v27, %v2118_v25  ;;  %v1996_v47 = vld [vmem:[#allocation20 + $0x298] sm:$0xff]  ;;  %v2122_v37 = vld [vmem:[#allocation20 + $0x688] sm:$0xff]  ;;  %v4699_v11 = vpack.c.bf16 %v2119_v38, %v2117_v34  ;;  %v1993_v50 = vld [vmem:[#allocation20 + $0x280] sm:$0xff] }
 0x652   :  { %2732 = vmatmul.mubr.f32.vlgmr.msra.gmra.mrb[40].mxu1 %v2465_v46  ;;  %2660 = vmatprep.mubr.f32.mxu0 %v2457_v61  ;;  %v2124_v49 = vld [vmem:[#allocation20 + $0x698] sm:$0xff]  ;;  %v4573_v59 = vpack.c.bf16 %v1996_v47, %v1994_v43  ;;  %v1995_v60 = vld [vmem:[#allocation20 + $0x290] sm:$0xff]  ;;  %v2121_v62 = vld [vmem:[#allocation20 + $0x680] sm:$0xff] }
 0x653   :  { %4688 = vmatpush1.bf16.msra.mxu1 %v4687_v1  ;;  %2802 = vmatprep.mubr.f32.mxu1 %v2474_v26  ;;  %v4701_v0 = vpack.c.bf16 %v2124_v49, %v2122_v37  ;;  %v2000_v4 = vld [vmem:[#allocation20 + $0x2b8] sm:$0xff]  ;;  %v2126_v63 = vld [vmem:[#allocation20 + $0x6a8] sm:$0xff]  ;;  %v4575_v58 = vpack.c.bf16 %v1995_v60, %v1993_v50  ;;  %v4703_v42 = vpack.c.bf16 %v2123_v51, %v2121_v62  ;;  %v1997_v55 = vld [vmem:[#allocation20 + $0x2a0] sm:$0xff] }
 0x654   :  { %4562 = vmatprep.subr.bf16.mxu0 %v4561_v14  ;;  %4690 = vmatprep.subr.bf16.mxu1 %v4689_v30  ;;  %v4577_v46 = vpack.c.bf16 %v2000_v4, %v1998_v3  ;;  %v1999_v9 = vld [vmem:[#allocation20 + $0x2b0] sm:$0xff]  ;;  %v2125_v39 = vld [vmem:[#allocation20 + $0x6a0] sm:$0xff]  ;;  %v4705_v45 = vpack.c.bf16 %v2128_v7, %v2126_v63  ;;  %v2002_v6 = vld [vmem:[#allocation20 + $0x2c8] sm:$0xff] }
 0x655   :  { %4564 = vmatpush1.bf16.msra.mxu0 %v4563_v41  ;;  %v2127_v48 = vld [vmem:[#allocation20 + $0x6b0] sm:$0xff]  ;;  %v2004_v56 = vld [vmem:[#allocation20 + $0x2d8] sm:$0xff]  ;;  %v2130_v57 = vld [vmem:[#allocation20 + $0x6c8] sm:$0xff]  ;;  %v4579_v5 = vpack.c.bf16 %v1999_v9, %v1997_v55 }
 0x656   :  { %4566 = vmatprep.subr.bf16.mxu0 %v4565_v10  ;;  %v2132_v1 = vld [vmem:[#allocation20 + $0x6d8] sm:$0xff]  ;;  %v4707_v8 = vpack.c.bf16 %v2127_v48, %v2125_v39  ;;  %v4581_v12 = vpack.c.bf16 %v2004_v56, %v2002_v6  ;;  %v2001_v61 = vld [vmem:[#allocation20 + $0x2c0] sm:$0xff]  ;;  %v2003_v14 = vld [vmem:[#allocation20 + $0x2d0] sm:$0xff] }
 0x657   :  { %4692 = vmatpush1.bf16.msra.mxu1 %v4691_v44  ;;  %v2129_v17 = vld [vmem:[#allocation20 + $0x6c0] sm:$0xff]  ;;  %v4709_v21 = vpack.c.bf16 %v2132_v1, %v2130_v57  ;;  %v2131_v23 = vld [vmem:[#allocation20 + $0x6d0] sm:$0xff]  ;;  %v2006_v26 = vld [vmem:[#allocation20 + $0x2e8] sm:$0xff]  ;;  %v4583_v41 = vpack.c.bf16 %v2003_v14, %v2001_v61 }
 0x658   :  { %4694 = vmatprep.subr.bf16.mxu1 %v4693_v19  ;;  %v2008_v30 = vld [vmem:[#allocation20 + $0x2f8] sm:$0xff]  ;;  %v2134_v32 = vld [vmem:[#allocation20 + $0x6e8] sm:$0xff]  ;;  %v4711_v44 = vpack.c.bf16 %v2131_v23, %v2129_v17  ;;  %v2005_v13 = vld [vmem:[#allocation20 + $0x2e0] sm:$0xff] }
 0x659   :  { %4568 = vmatpush1.bf16.msra.mxu0 %v4567_v16  ;;  %v2136_v35 = vld [vmem:[#allocation20 + $0x6f8] sm:$0xff]  ;;  %v4585_v10 = vpack.c.bf16 %v2008_v30, %v2006_v26  ;;  %v2007_v15 = vld [vmem:[#allocation20 + $0x2f0] sm:$0xff]  ;;  %v2133_v18 = vld [vmem:[#allocation20 + $0x6e0] sm:$0xff] }
 0x65a   :  { %4570 = vmatprep.subr.bf16.mxu0 %v4569_v29  ;;  %v4713_v19 = vpack.c.bf16 %v2136_v35, %v2134_v32  ;;  %v2135_v20 = vld [vmem:[#allocation20 + $0x6f0] sm:$0xff]  ;;  %v2010_v22 = vld [vmem:[#allocation20 + $0x308] sm:$0xff]  ;;  %v2012_v24 = vld [vmem:[#allocation20 + $0x318] sm:$0xff]  ;;  %v4587_v16 = vpack.c.bf16 %v2007_v15, %v2005_v13 }
 0x65b   :  { %4696 = vmatpush1.bf16.msra.mxu1 %v4695_v28  ;;  %v2138_v25 = vld [vmem:[#allocation20 + $0x708] sm:$0xff]  ;;  %v2140_v27 = vld [vmem:[#allocation20 + $0x718] sm:$0xff]  ;;  %v4715_v28 = vpack.c.bf16 %v2135_v20, %v2133_v18  ;;  %v4589_v29 = vpack.c.bf16 %v2012_v24, %v2010_v22  ;;  %v2009_v31 = vld [vmem:[#allocation20 + $0x300] sm:$0xff] }
 0x65c   :  { %4698 = vmatprep.subr.bf16.mxu1 %v4697_v36  ;;  %v2011_v33 = vld [vmem:[#allocation20 + $0x310] sm:$0xff]  ;;  %v2137_v34 = vld [vmem:[#allocation20 + $0x700] sm:$0xff]  ;;  %v4717_v36 = vpack.c.bf16 %v2140_v27, %v2138_v25  ;;  %v2014_v43 = vld [vmem:[#allocation20 + $0x328] sm:$0xff] }
 0x65d   :  { %4572 = vmatpush1.bf16.msra.mxu0 %v4571_v53  ;;  %v2139_v38 = vld [vmem:[#allocation20 + $0x710] sm:$0xff]  ;;  %v2016_v47 = vld [vmem:[#allocation20 + $0x338] sm:$0xff]  ;;  %v2142_v37 = vld [vmem:[#allocation20 + $0x728] sm:$0xff]  ;;  %v4591_v53 = vpack.c.bf16 %v2011_v33, %v2009_v31 }
 0x65e   :  { %4574 = vmatprep.subr.bf16.mxu0 %v4573_v59  ;;  %v2144_v49 = vld [vmem:[#allocation20 + $0x738] sm:$0xff]  ;;  %v4593_v59 = vpack.c.bf16 %v2016_v47, %v2014_v43  ;;  %v2013_v50 = vld [vmem:[#allocation20 + $0x320] sm:$0xff]  ;;  %v2015_v60 = vld [vmem:[#allocation20 + $0x330] sm:$0xff] }
 0x65f   :  { %4700 = vmatpush1.bf16.msra.mxu1 %v4699_v11  ;;  %v4719_v11 = vpack.c.bf16 %v2139_v38, %v2137_v34  ;;  %v2141_v62 = vld [vmem:[#allocation20 + $0x720] sm:$0xff]  ;;  %v2143_v51 = vld [vmem:[#allocation20 + $0x730] sm:$0xff]  ;;  %v2018_v3 = vld [vmem:[#allocation20 + $0x348] sm:$0xff] }
 0x660   :  { %4702 = vmatprep.subr.bf16.mxu1 %v4701_v0  ;;  %v4721_v0 = vpack.c.bf16 %v2144_v49, %v2142_v37  ;;  %v2020_v4 = vld [vmem:[#allocation20 + $0x358] sm:$0xff]  ;;  %v2146_v63 = vld [vmem:[#allocation20 + $0x748] sm:$0xff]  ;;  %v2017_v55 = vld [vmem:[#allocation20 + $0x340] sm:$0xff] }
 0x661   :  { %4576 = vmatpush1.bf16.msra.mxu0 %v4575_v58  ;;  %v2148_v7 = vld [vmem:[#allocation20 + $0x758] sm:$0xff]  ;;  %v4595_v58 = vpack.c.bf16 %v2015_v60, %v2013_v50  ;;  %v2019_v9 = vld [vmem:[#allocation20 + $0x350] sm:$0xff]  ;;  %v2145_v39 = vld [vmem:[#allocation20 + $0x740] sm:$0xff] }
 0x662   :  { %4578 = vmatprep.subr.bf16.mxu0 %v4577_v46  ;;  %v4597_v46 = vpack.c.bf16 %v2020_v4, %v2018_v3  ;;  %v2147_v48 = vld [vmem:[#allocation20 + $0x750] sm:$0xff]  ;;  %v2022_v6 = vld [vmem:[#allocation20 + $0x368] sm:$0xff]  ;;  %v2024_v56 = vld [vmem:[#allocation20 + $0x378] sm:$0xff] }
 0x663   :  { %4704 = vmatpush1.bf16.msra.mxu1 %v4703_v42  ;;  %v4723_v42 = vpack.c.bf16 %v2143_v51, %v2141_v62  ;;  %v2150_v57 = vld [vmem:[#allocation20 + $0x768] sm:$0xff]  ;;  %v2152_v1 = vld [vmem:[#allocation20 + $0x778] sm:$0xff]  ;;  %v2021_v61 = vld [vmem:[#allocation20 + $0x360] sm:$0xff] }
 0x664   :  { %4706 = vmatprep.subr.bf16.mxu1 %v4705_v45  ;;  %v4725_v45 = vpack.c.bf16 %v2148_v7, %v2146_v63  ;;  %v2023_v14 = vld [vmem:[#allocation20 + $0x370] sm:$0xff]  ;;  %v2149_v17 = vld [vmem:[#allocation20 + $0x760] sm:$0xff]  ;;  %v2026_v26 = vld [vmem:[#allocation20 + $0x388] sm:$0xff] }
 0x665   :  { %4580 = vmatpush1.bf16.msra.mxu0 %v4579_v5  ;;  %v4599_v5 = vpack.c.bf16 %v2019_v9, %v2017_v55  ;;  %v2151_v23 = vld [vmem:[#allocation20 + $0x770] sm:$0xff]  ;;  %v2028_v30 = vld [vmem:[#allocation20 + $0x398] sm:$0xff]  ;;  %v2154_v32 = vld [vmem:[#allocation20 + $0x788] sm:$0xff] }
 0x666   :  { %4582 = vmatprep.subr.bf16.mxu0 %v4581_v12  ;;  %v4601_v12 = vpack.c.bf16 %v2024_v56, %v2022_v6  ;;  %v2156_v35 = vld [vmem:[#allocation20 + $0x798] sm:$0xff]  ;;  %v2025_v13 = vld [vmem:[#allocation20 + $0x380] sm:$0xff]  ;;  %v2027_v15 = vld [vmem:[#allocation20 + $0x390] sm:$0xff] }
 0x667   :  { %4708 = vmatpush1.bf16.msra.mxu1 %v4707_v8  ;;  %v4727_v8 = vpack.c.bf16 %v2147_v48, %v2145_v39  ;;  %v2153_v18 = vld [vmem:[#allocation20 + $0x780] sm:$0xff]  ;;  %v2155_v20 = vld [vmem:[#allocation20 + $0x790] sm:$0xff]  ;;  %v2030_v22 = vld [vmem:[#allocation20 + $0x3a8] sm:$0xff] }
 0x668   :  { %4710 = vmatprep.subr.bf16.mxu1 %v4709_v21  ;;  %v4729_v21 = vpack.c.bf16 %v2152_v1, %v2150_v57  ;;  %v2032_v24 = vld [vmem:[#allocation20 + $0x3b8] sm:$0xff]  ;;  %v2158_v25 = vld [vmem:[#allocation20 + $0x7a8] sm:$0xff]  ;;  %v2029_v31 = vld [vmem:[#allocation20 + $0x3a0] sm:$0xff] }
 0x669   :  { %4584 = vmatpush1.bf16.msra.mxu0 %v4583_v41  ;;  %v4603_v41 = vpack.c.bf16 %v2023_v14, %v2021_v61  ;;  %v2160_v27 = vld [vmem:[#allocation20 + $0x7b8] sm:$0xff]  ;;  %v2031_v33 = vld [vmem:[#allocation20 + $0x3b0] sm:$0xff]  ;;  %v2157_v34 = vld [vmem:[#allocation20 + $0x7a0] sm:$0xff] }
 0x66a   :  { %4586 = vmatprep.subr.bf16.mxu0 %v4585_v10  ;;  %v4605_v10 = vpack.c.bf16 %v2028_v30, %v2026_v26  ;;  %v2159_v38 = vld [vmem:[#allocation20 + $0x7b0] sm:$0xff]  ;;  %v2034_v43 = vld [vmem:[#allocation20 + $0x3c8] sm:$0xff]  ;;  %v2036_v47 = vld [vmem:[#allocation20 + $0x3d8] sm:$0xff] }
 0x66b   :  { %4712 = vmatpush1.bf16.msra.mxu1 %v4711_v44  ;;  %v4731_v44 = vpack.c.bf16 %v2151_v23, %v2149_v17  ;;  %v2162_v37 = vld [vmem:[#allocation20 + $0x7c8] sm:$0xff]  ;;  %v2164_v49 = vld [vmem:[#allocation20 + $0x7d8] sm:$0xff]  ;;  %v2033_v50 = vld [vmem:[#allocation20 + $0x3c0] sm:$0xff] }
 0x66c   :  { %4714 = vmatprep.subr.bf16.mxu1 %v4713_v19  ;;  %v4733_v19 = vpack.c.bf16 %v2156_v35, %v2154_v32  ;;  %v2035_v60 = vld [vmem:[#allocation20 + $0x3d0] sm:$0xff]  ;;  %v2161_v62 = vld [vmem:[#allocation20 + $0x7c0] sm:$0xff]  ;;  %v2038_v3 = vld [vmem:[#allocation20 + $0x3e8] sm:$0xff] }
 0x66d   :  { %4588 = vmatpush1.bf16.msra.mxu0 %v4587_v16  ;;  %v4607_v16 = vpack.c.bf16 %v2027_v15, %v2025_v13  ;;  %v2163_v51 = vld [vmem:[#allocation20 + $0x7d0] sm:$0xff]  ;;  %v2040_v4 = vld [vmem:[#allocation20 + $0x3f8] sm:$0xff]  ;;  %v2166_v63 = vld [vmem:[#allocation20 + $0x7e8] sm:$0xff] }
 0x66e   :  { %4590 = vmatprep.subr.bf16.mxu0 %v4589_v29  ;;  %v4609_v29 = vpack.c.bf16 %v2032_v24, %v2030_v22  ;;  %v2168_v7 = vld [vmem:[#allocation20 + $0x7f8] sm:$0xff]  ;;  %v2037_v55 = vld [vmem:[#allocation20 + $0x3e0] sm:$0xff]  ;;  %v2039_v9 = vld [vmem:[#allocation20 + $0x3f0] sm:$0xff] }
 0x66f   :  { %4716 = vmatpush1.bf16.msra.mxu1 %v4715_v28  ;;  %v4735_v28 = vpack.c.bf16 %v2155_v20, %v2153_v18  ;;  %v4745_v39 = vpack.c.bf16 %v2168_v7, %v2166_v63  ;;  %v2167_v48 = vld [vmem:[#allocation20 + $0x7f0] sm:$0xff]  ;;  %v2170_v6 = vld [vmem:[#allocation20 + $0x808] sm:$0xff]  ;;  %v2172_v56 = vld [vmem:[#allocation20 + $0x818] sm:$0xff]  ;;  %v4619_v57 = vpack.c.bf16 %v2039_v9, %v2037_v55 }
 0x670   :  { %4718 = vmatprep.subr.bf16.mxu1 %v4717_v36  ;;  %v4737_v36 = vpack.c.bf16 %v2160_v27, %v2158_v25  ;;  %v6168_v1 = vld [vmem:[#allocation5 + $0x10] sm:$0xff]  ;;  %v2171_v61 = vld [vmem:[#allocation20 + $0x810] sm:$0xff]  ;;  %v2184_v20 = vld [vmem:[#allocation20 + $0x878] sm:$0xff] }
 0x671   :  { %4592 = vmatpush1.bf16.msra.mxu0 %v4591_v53  ;;  %v4611_v53 = vpack.c.bf16 %v2031_v33, %v2029_v31  ;;  %v6172_v14 = vrot.slane %v6168_v1, %v6154_v54  ;;  %v2174_v17 = vld [vmem:[#allocation20 + $0x828] sm:$0xff]  ;;  %v2173_v30 = vld [vmem:[#allocation20 + $0x820] sm:$0xff]  ;;  %v2175_v32 = vld [vmem:[#allocation20 + $0x830] sm:$0xff] }
 0x672   :  { %4594 = vmatprep.subr.bf16.mxu0 %v4593_v59  ;;  %v4613_v59 = vpack.c.bf16 %v2036_v47, %v2034_v43  ;;  %v2177_v15 = vld [vmem:[#allocation20 + $0x840] sm:$0xff]  ;;  %v2179_v18 = vld [vmem:[#allocation20 + $0x850] sm:$0xff]  ;;  %v2186_v27 = vld [vmem:[#allocation20 + $0x888] sm:$0xff] }
 0x673   :  { %4720 = vmatpush1.bf16.msra.mxu1 %v4719_v11  ;;  %v4739_v11 = vpack.c.bf16 %v2159_v38, %v2157_v34  ;;  %v2490_v35 = vcombine.high %v6172_v14, %v6172_v14  ;;  %v4759_v22 = vpack.c.bf16 %v2179_v18, %v2177_v15  ;;  %v2181_v24 = vld [vmem:[#allocation20 + $0x860] sm:$0xff]  ;;  %v2183_v25 = vld [vmem:[#allocation20 + $0x870] sm:$0xff]  ;;  %v2190_v33 = vld [vmem:[#allocation20 + $0x8a8] sm:$0xff] }
 0x674   :  { %4722 = vmatprep.subr.bf16.mxu1 %v4721_v0  ;;  %v4741_v0 = vpack.c.bf16 %v2164_v49, %v2162_v37  ;;  %v2187_v31 = vld [vmem:[#allocation20 + $0x890] sm:$0xff]  ;;  %v2192_v34 = vld [vmem:[#allocation20 + $0x8b8] sm:$0xff]  ;;  %v2189_v43 = vld [vmem:[#allocation20 + $0x8a0] sm:$0xff] }
 0x675   :  { %4596 = vmatpush1.bf16.msra.mxu0 %v4595_v58  ;;  %v4615_v58 = vpack.c.bf16 %v2035_v60, %v2033_v50  ;;  %v4769_v38 = vpack.c.bf16 %v2192_v34, %v2190_v33  ;;  %v2191_v47 = vld [vmem:[#allocation20 + $0x8b0] sm:$0xff]  ;;  %v2194_v37 = vld [vmem:[#allocation20 + $0x8c8] sm:$0xff]  ;;  %v2196_v49 = vld [vmem:[#allocation20 + $0x8d8] sm:$0xff] }
 0x676   :  { %4598 = vmatprep.subr.bf16.mxu0 %v4597_v46  ;;  %v4617_v46 = vpack.c.bf16 %v2040_v4, %v2038_v3  ;;  %v2195_v50 = vld [vmem:[#allocation20 + $0x8d0] sm:$0xff]  ;;  %v2198_v60 = vld [vmem:[#allocation20 + $0x8e8] sm:$0xff]  ;;  %v2197_v3 = vld [vmem:[#allocation20 + $0x8e0] sm:$0xff] }
 0x677   :  { %4724 = vmatpush1.bf16.msra.mxu1 %v4723_v42  ;;  %v4743_v42 = vpack.c.bf16 %v2163_v51, %v2161_v62  ;;  %v2200_v62 = vld [vmem:[#allocation20 + $0x8f8] sm:$0xff]  ;;  %v2199_v4 = vld [vmem:[#allocation20 + $0x8f0] sm:$0xff]  ;;  %v2202_v63 = vld [vmem:[#allocation20 + $0x908] sm:$0xff] }
 0x678   :  { %4726 = vmatprep.subr.bf16.mxu1 %v4725_v45  ;;  %v2165_v45 = vld [vmem:[#allocation20 + $0x7e0] sm:$0xff]  ;;  %v4777_v51 = vpack.c.bf16 %v2200_v62, %v2198_v60  ;;  %v2204_v7 = vld [vmem:[#allocation20 + $0x918] sm:$0xff]  ;;  %v2203_v55 = vld [vmem:[#allocation20 + $0x910] sm:$0xff] }
 0x679   :  { %4600 = vmatpush1.bf16.msra.mxu0 %v4599_v5  ;;  %v4747_v5 = vpack.c.bf16 %v2167_v48, %v2165_v45  ;;  %v2206_v9 = vld [vmem:[#allocation20 + $0x928] sm:$0xff]  ;;  %v2217_v15 = vld [vmem:[#allocation20 + $0x980] sm:$0xff]  ;;  %v2219_v18 = vld [vmem:[#allocation20 + $0x990] sm:$0xff] }
 0x67a   :  { %4602 = vmatprep.subr.bf16.mxu0 %v4601_v12  ;;  %v2169_v12 = vld [vmem:[#allocation20 + $0x800] sm:$0xff]  ;;  %v2230_v33 = vld [vmem:[#allocation20 + $0x9e8] sm:$0xff]  ;;  %v2232_v34 = vld [vmem:[#allocation20 + $0x9f8] sm:$0xff] }
 0x67b   :  { %4728 = vmatpush1.bf16.msra.mxu1 %v4727_v8  ;;  %v4749_v8 = vpack.c.bf16 %v2172_v56, %v2170_v6  ;;  %v4751_v23 = vpack.c.bf16 %v2171_v61, %v2169_v12  ;;  %v2205_v6 = vld [vmem:[#allocation20 + $0x920] sm:$0xff]  ;;  %v2207_v56 = vld [vmem:[#allocation20 + $0x930] sm:$0xff] }
 0x67c   :  { %4730 = vmatprep.subr.bf16.mxu1 %v4729_v21  ;;  %v2176_v21 = vld [vmem:[#allocation20 + $0x838] sm:$0xff]  ;;  %v2209_v61 = vld [vmem:[#allocation20 + $0x940] sm:$0xff]  ;;  %v2235_v60 = vld [vmem:[#allocation20 + $0xa10] sm:$0xff] }
 0x67d   :  { %4604 = vmatpush1.bf16.msra.mxu0 %v4603_v41  ;;  %v4753_v26 = vpack.c.bf16 %v2176_v21, %v2174_v17  ;;  %v2178_v41 = vld [vmem:[#allocation20 + $0x848] sm:$0xff]  ;;  %v2211_v17 = vld [vmem:[#allocation20 + $0x950] sm:$0xff] }
 0x67e   :  { %4606 = vmatprep.subr.bf16.mxu0 %v4605_v10  ;;  %v4755_v10 = vpack.c.bf16 %v2175_v32, %v2173_v30  ;;  %v2214_v21 = vld [vmem:[#allocation20 + $0x968] sm:$0xff]  ;;  %v2213_v32 = vld [vmem:[#allocation20 + $0x960] sm:$0xff] }
 0x67f   :  { %4732 = vmatpush1.bf16.msra.mxu1 %v4731_v44  ;;  %v2180_v44 = vld [vmem:[#allocation20 + $0x858] sm:$0xff] }
 0x680   :  { %4734 = vmatprep.subr.bf16.mxu1 %v4733_v19  ;;  %v4757_v13 = vpack.c.bf16 %v2180_v44, %v2178_v41  ;;  %v2182_v19 = vld [vmem:[#allocation20 + $0x868] sm:$0xff]  ;;  %v2220_v44 = vld [vmem:[#allocation20 + $0x998] sm:$0xff] }
 0x681   :  { %4608 = vmatpush1.bf16.msra.mxu0 %v4607_v16  ;;  %v2188_v16 = vld [vmem:[#allocation20 + $0x898] sm:$0xff]  ;;  %v2218_v41 = vld [vmem:[#allocation20 + $0x988] sm:$0xff] }
 0x682   :  { %4610 = vmatprep.subr.bf16.mxu0 %v4609_v29  ;;  %v2185_v29 = vld [vmem:[#allocation20 + $0x880] sm:$0xff] }
 0x683   :  { %4736 = vmatpush1.bf16.msra.mxu1 %v4735_v28  ;;  %v4763_v28 = vpack.c.bf16 %v2183_v25, %v2181_v24  ;;  %v2221_v24 = vld [vmem:[#allocation20 + $0x9a0] sm:$0xff]  ;;  %v2223_v25 = vld [vmem:[#allocation20 + $0x9b0] sm:$0xff] }
 0x684   :  { %4738 = vmatprep.subr.bf16.mxu1 %v4737_v36  ;;  %v4767_v36 = vpack.c.bf16 %v2187_v31, %v2185_v29  ;;  %v2225_v29 = vld [vmem:[#allocation20 + $0x9c0] sm:$0xff]  ;;  %v2227_v31 = vld [vmem:[#allocation20 + $0x9d0] sm:$0xff] }
 0x685   :  { %4612 = vmatpush1.bf16.msra.mxu0 %v4611_v53  ;;  %v4771_v53 = vpack.c.bf16 %v2191_v47, %v2189_v43  ;;  %v2229_v43 = vld [vmem:[#allocation20 + $0x9e0] sm:$0xff]  ;;  %v2231_v47 = vld [vmem:[#allocation20 + $0x9f0] sm:$0xff] }
 0x686   :  { %4614 = vmatprep.subr.bf16.mxu0 %v4613_v59  ;;  %v2193_v59 = vld [vmem:[#allocation20 + $0x8c0] sm:$0xff] }
 0x687   :  { %4740 = vmatpush1.bf16.msra.mxu1 %v4739_v11  ;;  %v4773_v11 = vpack.c.bf16 %v2196_v49, %v2194_v37  ;;  %v2234_v37 = vld [vmem:[#allocation20 + $0xa08] sm:$0xff]  ;;  %v2236_v49 = vld [vmem:[#allocation20 + $0xa18] sm:$0xff] }
 0x688   :  { %4742 = vmatprep.subr.bf16.mxu1 %v4741_v0  ;;  %v4775_v0 = vpack.c.bf16 %v2195_v50, %v2193_v59  ;;  %v4813_v59 = vpack.c.bf16 %v2236_v49, %v2234_v37  ;;  %v2233_v50 = vld [vmem:[#allocation20 + $0xa00] sm:$0xff]  ;;  %v2271_v37 = vld [vmem:[#allocation20 + $0xb30] sm:$0xff]  ;;  %v2274_v49 = vld [vmem:[#allocation20 + $0xb48] sm:$0xff] }
 0x689   :  { %4616 = vmatpush1.bf16.msra.mxu0 %v4615_v58  ;;  %v4779_v58 = vpack.c.bf16 %v2199_v4, %v2197_v3  ;;  %v4815_v3 = vpack.c.bf16 %v2235_v60, %v2233_v50  ;;  %v2273_v50 = vld [vmem:[#allocation20 + $0xb40] sm:$0xff]  ;;  %v2275_v60 = vld [vmem:[#allocation20 + $0xb50] sm:$0xff] }
 0x68a   :  { %4618 = vmatprep.subr.bf16.mxu0 %v4617_v46  ;;  %v2201_v46 = vld [vmem:[#allocation20 + $0x900] sm:$0xff] }
 0x68b   :  { %4744 = vmatpush1.bf16.msra.mxu1 %v4743_v42  ;;  %v4781_v42 = vpack.c.bf16 %v2204_v7, %v2202_v63  ;;  %v4783_v45 = vpack.c.bf16 %v2203_v55, %v2201_v46  ;;  %v2237_v63 = vld [vmem:[#allocation20 + $0xa20] sm:$0xff]  ;;  %v2239_v7 = vld [vmem:[#allocation20 + $0xa30] sm:$0xff] }
 0x68c   :  { %4746 = vmatprep.subr.bf16.mxu1 %v4745_v39  ;;  %v2208_v39 = vld [vmem:[#allocation20 + $0x938] sm:$0xff]  ;;  %v4819_v46 = vpack.c.bf16 %v2239_v7, %v2237_v63  ;;  %v2277_v63 = vld [vmem:[#allocation20 + $0xb60] sm:$0xff]  ;;  %v2279_v7 = vld [vmem:[#allocation20 + $0xb70] sm:$0xff] }
 0x68d   :  { %4620 = vmatpush1.bf16.msra.mxu0 %v4619_v57  ;;  %v4785_v48 = vpack.c.bf16 %v2208_v39, %v2206_v9  ;;  %v2210_v57 = vld [vmem:[#allocation20 + $0x948] sm:$0xff]  ;;  %v2241_v9 = vld [vmem:[#allocation20 + $0xa40] sm:$0xff]  ;;  %v2243_v39 = vld [vmem:[#allocation20 + $0xa50] sm:$0xff] }
 0x68f   :  { %4748 = vmatpush1.bf16.msra.mxu1 %v4747_v5  ;;  %v2212_v5 = vld [vmem:[#allocation20 + $0x958] sm:$0xff] }
 0x690   :  { %4750 = vmatprep.subr.bf16.mxu1 %v4749_v8  ;;  %2661 = vmatmul.mubr.f32.vlgmr.msra.gmra.mrb[28].mxu0 %v6159_v52  ;;  %v4761_v52 = vpack.c.bf16 %v2184_v20, %v2182_v19  ;;  %v4787_v8 = vpack.c.bf16 %v2207_v56, %v2205_v6  ;;  %v4789_v12 = vpack.c.bf16 %v2212_v5, %v2210_v57  ;;  %v2222_v19 = vld [vmem:[#allocation20 + $0x9a8] sm:$0xff]  ;;  %v2224_v20 = vld [vmem:[#allocation20 + $0x9b8] sm:$0xff]  ;;  %v2245_v57 = vld [vmem:[#allocation20 + $0xa60] sm:$0xff] }
 0x691   :  { %v4823_v6 = vpack.c.bf16 %v2243_v39, %v2241_v9  ;;  %v2247_v5 = vld [vmem:[#allocation20 + $0xa70] sm:$0xff]  ;;  %v2286_v39 = vld [vmem:[#allocation20 + $0xba8] sm:$0xff] }
 0x692   :  { %2803 = vmatmul.mubr.f32.vlgmr.msra.gmra.mrb[40].mxu1 %v6162_v2  ;;  %v4765_v2 = vpack.c.bf16 %v2188_v16, %v2186_v27  ;;  %v2226_v27 = vld [vmem:[#allocation20 + $0x9c8] sm:$0xff]  ;;  %v2228_v16 = vld [vmem:[#allocation20 + $0x9d8] sm:$0xff]  ;;  %v2283_v9 = vld [vmem:[#allocation20 + $0xb90] sm:$0xff] }
 0x693   :  { %4752 = vmatpush1.bf16.msra.mxu1 %v4751_v23  ;;  %2873 = vmatprep.mubr.f32.mxu1 %v2490_v35  ;;  %v2216_v23 = vld [vmem:[#allocation20 + $0x978] sm:$0xff]  ;;  %v2215_v35 = vld [vmem:[#allocation20 + $0x970] sm:$0xff] }
 0x694   :  { %4754 = vmatprep.subr.bf16.mxu1 %v4753_v26  ;;  %v4791_v26 = vpack.c.bf16 %v2211_v17, %v2209_v61  ;;  %v4793_v30 = vpack.c.bf16 %v2216_v23, %v2214_v21  ;;  %v4827_v61 = vpack.c.bf16 %v2247_v5, %v2245_v57  ;;  %v2249_v17 = vld [vmem:[#allocation20 + $0xa80] sm:$0xff]  ;;  %v2251_v21 = vld [vmem:[#allocation20 + $0xa90] sm:$0xff]  ;;  %v2254_v23 = vld [vmem:[#allocation20 + $0xaa8] sm:$0xff] }
 0x695   :  { %v2287_v57 = vld [vmem:[#allocation20 + $0xbb0] sm:$0xff]  ;;  %v2290_v5 = vld [vmem:[#allocation20 + $0xbc8] sm:$0xff] }
 0x697   :  { %4756 = vmatpush1.bf16.msra.mxu1 %v4755_v10  ;;  %v4795_v10 = vpack.c.bf16 %v2215_v35, %v2213_v32  ;;  %v2253_v35 = vld [vmem:[#allocation20 + $0xaa0] sm:$0xff] }
 0x698   :  { %4758 = vmatprep.subr.bf16.mxu1 %v4757_v13  ;;  %v4797_v13 = vpack.c.bf16 %v2220_v44, %v2218_v41  ;;  %v2255_v41 = vld [vmem:[#allocation20 + $0xab0] sm:$0xff]  ;;  %v2258_v44 = vld [vmem:[#allocation20 + $0xac8] sm:$0xff] }
 0x69b   :  { %4760 = vmatpush1.bf16.msra.mxu1 %v4759_v22  ;;  %v4799_v22 = vpack.c.bf16 %v2219_v18, %v2217_v15  ;;  %v2257_v18 = vld [vmem:[#allocation20 + $0xac0] sm:$0xff] }
 0x69c   :  { %4762 = vmatprep.subr.bf16.mxu1 %v4761_v52  ;;  %v4801_v52 = vpack.c.bf16 %v2224_v20, %v2222_v19  ;;  %v2259_v19 = vld [vmem:[#allocation20 + $0xad0] sm:$0xff]  ;;  %v2262_v20 = vld [vmem:[#allocation20 + $0xae8] sm:$0xff] }
 0x69f   :  { %4764 = vmatpush1.bf16.msra.mxu1 %v4763_v28  ;;  %v4803_v28 = vpack.c.bf16 %v2223_v25, %v2221_v24  ;;  %v2261_v25 = vld [vmem:[#allocation20 + $0xae0] sm:$0xff] }
 0x6a0   :  { %4766 = vmatprep.subr.bf16.mxu1 %v4765_v2  ;;  %v4805_v2 = vpack.c.bf16 %v2228_v16, %v2226_v27  ;;  %v2263_v27 = vld [vmem:[#allocation20 + $0xaf0] sm:$0xff]  ;;  %v2266_v16 = vld [vmem:[#allocation20 + $0xb08] sm:$0xff] }
 0x6a3   :  { %4768 = vmatpush1.bf16.msra.mxu1 %v4767_v36  ;;  %v4807_v36 = vpack.c.bf16 %v2227_v31, %v2225_v29  ;;  %v2265_v31 = vld [vmem:[#allocation20 + $0xb00] sm:$0xff] }
 0x6a4   :  { %4770 = vmatprep.subr.bf16.mxu1 %v4769_v38  ;;  %v4809_v38 = vpack.c.bf16 %v2232_v34, %v2230_v33  ;;  %v2267_v33 = vld [vmem:[#allocation20 + $0xb10] sm:$0xff]  ;;  %v2270_v34 = vld [vmem:[#allocation20 + $0xb28] sm:$0xff] }
 0x6a7   :  { %4772 = vmatpush1.bf16.msra.mxu1 %v4771_v53  ;;  %v2475_v53 = vcombine.high %v6168_v1, %v6168_v1 }
 0x6a8   :  { %4774 = vmatprep.subr.bf16.mxu1 %v4773_v11  ;;  %v4811_v11 = vpack.c.bf16 %v2231_v47, %v2229_v43  ;;  %v2269_v47 = vld [vmem:[#allocation20 + $0xb20] sm:$0xff] }
 0x6a9   :  { %v6181_v62 = vrot.slane %v2475_v53, %v6154_v54  ;;  %v2276_v53 = vld [vmem:[#allocation20 + $0xb58] sm:$0xff] }
 0x6ab   :  { %4776 = vmatpush1.bf16.msra.mxu1 %v4775_v0  ;;  %v2238_v0 = vld [vmem:[#allocation20 + $0xa28] sm:$0xff]  ;;  %v2491_v1 = vcombine.high %v6181_v62, %v6181_v62 }
 0x6ac   :  { %4778 = vmatprep.subr.bf16.mxu1 %v4777_v51  ;;  %v2240_v51 = vld [vmem:[#allocation20 + $0xa38] sm:$0xff] }
 0x6ad   :  { %v4817_v4 = vpack.c.bf16 %v2240_v51, %v2238_v0  ;;  %v2278_v0 = vld [vmem:[#allocation20 + $0xb68] sm:$0xff]  ;;  %v2280_v51 = vld [vmem:[#allocation20 + $0xb78] sm:$0xff] }
 0x6af   :  { %4780 = vmatpush1.bf16.msra.mxu1 %v4779_v58  ;;  %v2242_v58 = vld [vmem:[#allocation20 + $0xa48] sm:$0xff] }
 0x6b0   :  { %4782 = vmatprep.subr.bf16.mxu1 %v4781_v42  ;;  %v2244_v42 = vld [vmem:[#allocation20 + $0xa58] sm:$0xff] }
 0x6b1   :  { %v4821_v55 = vpack.c.bf16 %v2244_v42, %v2242_v58  ;;  %v2284_v58 = vld [vmem:[#allocation20 + $0xb98] sm:$0xff]  ;;  %v4859_v42 = vpack.c.bf16 %v2279_v7, %v2277_v63 }
 0x6b3   :  { %4784 = vmatpush1.bf16.msra.mxu1 %v4783_v45  ;;  %v2246_v45 = vld [vmem:[#allocation20 + $0xa68] sm:$0xff] }
 0x6b4   :  { %4786 = vmatprep.subr.bf16.mxu1 %v4785_v48  ;;  %v2248_v48 = vld [vmem:[#allocation20 + $0xa78] sm:$0xff] }
 0x6b5   :  { %v4825_v56 = vpack.c.bf16 %v2248_v48, %v2246_v45  ;;  %v2288_v45 = vld [vmem:[#allocation20 + $0xbb8] sm:$0xff] }
 0x6b7   :  { %4788 = vmatpush1.bf16.msra.mxu1 %v4787_v8  ;;  %v2250_v8 = vld [vmem:[#allocation20 + $0xa88] sm:$0xff] }
 0x6b8   :  { %4790 = vmatprep.subr.bf16.mxu1 %v4789_v12  ;;  %v2252_v12 = vld [vmem:[#allocation20 + $0xa98] sm:$0xff] }
 0x6bb   :  { %4792 = vmatpush1.bf16.msra.mxu1 %v4791_v26  ;;  %v2256_v26 = vld [vmem:[#allocation20 + $0xab8] sm:$0xff] }
 0x6bc   :  { %4794 = vmatprep.subr.bf16.mxu1 %v4793_v30  ;;  %v4831_v30 = vpack.c.bf16 %v2251_v21, %v2249_v17  ;;  %v4833_v32 = vpack.c.bf16 %v2256_v26, %v2254_v23  ;;  %v2291_v17 = vld [vmem:[#allocation20 + $0xbd0] sm:$0xff]  ;;  %v2294_v21 = vld [vmem:[#allocation20 + $0xbe8] sm:$0xff]  ;;  %v2296_v23 = vld [vmem:[#allocation20 + $0xbf8] sm:$0xff] }
 0x6bf   :  { %4796 = vmatpush1.bf16.msra.mxu1 %v4795_v10  ;;  %v2260_v10 = vld [vmem:[#allocation20 + $0xad8] sm:$0xff] }
 0x6c0   :  { %4798 = vmatprep.subr.bf16.mxu1 %v4797_v13  ;;  %v4835_v13 = vpack.c.bf16 %v2255_v41, %v2253_v35  ;;  %v4837_v15 = vpack.c.bf16 %v2260_v10, %v2258_v44  ;;  %v2295_v35 = vld [vmem:[#allocation20 + $0xbf0] sm:$0xff]  ;;  %v2298_v41 = vld [vmem:[#allocation20 + $0xc08] sm:$0xff]  ;;  %v2300_v44 = vld [vmem:[#allocation20 + $0xc18] sm:$0xff] }
 0x6c1   :  { %v6186_v10 = vld [vmem:[#allocation5 + $0x18] sm:$0xff] }
 0x6c3   :  { %4800 = vmatpush1.bf16.msra.mxu1 %v4799_v22  ;;  %v2264_v22 = vld [vmem:[#allocation20 + $0xaf8] sm:$0xff] }
 0x6c4   :  { %4802 = vmatprep.subr.bf16.mxu1 %v4801_v52  ;;  %v4839_v52 = vpack.c.bf16 %v2259_v19, %v2257_v18  ;;  %v4841_v24 = vpack.c.bf16 %v2264_v22, %v2262_v20  ;;  %v2297_v18 = vld [vmem:[#allocation20 + $0xc00] sm:$0xff]  ;;  %v2299_v19 = vld [vmem:[#allocation20 + $0xc10] sm:$0xff]  ;;  %v6190_v20 = vrot.slane %v6186_v10, %v6154_v54  ;;  %v2302_v22 = vld [vmem:[#allocation20 + $0xc28] sm:$0xff] }
 0x6c7   :  { %4804 = vmatpush1.bf16.msra.mxu1 %v4803_v28  ;;  %v2268_v28 = vld [vmem:[#allocation20 + $0xb18] sm:$0xff] }
 0x6c8   :  { %4806 = vmatprep.subr.bf16.mxu1 %v4805_v2  ;;  %v4843_v2 = vpack.c.bf16 %v2263_v27, %v2261_v25  ;;  %v4845_v29 = vpack.c.bf16 %v2268_v28, %v2266_v16  ;;  %v2301_v27 = vld [vmem:[#allocation20 + $0xc20] sm:$0xff]  ;;  %v2303_v16 = vld [vmem:[#allocation20 + $0xc30] sm:$0xff]  ;;  %v2507_v28 = vcombine.high %v6190_v20, %v6190_v20 }
 0x6cb   :  { %4808 = vmatpush1.bf16.msra.mxu1 %v4807_v36  ;;  %v2272_v36 = vld [vmem:[#allocation20 + $0xb38] sm:$0xff] }
 0x6cc   :  { %4810 = vmatprep.subr.bf16.mxu1 %v4809_v38  ;;  %v4847_v38 = vpack.c.bf16 %v2267_v33, %v2265_v31  ;;  %v4849_v43 = vpack.c.bf16 %v2272_v36, %v2270_v34  ;;  %v2305_v31 = vld [vmem:[#allocation20 + $0xc40] sm:$0xff]  ;;  %v2307_v33 = vld [vmem:[#allocation20 + $0xc50] sm:$0xff] }
 0x6cd   :  { %v3100_v34 = vld [vmem:[#allocation23 + $0x8] sm:$0xff]  ;;  %v3102_v36 = vld [vmem:[#allocation23 + $0x18] sm:$0xff]  ;;  %v4887_v7 = vpack.c.bf16 %v2307_v33, %v2305_v31  ;;  %v3121_v31 = vld [vmem:[#allocation23 + $0xb0] sm:$0xff] }
 0x6cf   :  { %4812 = vmatpush1.bf16.msra.mxu1 %v4811_v11  ;;  %v4851_v11 = vpack.c.bf16 %v2271_v37, %v2269_v47  ;;  %v6195_v47 = vpack.c.bf16 %v3102_v36, %v3100_v34  ;;  %v3101_v37 = vld [vmem:[#allocation23 + $0x10] sm:$0xff]  ;;  %v3124_v36 = vld [vmem:[#allocation23 + $0xc8] sm:$0xff] }
 0x6d0   :  { %4814 = vmatprep.subr.bf16.mxu1 %v4813_v59  ;;  %v4853_v59 = vpack.c.bf16 %v2276_v53, %v2274_v49  ;;  %v3104_v49 = vld [vmem:[#allocation23 + $0x28] sm:$0xff]  ;;  %v3106_v53 = vld [vmem:[#allocation23 + $0x38] sm:$0xff] }
 0x6d1   :  { %5006 = vmatprep.subr.bf16.mxu0 %v6195_v47  ;;  %v2323_v34 = vld [vmem:[#allocation20 + $0xcd0] sm:$0xff] }
 0x6d2   :  { %2874 = vmatmul.mubr.f32.vlgmr.msra.gmra.mrb[40].mxu1 %v6172_v14  ;;  %v4829_v14 = vpack.c.bf16 %v2252_v12, %v2250_v8  ;;  %v2292_v8 = vld [vmem:[#allocation20 + $0xbd8] sm:$0xff] }
 0x6d3   :  { %4816 = vmatpush1.bf16.msra.mxu1 %v4815_v3  ;;  %2944 = vmatprep.mubr.f32.mxu1 %v2491_v1  ;;  %v4855_v3 = vpack.c.bf16 %v2275_v60, %v2273_v50  ;;  %v2282_v1 = vld [vmem:[#allocation20 + $0xb88] sm:$0xff]  ;;  %v6199_v50 = vpack.c.bf16 %v3106_v53, %v3104_v49  ;;  %v3105_v60 = vld [vmem:[#allocation23 + $0x30] sm:$0xff] }
 0x6d4   :  { %4818 = vmatprep.subr.bf16.mxu1 %v4817_v4  ;;  %v4857_v4 = vpack.c.bf16 %v2280_v51, %v2278_v0  ;;  %v3108_v0 = vld [vmem:[#allocation23 + $0x48] sm:$0xff] }
 0x6d5   :  { %v2310_v51 = vld [vmem:[#allocation20 + $0xc68] sm:$0xff] }
 0x6d7   :  { %4820 = vmatpush1.bf16.msra.mxu1 %v4819_v46  ;;  %v4861_v46 = vpack.c.bf16 %v2284_v58, %v2282_v1  ;;  %v2309_v1 = vld [vmem:[#allocation20 + $0xc60] sm:$0xff] }
 0x6d8   :  { %4822 = vmatprep.subr.bf16.mxu1 %v4821_v55  ;;  %v2281_v55 = vld [vmem:[#allocation20 + $0xb80] sm:$0xff] }
 0x6d9   :  { %v4863_v48 = vpack.c.bf16 %v2283_v9, %v2281_v55  ;;  %v2311_v9 = vld [vmem:[#allocation20 + $0xc70] sm:$0xff] }
 0x6db   :  { %4824 = vmatpush1.bf16.msra.mxu1 %v4823_v6  ;;  %v4865_v6 = vpack.c.bf16 %v2288_v45, %v2286_v39  ;;  %v3112_v39 = vld [vmem:[#allocation23 + $0x68] sm:$0xff]  ;;  %v3114_v45 = vld [vmem:[#allocation23 + $0x78] sm:$0xff] }
 0x6dc   :  { %4826 = vmatprep.subr.bf16.mxu1 %v4825_v56  ;;  %v2285_v56 = vld [vmem:[#allocation20 + $0xba0] sm:$0xff] }
 0x6dd   :  { %v4867_v12 = vpack.c.bf16 %v2287_v57, %v2285_v56  ;;  %v4891_v57 = vpack.c.bf16 %v2311_v9, %v2309_v1  ;;  %v2330_v1 = vld [vmem:[#allocation20 + $0xd08] sm:$0xff]  ;;  %v2329_v9 = vld [vmem:[#allocation20 + $0xd00] sm:$0xff] }
 0x6df   :  { %4828 = vmatpush1.bf16.msra.mxu1 %v4827_v61  ;;  %v4869_v61 = vpack.c.bf16 %v2292_v8, %v2290_v5  ;;  %v2313_v5 = vld [vmem:[#allocation20 + $0xc80] sm:$0xff]  ;;  %v6212_v8 = vpack.c.bf16 %v3114_v45, %v3112_v39 }
 0x6e0   :  { %4830 = vmatprep.subr.bf16.mxu1 %v4829_v14  ;;  %v2289_v14 = vld [vmem:[#allocation20 + $0xbc0] sm:$0xff] }
 0x6e1   :  { %v4871_v26 = vpack.c.bf16 %v2291_v17, %v2289_v14  ;;  %v2315_v17 = vld [vmem:[#allocation20 + $0xc90] sm:$0xff]  ;;  %v3127_v45 = vld [vmem:[#allocation23 + $0xe0] sm:$0xff] }
 0x6e3   :  { %4832 = vmatpush1.bf16.msra.mxu1 %v4831_v30  ;;  %v4873_v30 = vpack.c.bf16 %v2296_v23, %v2294_v21  ;;  %v3116_v21 = vld [vmem:[#allocation23 + $0x88] sm:$0xff]  ;;  %v3118_v23 = vld [vmem:[#allocation23 + $0x98] sm:$0xff] }
 0x6e4   :  { %4834 = vmatprep.subr.bf16.mxu1 %v4833_v32  ;;  %v2293_v32 = vld [vmem:[#allocation20 + $0xbe0] sm:$0xff] }
 0x6e7   :  { %4836 = vmatpush1.bf16.msra.mxu1 %v4835_v13  ;;  %v4875_v13 = vpack.c.bf16 %v2295_v35, %v2293_v32  ;;  %v4895_v35 = vpack.c.bf16 %v2315_v17, %v2313_v5  ;;  %v3132_v5 = vld [vmem:[#allocation23 + $0x108] sm:$0xff] }
 0x6e8   :  { %4838 = vmatprep.subr.bf16.mxu1 %v4837_v15  ;;  %v4877_v15 = vpack.c.bf16 %v2300_v44, %v2298_v41  ;;  %v2317_v41 = vld [vmem:[#allocation20 + $0xca0] sm:$0xff]  ;;  %v6218_v44 = vpack.c.bf16 %v3118_v23, %v3116_v21 }
 0x6e9   :  { %v2333_v23 = vld [vmem:[#allocation20 + $0xd20] sm:$0xff] }
 0x6eb   :  { %4840 = vmatpush1.bf16.msra.mxu1 %v4839_v52  ;;  %v2304_v52 = vld [vmem:[#allocation20 + $0xc38] sm:$0xff] }
 0x6ec   :  { %4842 = vmatprep.subr.bf16.mxu1 %v4841_v24  ;;  %v4879_v24 = vpack.c.bf16 %v2299_v19, %v2297_v18  ;;  %v4881_v25 = vpack.c.bf16 %v2304_v52, %v2302_v22  ;;  %v2319_v19 = vld [vmem:[#allocation20 + $0xcb0] sm:$0xff]  ;;  %v3122_v52 = vld [vmem:[#allocation23 + $0xb8] sm:$0xff] }
 0x6ed   :  { %v3120_v22 = vld [vmem:[#allocation23 + $0xa8] sm:$0xff] }
 0x6ef   :  { %4844 = vmatpush1.bf16.msra.mxu1 %v4843_v2  ;;  %v2306_v2 = vld [vmem:[#allocation20 + $0xc48] sm:$0xff] }
 0x6f0   :  { %4846 = vmatprep.subr.bf16.mxu1 %v4845_v29  ;;  %v2308_v29 = vld [vmem:[#allocation20 + $0xc58] sm:$0xff] }
 0x6f3   :  { %4848 = vmatpush1.bf16.msra.mxu1 %v4847_v38  ;;  %v3099_v38 = vld [vmem:[#allocation23] sm:$0xff] }
 0x6f4   :  { %4850 = vmatprep.subr.bf16.mxu1 %v4849_v43  ;;  %v4883_v43 = vpack.c.bf16 %v2303_v16, %v2301_v27  ;;  %v4899_v16 = vpack.c.bf16 %v2319_v19, %v2317_v41  ;;  %v2338_v19 = vld [vmem:[#allocation20 + $0xd48] sm:$0xff] }
 0x6f7   :  { %4852 = vmatpush1.bf16.msra.mxu1 %v4851_v11  ;;  %v4885_v11 = vpack.c.bf16 %v2308_v29, %v2306_v2  ;;  %v6224_v2 = vpack.c.bf16 %v3122_v52, %v3120_v22  ;;  %v3119_v29 = vld [vmem:[#allocation23 + $0xa0] sm:$0xff]  ;;  %v2340_v22 = vld [vmem:[#allocation20 + $0xd58] sm:$0xff] }
 0x6f8   :  { %4854 = vmatprep.subr.bf16.mxu1 %v4853_v59  ;;  %v6197_v59 = vpack.c.bf16 %v3101_v37, %v3099_v38  ;;  %v3126_v38 = vld [vmem:[#allocation23 + $0xd8] sm:$0xff]  ;;  %v6227_v49 = vpack.c.bf16 %v3121_v31, %v3119_v29  ;;  %v3137_v29 = vld [vmem:[#allocation23 + $0x130] sm:$0xff]  ;;  %v4917_v31 = vpack.c.bf16 %v2340_v22, %v2338_v19 }
 0x6f9   :  { %v2328_v37 = vld [vmem:[#allocation20 + $0xcf8] sm:$0xff] }
 0x6fa   :  { %5008 = vmatpush1.bf16.msra.mxu0 %v6197_v59  ;;  %v3149_v19 = vld [vmem:[#allocation23 + $0x190] sm:$0xff] }
 0x6fb   :  { %4856 = vmatpush1.bf16.msra.mxu1 %v4855_v3  ;;  %v2312_v3 = vld [vmem:[#allocation20 + $0xc78] sm:$0xff]  ;;  %5010 = vmatprep.subr.bf16.mxu0 %v6199_v50 }
 0x6fc   :  { %4858 = vmatprep.subr.bf16.mxu1 %v4857_v4  ;;  %v3110_v4 = vld [vmem:[#allocation23 + $0x58] sm:$0xff]  ;;  %v4889_v55 = vpack.c.bf16 %v2312_v3, %v2310_v51  ;;  %v2327_v3 = vld [vmem:[#allocation20 + $0xcf0] sm:$0xff] }
 0x6fd   :  { %v6206_v58 = vpack.c.bf16 %v3110_v4, %v3108_v0  ;;  %v3125_v0 = vld [vmem:[#allocation23 + $0xd0] sm:$0xff]  ;;  %v3128_v4 = vld [vmem:[#allocation23 + $0xe8] sm:$0xff] }
 0x6ff   :  { %4860 = vmatpush1.bf16.msra.mxu1 %v4859_v42  ;;  %v3107_v42 = vld [vmem:[#allocation23 + $0x40] sm:$0xff] }
 0x700   :  { %4862 = vmatprep.subr.bf16.mxu1 %v4861_v46  ;;  %v3109_v46 = vld [vmem:[#allocation23 + $0x50] sm:$0xff] }
 0x701   :  { %v6209_v56 = vpack.c.bf16 %v3109_v46, %v3107_v42  ;;  %v2332_v42 = vld [vmem:[#allocation20 + $0xd18] sm:$0xff] }
 0x703   :  { %4864 = vmatpush1.bf16.msra.mxu1 %v4863_v48  ;;  %v2314_v48 = vld [vmem:[#allocation20 + $0xc88] sm:$0xff] }
 0x704   :  { %4866 = vmatprep.subr.bf16.mxu1 %v4865_v6  ;;  %v2316_v6 = vld [vmem:[#allocation20 + $0xc98] sm:$0xff] }
 0x705   :  { %v4893_v14 = vpack.c.bf16 %v2316_v6, %v2314_v48  ;;  %v3129_v48 = vld [vmem:[#allocation23 + $0xf0] sm:$0xff]  ;;  %v4909_v6 = vpack.c.bf16 %v2332_v42, %v2330_v1  ;;  %v3146_v1 = vld [vmem:[#allocation23 + $0x178] sm:$0xff]  ;;  %v2346_v42 = vld [vmem:[#allocation20 + $0xd88] sm:$0xff] }
 0x706   :  { %v6239_v17 = vpack.c.bf16 %v3129_v48, %v3127_v45  ;;  %v2345_v48 = vld [vmem:[#allocation20 + $0xd80] sm:$0xff] }
 0x707   :  { %4868 = vmatpush1.bf16.msra.mxu1 %v4867_v12  ;;  %v3111_v12 = vld [vmem:[#allocation23 + $0x60] sm:$0xff] }
 0x708   :  { %4870 = vmatprep.subr.bf16.mxu1 %v4869_v61  ;;  %v3113_v61 = vld [vmem:[#allocation23 + $0x70] sm:$0xff] }
 0x709   :  { %v6215_v32 = vpack.c.bf16 %v3113_v61, %v3111_v12  ;;  %v3134_v12 = vld [vmem:[#allocation23 + $0x118] sm:$0xff]  ;;  %v2334_v61 = vld [vmem:[#allocation20 + $0xd28] sm:$0xff] }
 0x70b   :  { %4872 = vmatpush1.bf16.msra.mxu1 %v4871_v26  ;;  %v2318_v26 = vld [vmem:[#allocation20 + $0xca8] sm:$0xff] }
 0x70c   :  { %4874 = vmatprep.subr.bf16.mxu1 %v4873_v30  ;;  %v2320_v30 = vld [vmem:[#allocation20 + $0xcb8] sm:$0xff] }
 0x70d   :  { %v4897_v18 = vpack.c.bf16 %v2320_v30, %v2318_v26  ;;  %v6242_v26 = vpack.c.bf16 %v3134_v12, %v3132_v5  ;;  %v3131_v30 = vld [vmem:[#allocation23 + $0x100] sm:$0xff]  ;;  %v3145_v5 = vld [vmem:[#allocation23 + $0x170] sm:$0xff] }
 0x70f   :  { %4876 = vmatpush1.bf16.msra.mxu1 %v4875_v13  ;;  %v3115_v13 = vld [vmem:[#allocation23 + $0x80] sm:$0xff] }
 0x710   :  { %4878 = vmatprep.subr.bf16.mxu1 %v4877_v15  ;;  %v3117_v15 = vld [vmem:[#allocation23 + $0x90] sm:$0xff] }
 0x711   :  { %v6221_v27 = vpack.c.bf16 %v3117_v15, %v3115_v13  ;;  %v2335_v13 = vld [vmem:[#allocation20 + $0xd30] sm:$0xff] }
 0x712   :  { %2945 = vmatmul.mubr.f32.vlgmr.msra.gmra.mrb[40].mxu1 %v6181_v62  ;;  %v3103_v62 = vld [vmem:[#allocation23 + $0x20] sm:$0xff]  ;;  %v3136_v15 = vld [vmem:[#allocation23 + $0x128] sm:$0xff] }
 0x713   :  { %4880 = vmatpush1.bf16.msra.mxu1 %v4879_v24  ;;  %3015 = vmatprep.mubr.f32.mxu1 %v2507_v28  ;;  %v6203_v63 = vpack.c.bf16 %v3105_v60, %v3103_v62  ;;  %v2322_v24 = vld [vmem:[#allocation20 + $0xcc8] sm:$0xff]  ;;  %v2321_v28 = vld [vmem:[#allocation20 + $0xcc0] sm:$0xff]  ;;  %v6230_v62 = vpack.c.bf16 %v3126_v38, %v3124_v36 }
 0x714   :  { %4882 = vmatprep.subr.bf16.mxu1 %v4881_v25  ;;  %v2324_v25 = vld [vmem:[#allocation20 + $0xcd8] sm:$0xff]  ;;  %v4903_v53 = vpack.c.bf16 %v2323_v34, %v2321_v28  ;;  %v3123_v60 = vld [vmem:[#allocation23 + $0xc0] sm:$0xff]  ;;  %v3140_v34 = vld [vmem:[#allocation23 + $0x148] sm:$0xff] }
 0x715   :  { %5012 = vmatpush1.bf16.msra.mxu0 %v6203_v63  ;;  %v4901_v33 = vpack.c.bf16 %v2324_v25, %v2322_v24  ;;  %v6233_v46 = vpack.c.bf16 %v3125_v0, %v3123_v60  ;;  %v4915_v24 = vpack.c.bf16 %v2335_v13, %v2333_v23  ;;  %v2337_v25 = vld [vmem:[#allocation20 + $0xd40] sm:$0xff]  ;;  %v2342_v38 = vld [vmem:[#allocation20 + $0xd68] sm:$0xff] }
 0x716   :  { %5014 = vmatprep.subr.bf16.mxu0 %v6206_v58  ;;  %v3135_v28 = vld [vmem:[#allocation23 + $0x120] sm:$0xff]  ;;  %v3142_v36 = vld [vmem:[#allocation23 + $0x158] sm:$0xff] }
 0x717   :  { %4884 = vmatpush1.bf16.msra.mxu1 %v4883_v43  ;;  %v2326_v43 = vld [vmem:[#allocation20 + $0xce8] sm:$0xff]  ;;  %v6254_v60 = vpack.c.bf16 %v3142_v36, %v3140_v34  ;;  %v2349_v13 = vld [vmem:[#allocation20 + $0xda0] sm:$0xff] }
 0x718   :  { %4886 = vmatprep.subr.bf16.mxu1 %v4885_v11  ;;  %v2325_v11 = vld [vmem:[#allocation20 + $0xce0] sm:$0xff]  ;;  %v4905_v51 = vpack.c.bf16 %v2328_v37, %v2326_v43  ;;  %v2344_v43 = vld [vmem:[#allocation20 + $0xd78] sm:$0xff]  ;;  %v6251_v37 = vpack.c.bf16 %v3137_v29, %v3135_v28  ;;  %v2350_v23 = vld [vmem:[#allocation20 + $0xda8] sm:$0xff] }
 0x719   :  { %5016 = vmatpush1.bf16.msra.mxu0 %v6209_v56  ;;  %v3139_v0 = vld [vmem:[#allocation23 + $0x140] sm:$0xff]  ;;  %v3154_v28 = vld [vmem:[#allocation23 + $0x1b8] sm:$0xff] }
 0x71a   :  { %5018 = vmatprep.subr.bf16.mxu0 %v6212_v8  ;;  %v2354_v29 = vld [vmem:[#allocation20 + $0xdc8] sm:$0xff] }
 0x71b   :  { %4888 = vmatpush1.bf16.msra.mxu1 %v4887_v7  ;;  %v3130_v7 = vld [vmem:[#allocation23 + $0xf8] sm:$0xff] }
 0x71c   :  { %4890 = vmatprep.subr.bf16.mxu1 %v4889_v55  ;;  %v4907_v55 = vpack.c.bf16 %v2327_v3, %v2325_v11  ;;  %v6236_v39 = vpack.c.bf16 %v3130_v7, %v3128_v4  ;;  %v2341_v11 = vld [vmem:[#allocation20 + $0xd60] sm:$0xff]  ;;  %v4921_v3 = vpack.c.bf16 %v2344_v43, %v2342_v38  ;;  %v2343_v4 = vld [vmem:[#allocation20 + $0xd70] sm:$0xff] }
 0x71d   :  { %5020 = vmatpush1.bf16.msra.mxu0 %v6215_v32  ;;  %v3144_v7 = vld [vmem:[#allocation23 + $0x168] sm:$0xff]  ;;  %v4923_v45 = vpack.c.bf16 %v2343_v4, %v2341_v11  ;;  %v3151_v38 = vld [vmem:[#allocation23 + $0x1a0] sm:$0xff]  ;;  %v3153_v43 = vld [vmem:[#allocation23 + $0x1b0] sm:$0xff] }
 0x71e   :  { %5022 = vmatprep.subr.bf16.mxu0 %v6218_v44  ;;  %v2353_v11 = vld [vmem:[#allocation20 + $0xdc0] sm:$0xff]  ;;  %v6275_v4 = vpack.c.bf16 %v3153_v43, %v3151_v38 }
 0x71f   :  { %4892 = vmatpush1.bf16.msra.mxu1 %v4891_v57  ;;  %v2331_v57 = vld [vmem:[#allocation20 + $0xd10] sm:$0xff] }
 0x720   :  { %4894 = vmatprep.subr.bf16.mxu1 %v4893_v14  ;;  %v2336_v14 = vld [vmem:[#allocation20 + $0xd38] sm:$0xff]  ;;  %v4911_v21 = vpack.c.bf16 %v2331_v57, %v2329_v9  ;;  %v3143_v57 = vld [vmem:[#allocation23 + $0x160] sm:$0xff] }
 0x721   :  { %5024 = vmatpush1.bf16.msra.mxu0 %v6221_v27  ;;  %v4913_v41 = vpack.c.bf16 %v2336_v14, %v2334_v61  ;;  %v2347_v61 = vld [vmem:[#allocation20 + $0xd90] sm:$0xff] }
 0x722   :  { %5026 = vmatprep.subr.bf16.mxu0 %v6224_v2  ;;  %v3148_v14 = vld [vmem:[#allocation23 + $0x188] sm:$0xff] }
 0x723   :  { %4896 = vmatpush1.bf16.msra.mxu1 %v4895_v35  ;;  %v3133_v35 = vld [vmem:[#allocation23 + $0x110] sm:$0xff] }
 0x724   :  { %4898 = vmatprep.subr.bf16.mxu1 %v4897_v18  ;;  %v3138_v18 = vld [vmem:[#allocation23 + $0x138] sm:$0xff]  ;;  %v6245_v52 = vpack.c.bf16 %v3133_v35, %v3131_v30  ;;  %v6263_v35 = vpack.c.bf16 %v3145_v5, %v3143_v57  ;;  %v2492_v57 = vcombine.high %v6186_v10, %v6186_v10 }
 0x725   :  { %5028 = vmatpush1.bf16.msra.mxu0 %v6227_v49  ;;  %v2352_v30 = vld [vmem:[#allocation20 + $0xdb8] sm:$0xff] }
 0x726   :  { %5030 = vmatprep.subr.bf16.mxu0 %v6230_v62  ;;  %v4929_v22 = vpack.c.bf16 %v2352_v30, %v2350_v23  ;;  %v2366_v23 = vld [vmem:[#allocation20 + $0xe28] sm:$0xff]  ;;  %v2368_v30 = vld [vmem:[#allocation20 + $0xe38] sm:$0xff] }
 0x727   :  { %4900 = vmatpush1.bf16.msra.mxu1 %v4899_v16  ;;  %v6248_v16 = vpack.c.bf16 %v3138_v18, %v3136_v15  ;;  %v3147_v18 = vld [vmem:[#allocation23 + $0x180] sm:$0xff] }
 0x728   :  { %4902 = vmatprep.subr.bf16.mxu1 %v4901_v33  ;;  %v2339_v33 = vld [vmem:[#allocation20 + $0xd50] sm:$0xff] }
 0x729   :  { %5032 = vmatpush1.bf16.msra.mxu0 %v6233_v46 }
 0x72a   :  { %5034 = vmatprep.subr.bf16.mxu0 %v6236_v39 }
 0x72b   :  { %4904 = vmatpush1.bf16.msra.mxu1 %v4903_v53  ;;  %v4919_v53 = vpack.c.bf16 %v2339_v33, %v2337_v25  ;;  %v3152_v25 = vld [vmem:[#allocation23 + $0x1a8] sm:$0xff]  ;;  %v6269_v33 = vpack.c.bf16 %v3149_v19, %v3147_v18  ;;  %v2365_v18 = vld [vmem:[#allocation20 + $0xe20] sm:$0xff] }
 0x72c   :  { %4906 = vmatprep.subr.bf16.mxu1 %v4905_v51  ;;  %v3141_v51 = vld [vmem:[#allocation23 + $0x150] sm:$0xff]  ;;  %v6272_v36 = vpack.c.bf16 %v3154_v28, %v3152_v25  ;;  %v2369_v28 = vld [vmem:[#allocation20 + $0xe40] sm:$0xff] }
 0x72d   :  { %5036 = vmatpush1.bf16.msra.mxu0 %v6239_v17  ;;  %v6257_v9 = vpack.c.bf16 %v3141_v51, %v3139_v0  ;;  %v2355_v0 = vld [vmem:[#allocation20 + $0xdd0] sm:$0xff]  ;;  %v2358_v51 = vld [vmem:[#allocation20 + $0xde8] sm:$0xff] }
 0x72e   :  { %5038 = vmatprep.subr.bf16.mxu0 %v6242_v26  ;;  %v2367_v19 = vld [vmem:[#allocation20 + $0xe30] sm:$0xff] }
 0x72f   :  { %4908 = vmatpush1.bf16.msra.mxu1 %v4907_v55  ;;  %v2348_v55 = vld [vmem:[#allocation20 + $0xd98] sm:$0xff]  ;;  %v4947_v25 = vpack.c.bf16 %v2367_v19, %v2365_v18  ;;  %v2390_v19 = vld [vmem:[#allocation20 + $0xee8] sm:$0xff] }
 0x730   :  { %4910 = vmatprep.subr.bf16.mxu1 %v4909_v6  ;;  %v6260_v6 = vpack.c.bf16 %v3146_v1, %v3144_v7  ;;  %v4925_v12 = vpack.c.bf16 %v2348_v55, %v2346_v42  ;;  %v4935_v7 = vpack.c.bf16 %v2355_v0, %v2353_v11  ;;  %v2357_v42 = vld [vmem:[#allocation20 + $0xde0] sm:$0xff]  ;;  %v2359_v55 = vld [vmem:[#allocation20 + $0xdf0] sm:$0xff]  ;;  %v2378_v0 = vld [vmem:[#allocation20 + $0xe88] sm:$0xff] }
 0x731   :  { %5040 = vmatpush1.bf16.msra.mxu0 %v6245_v52  ;;  %v4939_v5 = vpack.c.bf16 %v2359_v55, %v2357_v42  ;;  %v2375_v11 = vld [vmem:[#allocation20 + $0xe70] sm:$0xff]  ;;  %v2382_v42 = vld [vmem:[#allocation20 + $0xea8] sm:$0xff]  ;;  %v2384_v55 = vld [vmem:[#allocation20 + $0xeb8] sm:$0xff] }
 0x732   :  { %5042 = vmatprep.subr.bf16.mxu0 %v6248_v16 }
 0x733   :  { %4912 = vmatpush1.bf16.msra.mxu1 %v4911_v21  ;;  %v3150_v21 = vld [vmem:[#allocation23 + $0x198] sm:$0xff] }
 0x734   :  { %4914 = vmatprep.subr.bf16.mxu1 %v4913_v41  ;;  %v4927_v41 = vpack.c.bf16 %v2347_v61, %v2345_v48  ;;  %v6266_v15 = vpack.c.bf16 %v3150_v21, %v3148_v14  ;;  %v2364_v48 = vld [vmem:[#allocation20 + $0xe18] sm:$0xff]  ;;  %v2361_v61 = vld [vmem:[#allocation20 + $0xe00] sm:$0xff]  ;;  %v2363_v14 = vld [vmem:[#allocation20 + $0xe10] sm:$0xff]  ;;  %v6282_v21 = vrot.slane %v2492_v57, %v6154_v54 }
 0x735   :  { %5044 = vmatpush1.bf16.msra.mxu0 %v6251_v37  ;;  %v2381_v57 = vld [vmem:[#allocation20 + $0xea0] sm:$0xff] }
 0x736   :  { %5046 = vmatprep.subr.bf16.mxu0 %v6254_v60  ;;  %v2508_v10 = vcombine.high %v6282_v21, %v6282_v21 }
 0x737   :  { %4916 = vmatpush1.bf16.msra.mxu1 %v4915_v24  ;;  %v2351_v24 = vld [vmem:[#allocation20 + $0xdb0] sm:$0xff] }
 0x738   :  { %4918 = vmatprep.subr.bf16.mxu1 %v4917_v31  ;;  %v2356_v31 = vld [vmem:[#allocation20 + $0xdd8] sm:$0xff]  ;;  %v4931_v34 = vpack.c.bf16 %v2351_v24, %v2349_v13  ;;  %v4945_v13 = vpack.c.bf16 %v2368_v30, %v2366_v23 }
 0x739   :  { %5048 = vmatpush1.bf16.msra.mxu0 %v6257_v9  ;;  %v2372_v24 = vld [vmem:[#allocation20 + $0xe58] sm:$0xff] }
 0x73a   :  { %5050 = vmatprep.subr.bf16.mxu0 %v6260_v6 }
 0x73b   :  { %4920 = vmatpush1.bf16.msra.mxu1 %v4919_v53  ;;  %v4933_v53 = vpack.c.bf16 %v2356_v31, %v2354_v29  ;;  %v2371_v29 = vld [vmem:[#allocation20 + $0xe50] sm:$0xff]  ;;  %v2374_v31 = vld [vmem:[#allocation20 + $0xe68] sm:$0xff] }
 0x73c   :  { %4922 = vmatprep.subr.bf16.mxu1 %v4921_v3  ;;  %v2360_v3 = vld [vmem:[#allocation20 + $0xdf8] sm:$0xff]  ;;  %v4951_v38 = vpack.c.bf16 %v2371_v29, %v2369_v28  ;;  %v2394_v28 = vld [vmem:[#allocation20 + $0xf08] sm:$0xff] }
 0x73d   :  { %5052 = vmatpush1.bf16.msra.mxu0 %v6263_v35  ;;  %v4937_v1 = vpack.c.bf16 %v2360_v3, %v2358_v51  ;;  %v2380_v51 = vld [vmem:[#allocation20 + $0xe98] sm:$0xff] }
 0x73e   :  { %5054 = vmatprep.subr.bf16.mxu0 %v6266_v15  ;;  %v2396_v29 = vld [vmem:[#allocation20 + $0xf18] sm:$0xff] }
 0x73f   :  { %4924 = vmatpush1.bf16.msra.mxu1 %v4923_v45  ;;  %v2362_v45 = vld [vmem:[#allocation20 + $0xe08] sm:$0xff] }
 0x740   :  { %4926 = vmatprep.subr.bf16.mxu1 %v4925_v12  ;;  %v4941_v12 = vpack.c.bf16 %v2364_v48, %v2362_v45  ;;  %v4961_v48 = vpack.c.bf16 %v2384_v55, %v2382_v42 }
 0x741   :  { %5056 = vmatpush1.bf16.msra.mxu0 %v6269_v33 }
 0x742   :  { %5058 = vmatprep.subr.bf16.mxu0 %v6272_v36 }
 0x743   :  { %4928 = vmatpush1.bf16.msra.mxu1 %v4927_v41  ;;  %v4943_v41 = vpack.c.bf16 %v2363_v14, %v2361_v61  ;;  %v2388_v61 = vld [vmem:[#allocation20 + $0xed8] sm:$0xff] }
 0x744   :  { %4930 = vmatprep.subr.bf16.mxu1 %v4929_v22  ;;  %v2370_v22 = vld [vmem:[#allocation20 + $0xe48] sm:$0xff] }
 0x745   :  { %5060 = vmatpush1.bf16.msra.mxu0 %v6275_v4  ;;  %v4949_v54 = vpack.c.bf16 %v2372_v24, %v2370_v22 }
 0x747   :  { %4932 = vmatpush1.bf16.msra.mxu1 %v4931_v34  ;;  %v2376_v34 = vld [vmem:[#allocation20 + $0xe78] sm:$0xff] }
 0x748   :  { %4934 = vmatprep.subr.bf16.mxu1 %v4933_v53  ;;  %v4953_v43 = vpack.c.bf16 %v2376_v34, %v2374_v31  ;;  %v2373_v53 = vld [vmem:[#allocation20 + $0xe60] sm:$0xff]  ;;  %v4973_v34 = vpack.c.bf16 %v2396_v29, %v2394_v28 }
 0x749   :  { %v4955_v3 = vpack.c.bf16 %v2375_v11, %v2373_v53  ;;  %v2398_v53 = vld [vmem:[#allocation20 + $0xf28] sm:$0xff]  ;;  %v2400_v11 = vld [vmem:[#allocation20 + $0xf38] sm:$0xff] }
 0x74b   :  { %4936 = vmatpush1.bf16.msra.mxu1 %v4935_v7  ;;  %v2377_v7 = vld [vmem:[#allocation20 + $0xe80] sm:$0xff] }
 0x74c   :  { %4938 = vmatprep.subr.bf16.mxu1 %v4937_v1  ;;  %v2379_v1 = vld [vmem:[#allocation20 + $0xe90] sm:$0xff] }
 0x74d   :  { %v4959_v45 = vpack.c.bf16 %v2379_v1, %v2377_v7  ;;  %v2402_v7 = vld [vmem:[#allocation20 + $0xf48] sm:$0xff]  ;;  %v2404_v1 = vld [vmem:[#allocation20 + $0xf58] sm:$0xff] }
 0x74e   :  { %v4981_v55 = vpack.c.bf16 %v2404_v1, %v2402_v7 }
 0x74f   :  { %4940 = vmatpush1.bf16.msra.mxu1 %v4939_v5  ;;  %v2383_v5 = vld [vmem:[#allocation20 + $0xeb0] sm:$0xff] }
 0x750   :  { %4942 = vmatprep.subr.bf16.mxu1 %v4941_v12  ;;  %v2386_v12 = vld [vmem:[#allocation20 + $0xec8] sm:$0xff]  ;;  %v4963_v14 = vpack.c.bf16 %v2383_v5, %v2381_v57  ;;  %v2408_v5 = vld [vmem:[#allocation20 + $0xf78] sm:$0xff] }
 0x751   :  { %v4965_v30 = vpack.c.bf16 %v2388_v61, %v2386_v12  ;;  %v2406_v57 = vld [vmem:[#allocation20 + $0xf68] sm:$0xff] }
 0x752   :  { %3016 = vmatmul.mubr.f32.vlgmr.msra.gmra.mrb[40].mxu1 %v6190_v20  ;;  %v4957_v20 = vpack.c.bf16 %v2380_v51, %v2378_v0  ;;  %v4977_v51 = vpack.c.bf16 %v2400_v11, %v2398_v53  ;;  %v4985_v61 = vpack.c.bf16 %v2408_v5, %v2406_v57  ;;  %v3158_v57 = vld [vmem:[#allocation23 + $0x1d8] sm:$0xff] }
 0x753   :  { %4944 = vmatpush1.bf16.msra.mxu1 %v4943_v41  ;;  %3086 = vmatprep.mubr.f32.mxu1 %v2508_v10  ;;  %v2385_v41 = vld [vmem:[#allocation20 + $0xec0] sm:$0xff]  ;;  %v2392_v10 = vld [vmem:[#allocation20 + $0xef8] sm:$0xff] }
 0x754   :  { %4946 = vmatprep.subr.bf16.mxu1 %v4945_v13  ;;  %v2387_v13 = vld [vmem:[#allocation20 + $0xed0] sm:$0xff]  ;;  %v4969_v24 = vpack.c.bf16 %v2392_v10, %v2390_v19 }
 0x755   :  { %v4967_v22 = vpack.c.bf16 %v2387_v13, %v2385_v41  ;;  %v2410_v41 = vld [vmem:[#allocation20 + $0xf88] sm:$0xff]  ;;  %v2412_v13 = vld [vmem:[#allocation20 + $0xf98] sm:$0xff] }
 0x756   :  { %v4989_v10 = vpack.c.bf16 %v2412_v13, %v2410_v41  ;;  %v3162_v41 = vld [vmem:[#allocation23 + $0x1f8] sm:$0xff]  ;;  %v3159_v13 = vld [vmem:[#allocation23 + $0x1e0] sm:$0xff] }
 0x757   :  { %4948 = vmatpush1.bf16.msra.mxu1 %v4947_v25  ;;  %v2389_v25 = vld [vmem:[#allocation20 + $0xee0] sm:$0xff] }
 0x758   :  { %4950 = vmatprep.subr.bf16.mxu1 %v4949_v54  ;;  %v2391_v54 = vld [vmem:[#allocation20 + $0xef0] sm:$0xff] }
 0x759   :  { %v4971_v31 = vpack.c.bf16 %v2391_v54, %v2389_v25  ;;  %v2414_v25 = vld [vmem:[#allocation20 + $0xfa8] sm:$0xff]  ;;  %v2416_v54 = vld [vmem:[#allocation20 + $0xfb8] sm:$0xff] }
 0x75a   :  { %v4993_v29 = vpack.c.bf16 %v2416_v54, %v2414_v25  ;;  %v2433_v25 = vsub.s32 1, %v6151_v40 }
 0x75b   :  { %4952 = vmatpush1.bf16.msra.mxu1 %v4951_v38  ;;  %v2393_v38 = vld [vmem:[#allocation20 + $0xf00] sm:$0xff] }
 0x75c   :  { %4954 = vmatprep.subr.bf16.mxu1 %v4953_v43  ;;  %v2395_v43 = vld [vmem:[#allocation20 + $0xf10] sm:$0xff] }
 0x75d   :  { %v4975_v0 = vpack.c.bf16 %v2395_v43, %v2393_v38  ;;  %v2418_v38 = vld [vmem:[#allocation20 + $0xfc8] sm:$0xff]  ;;  %v2420_v43 = vld [vmem:[#allocation20 + $0xfd8] sm:$0xff] }
 0x75e   :  { %v4997_v11 = vpack.c.bf16 %v2420_v43, %v2418_v38 }
 0x75f   :  { %4956 = vmatpush1.bf16.msra.mxu1 %v4955_v3  ;;  %v2397_v3 = vld [vmem:[#allocation20 + $0xf20] sm:$0xff] }
 0x760   :  { %4958 = vmatprep.subr.bf16.mxu1 %v4957_v20  ;;  %v2399_v20 = vld [vmem:[#allocation20 + $0xf30] sm:$0xff] }
 0x761   :  { %v4979_v42 = vpack.c.bf16 %v2399_v20, %v2397_v3  ;;  %v2422_v3 = vld [vmem:[#allocation20 + $0xfe8] sm:$0xff]  ;;  %v2424_v20 = vld [vmem:[#allocation20 + $0xff8] sm:$0xff] }
 0x762   :  { %v5001_v1 = vpack.c.bf16 %v2424_v20, %v2422_v3 }
 0x763   :  { %4960 = vmatpush1.bf16.msra.mxu1 %v4959_v45  ;;  %v6287_v23 = vpop.f32.mrb[28].mxu0  ;;  %v2401_v45 = vld [vmem:[#allocation20 + $0xf40] sm:$0xff] }
 0x764   :  { %4962 = vmatprep.subr.bf16.mxu1 %v4961_v48  ;;  %v6289_v18 = vpop.f32.mrb[29].mxu0  ;;  %v2403_v48 = vld [vmem:[#allocation20 + $0xf50] sm:$0xff] }
 0x765   :  { %v4983_v12 = vpack.c.bf16 %v2403_v48, %v2401_v45  ;;  %v3156_v48 = vld [vmem:[#allocation23 + $0x1c8] sm:$0xff] }
 0x766   :  { %v6292_v5 = vpack.c.bf16 %v3158_v57, %v3156_v48 }
 0x767   :  { %4964 = vmatpush1.bf16.msra.mxu1 %v4963_v14  ;;  %v2405_v14 = vld [vmem:[#allocation20 + $0xf60] sm:$0xff] }
 0x768   :  { %4966 = vmatprep.subr.bf16.mxu1 %v4965_v30  ;;  %v2407_v30 = vld [vmem:[#allocation20 + $0xf70] sm:$0xff]  ;;  %5062 = vmatprep.subr.bf16.mxu0 %v6292_v5 }
 0x769   :  { %v4987_v19 = vpack.c.bf16 %v2407_v30, %v2405_v14  ;;  %v3160_v14 = vld [vmem:[#allocation23 + $0x1e8] sm:$0xff] }
 0x76b   :  { %4968 = vmatpush1.bf16.msra.mxu1 %v4967_v22  ;;  %v2409_v22 = vld [vmem:[#allocation20 + $0xf80] sm:$0xff] }
 0x76c   :  { %4970 = vmatprep.subr.bf16.mxu1 %v4969_v24  ;;  %v2411_v24 = vld [vmem:[#allocation20 + $0xf90] sm:$0xff] }
 0x76d   :  { %v4991_v28 = vpack.c.bf16 %v2411_v24, %v2409_v22  ;;  %v2425_v24 = vld [vmem:[#allocation21] sm:$0x3] }
 0x76f   :  { %4972 = vmatpush1.bf16.msra.mxu1 %v4971_v31  ;;  %v2413_v31 = vld [vmem:[#allocation20 + $0xfa0] sm:$0xff] }
 0x770   :  { %4974 = vmatprep.subr.bf16.mxu1 %v4973_v34  ;;  %v2415_v34 = vld [vmem:[#allocation20 + $0xfb0] sm:$0xff] }
 0x771   :  { %v4995_v53 = vpack.c.bf16 %v2415_v34, %v2413_v31 }
 0x773   :  { %4976 = vmatpush1.bf16.msra.mxu1 %v4975_v0  ;;  %v2417_v0 = vld [vmem:[#allocation20 + $0xfc0] sm:$0xff] }
 0x774   :  { %4978 = vmatprep.subr.bf16.mxu1 %v4977_v51  ;;  %v2419_v51 = vld [vmem:[#allocation20 + $0xfd0] sm:$0xff] }
 0x775   :  { %v4999_v7 = vpack.c.bf16 %v2419_v51, %v2417_v0 }
 0x777   :  { %4980 = vmatpush1.bf16.msra.mxu1 %v4979_v42  ;;  %v2421_v42 = vld [vmem:[#allocation20 + $0xfe0] sm:$0xff] }
 0x778   :  { %4982 = vmatprep.subr.bf16.mxu1 %v4981_v55  ;;  %v2423_v55 = vld [vmem:[#allocation20 + $0xff0] sm:$0xff] }
 0x779   :  { %v5003_v45 = vpack.c.bf16 %v2423_v55, %v2421_v42 }
 0x77b   :  { %4984 = vmatpush1.bf16.msra.mxu1 %v4983_v12  ;;  %v3155_v12 = vld [vmem:[#allocation23 + $0x1c0] sm:$0xff] }
 0x77c   :  { %4986 = vmatprep.subr.bf16.mxu1 %v4985_v61  ;;  %v3157_v61 = vld [vmem:[#allocation23 + $0x1d0] sm:$0xff] }
 0x77d   :  { %v6294_v30 = vpack.c.bf16 %v3157_v61, %v3155_v12 }
 0x77f   :  { %4988 = vmatpush1.bf16.msra.mxu1 %v4987_v19  ;;  %v3161_v19 = vld [vmem:[#allocation23 + $0x1f0] sm:$0xff]  ;;  %5064 = vmatpush1.bf16.msra.mxu0 %v6294_v30 }
 0x780   :  { %4990 = vmatprep.subr.bf16.mxu1 %v4989_v10  ;;  %v6297_v10 = vpack.c.bf16 %v3162_v41, %v3160_v14  ;;  %v6300_v22 = vpack.c.bf16 %v3161_v19, %v3159_v13  ;;  %v3418_v41 = vld [vmem:[#allocation26 + $0x30] sm:$0xff]  ;;  %v3419_v13 = vld [vmem:[#allocation26 + $0x38] sm:$0xff]  ;;  %v3436_v19 = vld [vmem:[#allocation26 + $0xc0] sm:$0xff] }
 0x782   :  { %5066 = vmatprep.subr.bf16.mxu0 %v6297_v10 }
 0x783   :  { %4992 = vmatpush1.bf16.msra.mxu1 %v4991_v28  ;;  %5068 = vmatpush1.bf16.msra.mxu0 %v6300_v22  ;;  %v2434_v28 = vrot.slane %v2425_v24, %v2433_v25 }
 0x784   :  { %4994 = vmatprep.subr.bf16.mxu1 %v4993_v29  ;;  %5070 = vmatprep.subr.bf16.mxu0 %v6195_v47 }
 0x785   :  { %v5231_v31 = vadd.f32 %v6289_v18, %v2434_v28  ;;  %v3439_v28 = vld [vmem:[#allocation26 + $0xd8] sm:$0xff] }
 0x787   :  { %4996 = vmatpush1.bf16.msra.mxu1 %v4995_v53 }
 0x788   :  { %4998 = vmatprep.subr.bf16.mxu1 %v4997_v11 }
 0x78b   :  { %5000 = vmatpush1.bf16.msra.mxu1 %v4999_v7 }
 0x78c   :  { %5002 = vmatprep.subr.bf16.mxu1 %v5001_v1 }
 0x78f   :  { %5004 = vmatpush1.bf16.msra.mxu1 %v5003_v45 }
 0x792   :  { %3087 = vmatmul.mubr.f32.vlgmr.msra.gmra.mrb[40].mxu1 %v6282_v21  ;;  %v2429_v21 = vsub.s32 0, %v6151_v40  ;;  %v3163_v40 = vld [vmem:[#allocation24] sm:$0x3] }
 0x793   :  { %v6343_v18 = vrot.slane %v3163_v40, %v2433_v25  ;;  %v3421_v25 = vld [vmem:[#allocation26 + $0x48] sm:$0xff] }
 0x794   :  { %v2430_v54 = vrot.slane %v2425_v24, %v2429_v21  ;;  %v3420_v24 = vld [vmem:[#allocation26 + $0x40] sm:$0xff] }
 0x796   :  { %v5229_v29 = vadd.f32 %v6287_v23, %v2430_v54  ;;  %v6341_v23 = vrot.slane %v3163_v40, %v2429_v21  ;;  %v3438_v54 = vld [vmem:[#allocation26 + $0xd0] sm:$0xff] }
 0x797   :  { %v3442_v40 = vld [vmem:[#allocation26 + $0xf0] sm:$0xff] }
 0x865   :  { %v3088_v34 = vpop.f32.mrb[40].mxu1 }
 0x866   :  { %v5230_v38 = vadd.f32 %v5229_v29, %v3088_v34  ;;  %v3090_v43 = vpop.f32.mrb[41].mxu1  ;;  %v5215_v29 = vpack.c.bf16 %v3421_v25, %v3420_v24  ;;  %v3422_v34 = vld [vmem:[#allocation26 + $0x50] sm:$0xff] }
 0x867   :  { %v5232_v53 = vadd.f32 %v5231_v31, %v3090_v43  ;;  %v5217_v31 = vpack.c.bf16 %v3439_v28, %v3438_v54 }
 0x868   :  { %v3095_v11 = vmul.f32 0.01, %v5230_v38  ;;  %vm3093_vm8 = vcmp.ge.f32.partialorder %v5230_v38, 0.0 }
 0x869   :  { %v3096_v0 = vmul.f32 0.01, %v5232_v53  ;;  %vm3094_vm9 = vcmp.ge.f32.partialorder %v5232_v53, 0.0 }
 0x86a   :  { %v3097_v3 = vsel %vm3093_vm8, %v5230_v38, %v3095_v11  ;;  %v3423_v38 = vld [vmem:[#allocation26 + $0x58] sm:$0xff]  ;;  %v3441_v11 = vld [vmem:[#allocation26 + $0xe8] sm:$0xff] }
 0x86b   :  { %v3098_v51 = vsel %vm3094_vm9, %v5232_v53, %v3096_v0  ;;  %v5219_v43 = vpack.c.bf16 %v3423_v38, %v3422_v34  ;;  %v3440_v53 = vld [vmem:[#allocation26 + $0xe0] sm:$0xff] }
 0x86c   :  { %3239 = vmatprep.mubr.f32.mxu0 %v3098_v51  ;;  %v5221_v0 = vpack.c.bf16 %v3441_v11, %v3440_v53 }
 0x86d   :  { %3240 = vmatmul.mubr.f32.vlgmr.msra.gmra.mrb[30].mxu0 %v3097_v3 }
 0x86e   :  { %5072 = vmatpush1.bf16.msra.mxu0 %v6197_v59 }
 0x86f   :  { %5074 = vmatprep.subr.bf16.mxu0 %v6199_v50 }
 0x872   :  { %5076 = vmatpush1.bf16.msra.mxu0 %v6203_v63 }
 0x873   :  { %5078 = vmatprep.subr.bf16.mxu0 %v6206_v58 }
 0x876   :  { %5080 = vmatpush1.bf16.msra.mxu0 %v6209_v56 }
 0x877   :  { %5082 = vmatprep.subr.bf16.mxu0 %v6212_v8 }
 0x87a   :  { %5084 = vmatpush1.bf16.msra.mxu0 %v6215_v32 }
 0x87b   :  { %5086 = vmatprep.subr.bf16.mxu0 %v6218_v44 }
 0x87e   :  { %5088 = vmatpush1.bf16.msra.mxu0 %v6221_v27 }
 0x87f   :  { %5090 = vmatprep.subr.bf16.mxu0 %v6224_v2 }
 0x882   :  { %5092 = vmatpush1.bf16.msra.mxu0 %v6227_v49 }
 0x883   :  { %5094 = vmatprep.subr.bf16.mxu0 %v6230_v62 }
 0x886   :  { %5096 = vmatpush1.bf16.msra.mxu0 %v6233_v46 }
 0x887   :  { %5098 = vmatprep.subr.bf16.mxu0 %v6236_v39 }
 0x88a   :  { %5100 = vmatpush1.bf16.msra.mxu0 %v6239_v17 }
 0x88b   :  { %5102 = vmatprep.subr.bf16.mxu0 %v6242_v26 }
 0x88e   :  { %5104 = vmatpush1.bf16.msra.mxu0 %v6245_v52 }
 0x88f   :  { %5106 = vmatprep.subr.bf16.mxu0 %v6248_v16 }
 0x892   :  { %5108 = vmatpush1.bf16.msra.mxu0 %v6251_v37 }
 0x893   :  { %5110 = vmatprep.subr.bf16.mxu0 %v6254_v60 }
 0x896   :  { %5112 = vmatpush1.bf16.msra.mxu0 %v6257_v9 }
 0x897   :  { %5114 = vmatprep.subr.bf16.mxu0 %v6260_v6 }
 0x89a   :  { %5116 = vmatpush1.bf16.msra.mxu0 %v6263_v35 }
 0x89b   :  { %5118 = vmatprep.subr.bf16.mxu0 %v6266_v15 }
 0x89e   :  { %5120 = vmatpush1.bf16.msra.mxu0 %v6269_v33 }
 0x89f   :  { %5122 = vmatprep.subr.bf16.mxu0 %v6272_v36 }
 0x8a2   :  { %5124 = vmatpush1.bf16.msra.mxu0 %v6275_v4 }
 0x8a3   :  { %5126 = vmatprep.subr.bf16.mxu0 %v6292_v5 }
 0x8a6   :  { %5128 = vmatpush1.bf16.msra.mxu0 %v6294_v30 }
 0x8a7   :  { %5130 = vmatprep.subr.bf16.mxu0 %v6297_v10 }
 0x8aa   :  { %5132 = vmatpush1.bf16.msra.mxu0 %v6300_v22 }
 0x8ab   :  { %5134 = vmatprep.subr.bf16.mxu0 %v6195_v47  ;;  %v3428_v47 = vld [vmem:[#allocation26 + $0x80] sm:$0xff] }
 0x940   :  { %v3241_v20 = vpop.f32.mrb[30].mxu0 }
 0x941   :  { %v3242_v7 = vadd.f32 %v3241_v20, %v6341_v23  ;;  %v3243_v1 = vpop.f32.mrb[31].mxu0 }
 0x942   :  { %v3244_v42 = vadd.f32 %v3243_v1, %v6343_v18  ;;  %v3426_v1 = vld [vmem:[#allocation26 + $0x70] sm:$0xff] }
 0x943   :  { %vm3246_vm10 = vcmp.ge.f32.partialorder %v3242_v7, 0.0  ;;  %v3248_v55 = vmul.f32 0.01, %v3242_v7 }
 0x944   :  { %vm3247_vm11 = vcmp.ge.f32.partialorder %v3244_v42, 0.0  ;;  %v3249_v45 = vmul.f32 0.01, %v3244_v42 }
 0x945   :  { %v3250_v48 = vsel %vm3246_vm10, %v3242_v7, %v3248_v55  ;;  %v3443_v7 = vld [vmem:[#allocation26 + $0xf8] sm:$0xff] }
 0x946   :  { %v3251_v57 = vsel %vm3247_vm11, %v3244_v42, %v3249_v45  ;;  %v3252_v61 = vadd.f32 %v3250_v48, %v3097_v3  ;;  %v3425_v3 = vld [vmem:[#allocation26 + $0x68] sm:$0xff]  ;;  %v3427_v42 = vld [vmem:[#allocation26 + $0x78] sm:$0xff]  ;;  %v5225_v55 = vpack.c.bf16 %v3443_v7, %v3442_v40 }
 0x947   :  { %v3253_v12 = vadd.f32 %v3251_v57, %v3098_v51  ;;  %v3424_v51 = vld [vmem:[#allocation26 + $0x60] sm:$0xff]  ;;  %v5227_v45 = vpack.c.bf16 %v3427_v42, %v3426_v1 }
 0x948   :  { %v5223_v20 = vpack.c.bf16 %v3425_v3, %v3424_v51 }
 0x949   :  { %3318 = vmatprep.mubr.f32.mxu0 %v3253_v12 }
 0x94a   :  { %3319 = vmatmul.mubr.f32.vlgmr.msra.gmra.mrb[32].mxu0 %v3252_v61 }
 0x94b   :  { %5136 = vmatpush1.bf16.msra.mxu0 %v6197_v59  ;;  %v3429_v59 = vld [vmem:[#allocation26 + $0x88] sm:$0xff] }
 0x94c   :  { %5138 = vmatprep.subr.bf16.mxu0 %v6199_v50  ;;  %v5197_v50 = vpack.c.bf16 %v3429_v59, %v3428_v47 }
 0x94f   :  { %5140 = vmatpush1.bf16.msra.mxu0 %v6203_v63 }
 0x950   :  { %5142 = vmatprep.subr.bf16.mxu0 %v6206_v58 }
 0x953   :  { %5144 = vmatpush1.bf16.msra.mxu0 %v6209_v56 }
 0x954   :  { %5146 = vmatprep.subr.bf16.mxu0 %v6212_v8 }
 0x957   :  { %5148 = vmatpush1.bf16.msra.mxu0 %v6215_v32 }
 0x958   :  { %5150 = vmatprep.subr.bf16.mxu0 %v6218_v44 }
 0x95b   :  { %5152 = vmatpush1.bf16.msra.mxu0 %v6221_v27  ;;  %v3412_v27 = vld [vmem:[#allocation26] sm:$0xff] }
 0x95c   :  { %5154 = vmatprep.subr.bf16.mxu0 %v6224_v2  ;;  %v3413_v2 = vld [vmem:[#allocation26 + $0x8] sm:$0xff] }
 0x95f   :  { %5156 = vmatpush1.bf16.msra.mxu0 %v6227_v49 }
 0x960   :  { %5158 = vmatprep.subr.bf16.mxu0 %v6230_v62  ;;  %v3430_v62 = vld [vmem:[#allocation26 + $0x90] sm:$0xff] }
 0x963   :  { %5160 = vmatpush1.bf16.msra.mxu0 %v6233_v46  ;;  %v3431_v46 = vld [vmem:[#allocation26 + $0x98] sm:$0xff] }
 0x964   :  { %5162 = vmatprep.subr.bf16.mxu0 %v6236_v39 }
 0x967   :  { %5164 = vmatpush1.bf16.msra.mxu0 %v6239_v17 }
 0x968   :  { %5166 = vmatprep.subr.bf16.mxu0 %v6242_v26  ;;  %v5199_v26 = vpack.c.bf16 %v3413_v2, %v3412_v27 }
 0x96b   :  { %5168 = vmatpush1.bf16.msra.mxu0 %v6245_v52 }
 0x96c   :  { %5170 = vmatprep.subr.bf16.mxu0 %v6248_v16  ;;  %v5201_v16 = vpack.c.bf16 %v3431_v46, %v3430_v62 }
 0x96f   :  { %5172 = vmatpush1.bf16.msra.mxu0 %v6251_v37  ;;  %v3414_v37 = vld [vmem:[#allocation26 + $0x10] sm:$0xff] }
 0x970   :  { %5174 = vmatprep.subr.bf16.mxu0 %v6254_v60  ;;  %v3415_v60 = vld [vmem:[#allocation26 + $0x18] sm:$0xff] }
 0x973   :  { %5176 = vmatpush1.bf16.msra.mxu0 %v6257_v9  ;;  %v3432_v9 = vld [vmem:[#allocation26 + $0xa0] sm:$0xff] }
 0x974   :  { %5178 = vmatprep.subr.bf16.mxu0 %v6260_v6  ;;  %v3433_v6 = vld [vmem:[#allocation26 + $0xa8] sm:$0xff] }
 0x977   :  { %5180 = vmatpush1.bf16.msra.mxu0 %v6263_v35  ;;  %v5203_v35 = vpack.c.bf16 %v3415_v60, %v3414_v37 }
 0x978   :  { %5182 = vmatprep.subr.bf16.mxu0 %v6266_v15  ;;  %v5205_v15 = vpack.c.bf16 %v3433_v6, %v3432_v9 }
 0x97b   :  { %5184 = vmatpush1.bf16.msra.mxu0 %v6269_v33  ;;  %v3416_v33 = vld [vmem:[#allocation26 + $0x20] sm:$0xff] }
 0x97c   :  { %5186 = vmatprep.subr.bf16.mxu0 %v6272_v36  ;;  %v3417_v36 = vld [vmem:[#allocation26 + $0x28] sm:$0xff] }
 0x97d   :  { %v5207_v14 = vpack.c.bf16 %v3417_v36, %v3416_v33 }
 0x97f   :  { %5188 = vmatpush1.bf16.msra.mxu0 %v6275_v4  ;;  %v3434_v4 = vld [vmem:[#allocation26 + $0xb0] sm:$0xff] }
 0x980   :  { %5190 = vmatprep.subr.bf16.mxu0 %v6292_v5  ;;  %v3435_v5 = vld [vmem:[#allocation26 + $0xb8] sm:$0xff] }
 0x983   :  { %5192 = vmatpush1.bf16.msra.mxu0 %v6294_v30  ;;  %v5209_v30 = vpack.c.bf16 %v3435_v5, %v3434_v4 }
 0x984   :  { %5194 = vmatprep.subr.bf16.mxu0 %v6297_v10  ;;  %v3437_v10 = vld [vmem:[#allocation26 + $0xc8] sm:$0xff] }
 0x985   :  { %v5213_v21 = vpack.c.bf16 %v3437_v10, %v3436_v19 }
 0x987   :  { %5196 = vmatpush1.bf16.msra.mxu0 %v6300_v22  ;;  %v5211_v22 = vpack.c.bf16 %v3419_v13, %v3418_v41 }
 0x988   :  { %5198 = vmatprep.subr.bf16.mxu0 %v5197_v50 }
 0xa1d   :  { %v3320_v63 = vpop.f32.mrb[32].mxu0 }
 0xa1e   :  { %v3321_v58 = vadd.f32 %v3320_v63, %v6341_v23  ;;  %v3322_v56 = vpop.f32.mrb[33].mxu0 }
 0xa1f   :  { %v3323_v8 = vadd.f32 %v3322_v56, %v6343_v18 }
 0xa20   :  { %vm3325_vm12 = vcmp.ge.f32.partialorder %v3321_v58, 0.0  ;;  %v3327_v32 = vmul.f32 0.01, %v3321_v58 }
 0xa21   :  { %vm3326_vm13 = vcmp.ge.f32.partialorder %v3323_v8, 0.0  ;;  %v3328_v44 = vmul.f32 0.01, %v3323_v8 }
 0xa22   :  { %v3329_v49 = vsel %vm3325_vm12, %v3321_v58, %v3327_v32  ;;  %v3551_v32 = vld [vmem:[#allocation27] ss:$0 sm:$0xff] }
 0xa23   :  { %v3330_v39 = vsel %vm3326_vm13, %v3323_v8, %v3328_v44  ;;  %v6382_v52 = vadd.f32 %v3329_v49, %v3252_v61 }
 0xa24   :  { %v6380_v17 = vadd.f32 %v3330_v39, %v3253_v12 }
 0xa26   :  { %3397 = vmatprep.mubr.f32.mxu0 %v6380_v17 }
 0xa27   :  { %3398 = vmatmul.mubr.f32.vlgmr.msra.gmra.mrb[34].mxu0 %v6382_v52 }
 0xa28   :  { %5200 = vmatpush3.bf16.msra.mxu0 %v5199_v26 }
 0xa29   :  { %5202 = vmatprep.subr.bf16.mxu0 %v5201_v16 }
 0xa2c   :  { %5204 = vmatpush3.bf16.msra.mxu0 %v5203_v35 }
 0xa2d   :  { %5206 = vmatprep.subr.bf16.mxu0 %v5205_v15 }
 0xa30   :  { %5208 = vmatpush3.bf16.msra.mxu0 %v5207_v14 }
 0xa31   :  { %5210 = vmatprep.subr.bf16.mxu0 %v5209_v30 }
 0xa34   :  { %5212 = vmatpush3.bf16.msra.mxu0 %v5211_v22 }
 0xa35   :  { %5214 = vmatprep.subr.bf16.mxu0 %v5213_v21 }
 0xa38   :  { %5216 = vmatpush3.bf16.msra.mxu0 %v5215_v29 }
 0xa39   :  { %5218 = vmatprep.subr.bf16.mxu0 %v5217_v31 }
 0xa3c   :  { %5220 = vmatpush3.bf16.msra.mxu0 %v5219_v43 }
 0xa3d   :  { %5222 = vmatprep.subr.bf16.mxu0 %v5221_v0 }
 0xa40   :  { %5224 = vmatpush3.bf16.msra.mxu0 %v5223_v20 }
 0xa41   :  { %5226 = vmatprep.subr.bf16.mxu0 %v5225_v55 }
 0xa44   :  { %5228 = vmatpush3.bf16.msra.mxu0 %v5227_v45 }
 0xafa   :  { %v3399_v48 = vpop.f32.mrb[34].mxu0 }
 0xafb   :  { %v3400_v57 = vadd.f32 %v3399_v48, %v6341_v23  ;;  %v3401_v12 = vpop.f32.mrb[35].mxu0 }
 0xafc   :  { %v3402_v61 = vadd.f32 %v3401_v12, %v6343_v18 }
 0xafd   :  { %vm3404_vm14 = vcmp.ge.f32.partialorder %v3400_v57, 0.0  ;;  %v3406_v47 = vmul.f32 0.01, %v3400_v57 }
 0xafe   :  { %vm3405_vm15 = vcmp.ge.f32.partialorder %v3402_v61, 0.0  ;;  %v3407_v59 = vmul.f32 0.01, %v3402_v61 }
 0xaff   :  { %v3408_v50 = vsel %vm3404_vm14, %v3400_v57, %v3406_v47 }
 0xb00   :  { %v3409_v63 = vsel %vm3405_vm15, %v3402_v61, %v3407_v59  ;;  %v3410_v56 = vadd.f32 %v3408_v50, %v6382_v52 }
 0xb01   :  { %v3411_v58 = vadd.f32 %v3409_v63, %v6380_v17 }
 0xb03   :  { %3515 = vmatprep.mubr.f32.mxu0 %v3411_v58 }
 0xb04   :  { %3516 = vmatmul.mubr.f32.vlgmr.msra.gmra.mrb[36].mxu0 %v3410_v56 }
 0xbd7   :  { %v3948_v8 = vpop.f32.mrb[36].mxu0 }
 0xbd8   :  { %v3949_v44 = vpop.f32.mrb[37].mxu0 }
 0xbd9   :  { %v3950_v23 = vadd.f32 %v3949_v44, %v3948_v8 }
 0xbdb   :  { %v3518_v27 = vadd.f32 %v3950_v23, %v3551_v32 }
 0xbdd   :  { %3521 = vst [vmem:[#allocation29] sm:$0x3] %v3518_v27 }
 0xbde   :  { %5592 = shalt.err (!%p5589_p4)
}
 0xbdf   :  { %s5593_s4 = scalar_lea.hbm %s6417_s15, 32 }
 0xbe0   :  { %p5594_p5 = scmp.ne.s32.totalorder %s6417_s15, %s5593_s4  ;;  %p5597_p6 = scmp.lt.u32.totalorder %s5593_s4, %s6417_s15 }
 0xbe2   :  { %p5599_p7 = pnand %p5597_p6, %p5594_p5 }
 0xbe4   :  { %5602 = shalt.err (!%p5599_p7)
}
 0xbe5   :  { %3531 = dma.vmem_to_hbm [thread:$0]  %s3529_s30, 32, %s6417_s15, [#allocation8]  }
 0xbe6   :  { %5619 = dma.done.wait [#allocation8], 32  }
 0xbe7   :  { %5620 = vsyncadd [#allocation8], 4294967264 }
 0xbe8   :  { %3535 = vsyncpa [#allocation7], 1 }
 0xbe9   :  { %3536 = vsyncpa [#allocation10], 1 }
 0xbea   :  { %3537 = vsyncpa [#allocation13], 1 }
 0xbeb   :  { %3538 = vsyncpa [#allocation16], 1 }
 0xbec   :  { %3539 = vsyncpa [#allocation19], 1 }
 0xbed   :  { %3540 = vsyncpa [#allocation22], 1 }
 0xbee   :  { %3541 = vsyncpa [#allocation25], 1 }
 0xbef   :  { %3542 = vsyncpa [#allocation28], 1 }
 0xbf0   :  { %3543 = vsyncpa [#allocation8], 1 }

</bundles_post_ra>
